<compile_context>
chip_gen: v5e
topology: v5e:2x2
jax: 0.10.0
libtpu: 0.0.40
codegen_flags: <defaults>
</compile_context>

<pallas_src>
import functools

import jax
import jax.numpy as jnp
from jax import lax
from jax.experimental import pallas as pl
from jax.experimental.pallas import tpu as pltpu


BATCH_PAD = 8     # f32 sublane tile
LANE = 128        # lane width


# ----------------------------------------------------------------------------
# Kernel (single invocation, no grid, everything VMEM/register resident)
# ----------------------------------------------------------------------------
def gru_spotter_kernel(x_ref,        # (T*BP, D)   bf16, pad rows zero
                       wg_ref,       # (3D+9H, H)  bf16, per-gate weights row-stacked
                       wo_ref,       # (H, KP)     bf16, lane-padded output weight
                       bg_ref,       # (8*BP, H)   f32, pre-broadcast per-step biases
                       bo_ref,       # (BP, KP)    f32, padded cols = -1e30
                       out_ref,      # (BP, KP)    f32
                       *, seq_len, batch_pad, input_dim, hidden_dim):
    T, BP, D, H = seq_len, batch_pad, input_dim, hidden_dim
    f32 = jnp.float32
    bf16 = jnp.bfloat16

    # ---- unpack per-gate weights (static, aligned slices of a VMEM ref) ----
    o = 0
    w1_ih_r = wg_ref[o:o + D, :]; w1_ih_z = wg_ref[o + D:o + 2 * D, :]
    w1_ih_n = wg_ref[o + 2 * D:o + 3 * D, :]
    o = 3 * D
    w1_hh_r = wg_ref[o:o + H, :]; w1_hh_z = wg_ref[o + H:o + 2 * H, :]
    w1_hh_n = wg_ref[o + 2 * H:o + 3 * H, :]
    o += 3 * H
    w2_ih_r = wg_ref[o:o + H, :]; w2_ih_z = wg_ref[o + H:o + 2 * H, :]
    w2_ih_n = wg_ref[o + 2 * H:o + 3 * H, :]
    o += 3 * H
    w2_hh_r = wg_ref[o:o + H, :]; w2_hh_z = wg_ref[o + H:o + 2 * H, :]
    w2_hh_n = wg_ref[o + 2 * H:o + 3 * H, :]

    # ---- biases, pre-broadcast to BP sublanes (whole-tile reads) ----
    def b(i):
        return bg_ref[i * BP:(i + 1) * BP, :]
    b1_r, b1_z, b1_in, b1_hn = b(0), b(1), b(2), b(3)   # b*_r/b*_z already ih+hh summed
    b2_r, b2_z, b2_in, b2_hn = b(4), b(5), b(6), b(7)

    # ---- hoisted layer-1 input projection for ALL timesteps (off the serial chain),
    #      one matmul per gate so the per-step gate reads are aligned row slices ----
    x = x_ref[...]
    gx1_r = jnp.dot(x, w1_ih_r, preferred_element_type=f32)     # (T*BP, H)
    gx1_z = jnp.dot(x, w1_ih_z, preferred_element_type=f32)
    gx1_n = jnp.dot(x, w1_ih_n, preferred_element_type=f32)

    # zero initial hidden state (hidden1 = hidden2 = None in PyTorch)
    h1 = jnp.zeros((BP, H), f32)
    h2 = jnp.zeros((BP, H), f32)
    h1b = h1.astype(bf16)
    h2b = h2.astype(bf16)
    h2_list = []

    # T is small and static -> fully unrolled recurrence, no grid / pipeline overhead.
    for t in range(T):
        lo, hi = t * BP, (t + 1) * BP

        # All six hidden-state projections depend only on step t-1 state, so they
        # issue back-to-back and pipeline on the MXU (single bf16 pass each).
        gh1_r = jnp.dot(h1b, w1_hh_r, preferred_element_type=f32)
        gh1_z = jnp.dot(h1b, w1_hh_z, preferred_element_type=f32)
        gh1_n = jnp.dot(h1b, w1_hh_n, preferred_element_type=f32) + b1_hn
        gh2_r = jnp.dot(h2b, w2_hh_r, preferred_element_type=f32)
        gh2_z = jnp.dot(h2b, w2_hh_z, preferred_element_type=f32)
        gh2_n = jnp.dot(h2b, w2_hh_n, preferred_element_type=f32) + b2_hn

        # ---- GRU layer 1 (PyTorch gate order r, z, n; b_hn stays inside r*(...)) ----
        r1 = jax.nn.sigmoid(gx1_r[lo:hi, :] + gh1_r + b1_r)
        z1 = jax.nn.sigmoid(gx1_z[lo:hi, :] + gh1_z + b1_z)
        n1 = jnp.tanh(gx1_n[lo:hi, :] + b1_in + r1 * gh1_n)
        h1 = (1.0 - z1) * n1 + z1 * h1
        h1b = h1.astype(bf16)

        # ---- GRU layer 2 (only these matmuls must wait for this step's h1) ----
        gx2_r = jnp.dot(h1b, w2_ih_r, preferred_element_type=f32)
        gx2_z = jnp.dot(h1b, w2_ih_z, preferred_element_type=f32)
        gx2_n = jnp.dot(h1b, w2_ih_n, preferred_element_type=f32)
        r2 = jax.nn.sigmoid(gx2_r + gh2_r + b2_r)
        z2 = jax.nn.sigmoid(gx2_z + gh2_z + b2_z)
        n2 = jnp.tanh(gx2_n + b2_in + r2 * gh2_n)
        h2 = (1.0 - z2) * n2 + z2 * h2
        h2b = h2.astype(bf16)
        h2_list.append(h2b)

    # ---- Epilogue: Linear -> log_softmax -> mean over time (register resident) ----
    # Keyword axis is lane-padded to KP; padded bias is -1e30 so padded columns never
    # influence the row max or the sum of exps.
    wo = wo_ref[...]
    bo = bo_ref[...]
    KP = wo_ref.shape[1]
    acc = jnp.zeros((BP, KP), f32)
    for h2b_t in h2_list:
        logits = jnp.dot(h2b_t, wo, preferred_element_type=f32) + bo   # (BP, KP)
        m = jnp.max(logits, axis=-1, keepdims=True)
        lse = jnp.log(jnp.sum(jnp.exp(logits - m), axis=-1, keepdims=True)) + m
        acc = acc + (logits - lse)
    out_ref[...] = acc * (1.0 / T)


# ----------------------------------------------------------------------------
# One-time parameter packing (pure function of the static weights)
# ----------------------------------------------------------------------------
def prepare_params(params, *, batch_pad=BATCH_PAD, lane_pad=LANE):
    f32, bf16 = jnp.float32, jnp.bfloat16
    H = params["w1_hh"].shape[1]
    D = params["w1_ih"].shape[1]
    K = params["wo"].shape[0]
    KP = lane_pad * ((K + lane_pad - 1) // lane_pad)
    BP = batch_pad

    def gate_split_T(w):               # (3H, in) -> [ (in, H) per gate r, z, n ]
        return [w[g * H:(g + 1) * H, :].T for g in range(3)]

    # Packed per-gate weight slab (order must match the kernel's unpacking).
    wg = jnp.concatenate(
        gate_split_T(params["w1_ih"]) + gate_split_T(params["w1_hh"])
        + gate_split_T(params["w2_ih"]) + gate_split_T(params["w2_hh"]),
        axis=0).astype(bf16)                                   # (3D + 9H, H)

    # Per-step biases, pre-broadcast to BP sublanes.  r/z gates: ih+hh biases pre-summed
    # (mathematically identical); n gate: b_in outside, b_hn inside r*(...).
    def brow(v):
        return jnp.broadcast_to(v.reshape(1, H), (BP, H))
    b1i, b1h = params["b1_ih"], params["b1_hh"]
    b2i, b2h = params["b2_ih"], params["b2_hh"]
    rows = [
        b1i[0:H] + b1h[0:H], b1i[H:2 * H] + b1h[H:2 * H], b1i[2 * H:3 * H], b1h[2 * H:3 * H],
        b2i[0:H] + b2h[0:H], b2i[H:2 * H] + b2h[H:2 * H], b2i[2 * H:3 * H], b2h[2 * H:3 * H],
    ]
    bg = jnp.concatenate([brow(r) for r in rows], axis=0).astype(f32)   # (8*BP, H)

    # Lane-padded output projection; padded bias = -1e30 keeps the softmax exact.
    wo_pad = jnp.zeros((H, KP), bf16).at[:, :K].set(params["wo"].T.astype(bf16))
    bo_pad = jnp.full((BP, KP), -1e30, f32).at[:, :K].set(
        jnp.broadcast_to(params["bo"].reshape(1, K), (BP, K)))

    return {"wg": wg, "wo": wo_pad, "bg": bg, "bo": bo_pad}


# ----------------------------------------------------------------------------
# Forward wrapper (per-call work: pad/reshape x, launch kernel, slice output)
# ----------------------------------------------------------------------------
@functools.partial(jax.jit, static_argnames=("num_keywords",))
def gru_keyword_spotter(x, packed, *, num_keywords):
    """x: (T, B, input_dim) float32.  Returns (B, num_keywords)."""
    T, B, D = x.shape
    H = packed["wg"].shape[1]
    KP = packed["wo"].shape[1]
    BP = BATCH_PAD
    assert B <= BP, "prepare_params packed biases for batch_pad=8"

    # Pad batch to a full 8-sublane tile with zero rows, flatten time into rows,
    # and cast to bf16 for single-pass MXU matmuls.
    xp = jnp.zeros((T, BP, D), jnp.float32).at[:, :B, :].set(x)
    x2d = xp.reshape(T * BP, D).astype(jnp.bfloat16)

    kernel = functools.partial(gru_spotter_kernel,
                               seq_len=T, batch_pad=BP, input_dim=D, hidden_dim=H)
    vmem = pl.BlockSpec(memory_space=pltpu.MemorySpace.VMEM)   # whole array, VMEM-resident

    out_pad = pl.pallas_call(
        kernel,
        out_shape=jax.ShapeDtypeStruct((BP, KP), jnp.float32),
        in_specs=[vmem] * 5,
        out_specs=vmem,
    )(x2d, packed["wg"], packed["wo"], packed["bg"], packed["bo"])

    return out_pad[:B, :num_keywords]          # drop sublane + lane padding


# ----------------------------------------------------------------------------
# Pure-JAX reference (mirrors PyTorch semantics exactly, f32 throughout)
# ----------------------------------------------------------------------------
def reference_forward(x, params):
    H = params["w1_hh"].shape[1]

    def cell(h, x_t, wih, whh, bih, bhh):
        gx = x_t @ wih.T + bih
        gh = h @ whh.T + bhh
        r = jax.nn.sigmoid(gx[:, :H] + gh[:, :H])
        z = jax.nn.sigmoid(gx[:, H:2 * H] + gh[:, H:2 * H])
        n = jnp.tanh(gx[:, 2 * H:] + r * gh[:, 2 * H:])
        return (1.0 - z) * n + z * h

    def run_layer(x_seq, wih, whh, bih, bhh):
        B = x_seq.shape[1]
        h0 = jnp.zeros((B, H), jnp.float32)

        def step(h, x_t):
            h = cell(h, x_t, wih, whh, bih, bhh)
            return h, h

        _, hs = lax.scan(step, h0, x_seq)
        return hs

    out1 = run_layer(x, params["w1_ih"], params["w1_hh"], params["b1_ih"], params["b1_hh"])
    out2 = run_layer(out1, params["w2_ih"], params["w2_hh"], params["b2_ih"], params["b2_hh"])
    logits = out2 @ params["wo"].T + params["bo"]            # (T, B, K)
    lsm = jax.nn.log_softmax(logits, axis=2)
    return lsm.mean(axis=0)                                  # (B, K)


# ----------------------------------------------------------------------------
# Main
# ----------------------------------------------------------------------------
if __name__ == "__main__":
    # Small shapes consistent with the module: seq=8, batch=2, input_dim=32,
    # hidden_dim=32, num_keywords=16.
    T, B, D, H, K = 8, 2, 32, 32, 16

    root = jax.random.PRNGKey(0)
    keys = jax.random.split(root, 12)
    bound = 1.0 / jnp.sqrt(jnp.float32(H))

    def u(k, shape):
        return jax.random.uniform(k, shape, jnp.float32, minval=-bound, maxval=bound)

    params = {
        # gru1: nn.GRU(input_dim, hidden_dim)
        "w1_ih": u(keys[0], (3 * H, D)),
        "w1_hh": u(keys[1], (3 * H, H)),
        "b1_ih": u(keys[2], (3 * H,)),
        "b1_hh": u(keys[3], (3 * H,)),
        # gru2: nn.GRU(hidden_dim, hidden_dim)
        "w2_ih": u(keys[4], (3 * H, H)),
        "w2_hh": u(keys[5], (3 * H, H)),
        "b2_ih": u(keys[6], (3 * H,)),
        "b2_hh": u(keys[7], (3 * H,)),
        # hidden2keyword: nn.Linear(hidden_dim, num_keywords)
        "wo": u(keys[8], (K, H)),
        "bo": u(keys[9], (K,)),
    }

    x = jax.random.normal(keys[10], (T, B, D), jnp.float32)  # (seq, batch, input_dim)

    packed = prepare_params(params)                          # one-time weight packing
    out = gru_keyword_spotter(x, packed, num_keywords=K)
    out = jax.block_until_ready(out)

    ref = reference_forward(x, params)
    assert out.shape == (B, K), out.shape
    # bf16 MXU matmuls (f32 accumulation / gate math) -> relaxed tolerance vs f32 reference.
    assert jnp.allclose(out, ref, atol=3e-2, rtol=0.0), (
        f"max err {jnp.max(jnp.abs(out - ref))}")

    print("KERNEL_OK")
</pallas_src>

<mosaic_0001>
module attributes {stable_mosaic.version = 11 : i64} {
  func.func @gru_spotter_kernel(%arg0: memref<64x32xbf16, #tpu.memory_space<vmem>>, %arg1: memref<384x32xbf16, #tpu.memory_space<vmem>>, %arg2: memref<32x128xbf16, #tpu.memory_space<vmem>>, %arg3: memref<64x32xf32, #tpu.memory_space<vmem>>, %arg4: memref<8x128xf32, #tpu.memory_space<vmem>>, %arg5: memref<8x128xf32, #tpu.memory_space<vmem>>) attributes {dimension_semantics = [], scalar_prefetch = 0 : i64, scratch_operands = 0 : i64, tpu.core_type = #tpu.core_type<tc>} {
    %c0 = arith.constant 0 : index
    %c0_0 = arith.constant 0 : index
    %0 = vector.load %arg1[%c0, %c0_0] : memref<384x32xbf16, #tpu.memory_space<vmem>>, vector<32x32xbf16>
    %c32 = arith.constant 32 : index
    %c0_1 = arith.constant 0 : index
    %1 = vector.load %arg1[%c32, %c0_1] : memref<384x32xbf16, #tpu.memory_space<vmem>>, vector<32x32xbf16>
    %c64 = arith.constant 64 : index
    %c0_2 = arith.constant 0 : index
    %2 = vector.load %arg1[%c64, %c0_2] : memref<384x32xbf16, #tpu.memory_space<vmem>>, vector<32x32xbf16>
    %c96 = arith.constant 96 : index
    %c0_3 = arith.constant 0 : index
    %3 = vector.load %arg1[%c96, %c0_3] : memref<384x32xbf16, #tpu.memory_space<vmem>>, vector<32x32xbf16>
    %c128 = arith.constant 128 : index
    %c0_4 = arith.constant 0 : index
    %4 = vector.load %arg1[%c128, %c0_4] : memref<384x32xbf16, #tpu.memory_space<vmem>>, vector<32x32xbf16>
    %c160 = arith.constant 160 : index
    %c0_5 = arith.constant 0 : index
    %5 = vector.load %arg1[%c160, %c0_5] : memref<384x32xbf16, #tpu.memory_space<vmem>>, vector<32x32xbf16>
    %c192 = arith.constant 192 : index
    %c0_6 = arith.constant 0 : index
    %6 = vector.load %arg1[%c192, %c0_6] : memref<384x32xbf16, #tpu.memory_space<vmem>>, vector<32x32xbf16>
    %c224 = arith.constant 224 : index
    %c0_7 = arith.constant 0 : index
    %7 = vector.load %arg1[%c224, %c0_7] : memref<384x32xbf16, #tpu.memory_space<vmem>>, vector<32x32xbf16>
    %c256 = arith.constant 256 : index
    %c0_8 = arith.constant 0 : index
    %8 = vector.load %arg1[%c256, %c0_8] : memref<384x32xbf16, #tpu.memory_space<vmem>>, vector<32x32xbf16>
    %c288 = arith.constant 288 : index
    %c0_9 = arith.constant 0 : index
    %9 = vector.load %arg1[%c288, %c0_9] : memref<384x32xbf16, #tpu.memory_space<vmem>>, vector<32x32xbf16>
    %c320 = arith.constant 320 : index
    %c0_10 = arith.constant 0 : index
    %10 = vector.load %arg1[%c320, %c0_10] : memref<384x32xbf16, #tpu.memory_space<vmem>>, vector<32x32xbf16>
    %c352 = arith.constant 352 : index
    %c0_11 = arith.constant 0 : index
    %11 = vector.load %arg1[%c352, %c0_11] : memref<384x32xbf16, #tpu.memory_space<vmem>>, vector<32x32xbf16>
    %c0_12 = arith.constant 0 : index
    %c0_13 = arith.constant 0 : index
    %12 = vector.load %arg3[%c0_12, %c0_13] : memref<64x32xf32, #tpu.memory_space<vmem>>, vector<8x32xf32>
    %c8 = arith.constant 8 : index
    %c0_14 = arith.constant 0 : index
    %13 = vector.load %arg3[%c8, %c0_14] : memref<64x32xf32, #tpu.memory_space<vmem>>, vector<8x32xf32>
    %c16 = arith.constant 16 : index
    %c0_15 = arith.constant 0 : index
    %14 = vector.load %arg3[%c16, %c0_15] : memref<64x32xf32, #tpu.memory_space<vmem>>, vector<8x32xf32>
    %c24 = arith.constant 24 : index
    %c0_16 = arith.constant 0 : index
    %15 = vector.load %arg3[%c24, %c0_16] : memref<64x32xf32, #tpu.memory_space<vmem>>, vector<8x32xf32>
    %c32_17 = arith.constant 32 : index
    %c0_18 = arith.constant 0 : index
    %16 = vector.load %arg3[%c32_17, %c0_18] : memref<64x32xf32, #tpu.memory_space<vmem>>, vector<8x32xf32>
    %c40 = arith.constant 40 : index
    %c0_19 = arith.constant 0 : index
    %17 = vector.load %arg3[%c40, %c0_19] : memref<64x32xf32, #tpu.memory_space<vmem>>, vector<8x32xf32>
    %c48 = arith.constant 48 : index
    %c0_20 = arith.constant 0 : index
    %18 = vector.load %arg3[%c48, %c0_20] : memref<64x32xf32, #tpu.memory_space<vmem>>, vector<8x32xf32>
    %c56 = arith.constant 56 : index
    %c0_21 = arith.constant 0 : index
    %19 = vector.load %arg3[%c56, %c0_21] : memref<64x32xf32, #tpu.memory_space<vmem>>, vector<8x32xf32>
    %c0_22 = arith.constant 0 : index
    %c0_23 = arith.constant 0 : index
    %20 = vector.load %arg0[%c0_22, %c0_23] : memref<64x32xbf16, #tpu.memory_space<vmem>>, vector<64x32xbf16>
    %cst = arith.constant dense<0.000000e+00> : vector<64x32xf32>
    %21 = tpu.matmul %20, %0, %cst {dimension_numbers = #tpu.dot_dimension_numbers<[1], [0], [0], [1], [0, 0, 1, 1], [], []>} : vector<64x32xbf16>, vector<32x32xbf16>, vector<64x32xf32> -> vector<64x32xf32>
    %cst_24 = arith.constant dense<0.000000e+00> : vector<64x32xf32>
    %22 = tpu.matmul %20, %1, %cst_24 {dimension_numbers = #tpu.dot_dimension_numbers<[1], [0], [0], [1], [0, 0, 1, 1], [], []>} : vector<64x32xbf16>, vector<32x32xbf16>, vector<64x32xf32> -> vector<64x32xf32>
    %cst_25 = arith.constant dense<0.000000e+00> : vector<64x32xf32>
    %23 = tpu.matmul %20, %2, %cst_25 {dimension_numbers = #tpu.dot_dimension_numbers<[1], [0], [0], [1], [0, 0, 1, 1], [], []>} : vector<64x32xbf16>, vector<32x32xbf16>, vector<64x32xf32> -> vector<64x32xf32>
    %cst_26 = arith.constant 0.000000e+00 : f32
    %24 = vector.broadcast %cst_26 : f32 to vector<8x32xf32>
    %cst_27 = arith.constant 0.000000e+00 : f32
    %25 = vector.broadcast %cst_27 : f32 to vector<8x32xf32>
    %26 = arith.truncf %24 : vector<8x32xf32> to vector<8x32xbf16>
    %27 = arith.truncf %25 : vector<8x32xf32> to vector<8x32xbf16>
    %cst_28 = arith.constant dense<0.000000e+00> : vector<8x32xf32>
    %28 = tpu.matmul %26, %3, %cst_28 {dimension_numbers = #tpu.dot_dimension_numbers<[1], [0], [0], [1], [0, 0, 1, 1], [], []>} : vector<8x32xbf16>, vector<32x32xbf16>, vector<8x32xf32> -> vector<8x32xf32>
    %cst_29 = arith.constant dense<0.000000e+00> : vector<8x32xf32>
    %29 = tpu.matmul %26, %4, %cst_29 {dimension_numbers = #tpu.dot_dimension_numbers<[1], [0], [0], [1], [0, 0, 1, 1], [], []>} : vector<8x32xbf16>, vector<32x32xbf16>, vector<8x32xf32> -> vector<8x32xf32>
    %cst_30 = arith.constant dense<0.000000e+00> : vector<8x32xf32>
    %30 = tpu.matmul %26, %5, %cst_30 {dimension_numbers = #tpu.dot_dimension_numbers<[1], [0], [0], [1], [0, 0, 1, 1], [], []>} : vector<8x32xbf16>, vector<32x32xbf16>, vector<8x32xf32> -> vector<8x32xf32>
    %31 = arith.addf %30, %15 : vector<8x32xf32>
    %cst_31 = arith.constant dense<0.000000e+00> : vector<8x32xf32>
    %32 = tpu.matmul %27, %9, %cst_31 {dimension_numbers = #tpu.dot_dimension_numbers<[1], [0], [0], [1], [0, 0, 1, 1], [], []>} : vector<8x32xbf16>, vector<32x32xbf16>, vector<8x32xf32> -> vector<8x32xf32>
    %cst_32 = arith.constant dense<0.000000e+00> : vector<8x32xf32>
    %33 = tpu.matmul %27, %10, %cst_32 {dimension_numbers = #tpu.dot_dimension_numbers<[1], [0], [0], [1], [0, 0, 1, 1], [], []>} : vector<8x32xbf16>, vector<32x32xbf16>, vector<8x32xf32> -> vector<8x32xf32>
    %cst_33 = arith.constant dense<0.000000e+00> : vector<8x32xf32>
    %34 = tpu.matmul %27, %11, %cst_33 {dimension_numbers = #tpu.dot_dimension_numbers<[1], [0], [0], [1], [0, 0, 1, 1], [], []>} : vector<8x32xbf16>, vector<32x32xbf16>, vector<8x32xf32> -> vector<8x32xf32>
    %35 = arith.addf %34, %19 : vector<8x32xf32>
    %36 = vector.extract_strided_slice %21 {offsets = [0, 0], sizes = [8, 32], strides = [1, 1]} : vector<64x32xf32> to vector<8x32xf32>
    %37 = arith.addf %36, %28 : vector<8x32xf32>
    %38 = arith.addf %37, %12 : vector<8x32xf32>
    %39 = arith.negf %38 : vector<8x32xf32>
    %40 = math.exp %39 : vector<8x32xf32>
    %cst_34 = arith.constant 1.000000e+00 : f32
    %41 = vector.broadcast %cst_34 : f32 to vector<8x32xf32>
    %42 = arith.addf %41, %40 : vector<8x32xf32>
    %43 = arith.divf %41, %42 : vector<8x32xf32>
    %44 = vector.extract_strided_slice %22 {offsets = [0, 0], sizes = [8, 32], strides = [1, 1]} : vector<64x32xf32> to vector<8x32xf32>
    %45 = arith.addf %44, %29 : vector<8x32xf32>
    %46 = arith.addf %45, %13 : vector<8x32xf32>
    %47 = arith.negf %46 : vector<8x32xf32>
    %48 = math.exp %47 : vector<8x32xf32>
    %cst_35 = arith.constant 1.000000e+00 : f32
    %49 = vector.broadcast %cst_35 : f32 to vector<8x32xf32>
    %50 = arith.addf %49, %48 : vector<8x32xf32>
    %51 = arith.divf %49, %50 : vector<8x32xf32>
    %52 = vector.extract_strided_slice %23 {offsets = [0, 0], sizes = [8, 32], strides = [1, 1]} : vector<64x32xf32> to vector<8x32xf32>
    %53 = arith.addf %52, %14 : vector<8x32xf32>
    %54 = arith.mulf %43, %31 : vector<8x32xf32>
    %55 = arith.addf %53, %54 : vector<8x32xf32>
    %56 = math.tanh %55 : vector<8x32xf32>
    %cst_36 = arith.constant 1.000000e+00 : f32
    %57 = vector.broadcast %cst_36 : f32 to vector<8x32xf32>
    %58 = arith.subf %57, %51 : vector<8x32xf32>
    %59 = arith.mulf %58, %56 : vector<8x32xf32>
    %60 = arith.mulf %51, %24 : vector<8x32xf32>
    %61 = arith.addf %59, %60 : vector<8x32xf32>
    %62 = arith.truncf %61 : vector<8x32xf32> to vector<8x32xbf16>
    %cst_37 = arith.constant dense<0.000000e+00> : vector<8x32xf32>
    %63 = tpu.matmul %62, %6, %cst_37 {dimension_numbers = #tpu.dot_dimension_numbers<[1], [0], [0], [1], [0, 0, 1, 1], [], []>} : vector<8x32xbf16>, vector<32x32xbf16>, vector<8x32xf32> -> vector<8x32xf32>
    %cst_38 = arith.constant dense<0.000000e+00> : vector<8x32xf32>
    %64 = tpu.matmul %62, %7, %cst_38 {dimension_numbers = #tpu.dot_dimension_numbers<[1], [0], [0], [1], [0, 0, 1, 1], [], []>} : vector<8x32xbf16>, vector<32x32xbf16>, vector<8x32xf32> -> vector<8x32xf32>
    %cst_39 = arith.constant dense<0.000000e+00> : vector<8x32xf32>
    %65 = tpu.matmul %62, %8, %cst_39 {dimension_numbers = #tpu.dot_dimension_numbers<[1], [0], [0], [1], [0, 0, 1, 1], [], []>} : vector<8x32xbf16>, vector<32x32xbf16>, vector<8x32xf32> -> vector<8x32xf32>
    %66 = arith.addf %63, %32 : vector<8x32xf32>
    %67 = arith.addf %66, %16 : vector<8x32xf32>
    %68 = arith.negf %67 : vector<8x32xf32>
    %69 = math.exp %68 : vector<8x32xf32>
    %cst_40 = arith.constant 1.000000e+00 : f32
    %70 = vector.broadcast %cst_40 : f32 to vector<8x32xf32>
    %71 = arith.addf %70, %69 : vector<8x32xf32>
    %72 = arith.divf %70, %71 : vector<8x32xf32>
    %73 = arith.addf %64, %33 : vector<8x32xf32>
    %74 = arith.addf %73, %17 : vector<8x32xf32>
    %75 = arith.negf %74 : vector<8x32xf32>
    %76 = math.exp %75 : vector<8x32xf32>
    %cst_41 = arith.constant 1.000000e+00 : f32
    %77 = vector.broadcast %cst_41 : f32 to vector<8x32xf32>
    %78 = arith.addf %77, %76 : vector<8x32xf32>
    %79 = arith.divf %77, %78 : vector<8x32xf32>
    %80 = arith.addf %65, %18 : vector<8x32xf32>
    %81 = arith.mulf %72, %35 : vector<8x32xf32>
    %82 = arith.addf %80, %81 : vector<8x32xf32>
    %83 = math.tanh %82 : vector<8x32xf32>
    %cst_42 = arith.constant 1.000000e+00 : f32
    %84 = vector.broadcast %cst_42 : f32 to vector<8x32xf32>
    %85 = arith.subf %84, %79 : vector<8x32xf32>
    %86 = arith.mulf %85, %83 : vector<8x32xf32>
    %87 = arith.mulf %79, %25 : vector<8x32xf32>
    %88 = arith.addf %86, %87 : vector<8x32xf32>
    %89 = arith.truncf %88 : vector<8x32xf32> to vector<8x32xbf16>
    %cst_43 = arith.constant dense<0.000000e+00> : vector<8x32xf32>
    %90 = tpu.matmul %62, %3, %cst_43 {dimension_numbers = #tpu.dot_dimension_numbers<[1], [0], [0], [1], [0, 0, 1, 1], [], []>} : vector<8x32xbf16>, vector<32x32xbf16>, vector<8x32xf32> -> vector<8x32xf32>
    %cst_44 = arith.constant dense<0.000000e+00> : vector<8x32xf32>
    %91 = tpu.matmul %62, %4, %cst_44 {dimension_numbers = #tpu.dot_dimension_numbers<[1], [0], [0], [1], [0, 0, 1, 1], [], []>} : vector<8x32xbf16>, vector<32x32xbf16>, vector<8x32xf32> -> vector<8x32xf32>
    %cst_45 = arith.constant dense<0.000000e+00> : vector<8x32xf32>
    %92 = tpu.matmul %62, %5, %cst_45 {dimension_numbers = #tpu.dot_dimension_numbers<[1], [0], [0], [1], [0, 0, 1, 1], [], []>} : vector<8x32xbf16>, vector<32x32xbf16>, vector<8x32xf32> -> vector<8x32xf32>
    %93 = arith.addf %92, %15 : vector<8x32xf32>
    %cst_46 = arith.constant dense<0.000000e+00> : vector<8x32xf32>
    %94 = tpu.matmul %89, %9, %cst_46 {dimension_numbers = #tpu.dot_dimension_numbers<[1], [0], [0], [1], [0, 0, 1, 1], [], []>} : vector<8x32xbf16>, vector<32x32xbf16>, vector<8x32xf32> -> vector<8x32xf32>
    %cst_47 = arith.constant dense<0.000000e+00> : vector<8x32xf32>
    %95 = tpu.matmul %89, %10, %cst_47 {dimension_numbers = #tpu.dot_dimension_numbers<[1], [0], [0], [1], [0, 0, 1, 1], [], []>} : vector<8x32xbf16>, vector<32x32xbf16>, vector<8x32xf32> -> vector<8x32xf32>
    %cst_48 = arith.constant dense<0.000000e+00> : vector<8x32xf32>
    %96 = tpu.matmul %89, %11, %cst_48 {dimension_numbers = #tpu.dot_dimension_numbers<[1], [0], [0], [1], [0, 0, 1, 1], [], []>} : vector<8x32xbf16>, vector<32x32xbf16>, vector<8x32xf32> -> vector<8x32xf32>
    %97 = arith.addf %96, %19 : vector<8x32xf32>
    %98 = vector.extract_strided_slice %21 {offsets = [8, 0], sizes = [8, 32], strides = [1, 1]} : vector<64x32xf32> to vector<8x32xf32>
    %99 = arith.addf %98, %90 : vector<8x32xf32>
    %100 = arith.addf %99, %12 : vector<8x32xf32>
    %101 = arith.negf %100 : vector<8x32xf32>
    %102 = math.exp %101 : vector<8x32xf32>
    %cst_49 = arith.constant 1.000000e+00 : f32
    %103 = vector.broadcast %cst_49 : f32 to vector<8x32xf32>
    %104 = arith.addf %103, %102 : vector<8x32xf32>
    %105 = arith.divf %103, %104 : vector<8x32xf32>
    %106 = vector.extract_strided_slice %22 {offsets = [8, 0], sizes = [8, 32], strides = [1, 1]} : vector<64x32xf32> to vector<8x32xf32>
    %107 = arith.addf %106, %91 : vector<8x32xf32>
    %108 = arith.addf %107, %13 : vector<8x32xf32>
    %109 = arith.negf %108 : vector<8x32xf32>
    %110 = math.exp %109 : vector<8x32xf32>
    %cst_50 = arith.constant 1.000000e+00 : f32
    %111 = vector.broadcast %cst_50 : f32 to vector<8x32xf32>
    %112 = arith.addf %111, %110 : vector<8x32xf32>
    %113 = arith.divf %111, %112 : vector<8x32xf32>
    %114 = vector.extract_strided_slice %23 {offsets = [8, 0], sizes = [8, 32], strides = [1, 1]} : vector<64x32xf32> to vector<8x32xf32>
    %115 = arith.addf %114, %14 : vector<8x32xf32>
    %116 = arith.mulf %105, %93 : vector<8x32xf32>
    %117 = arith.addf %115, %116 : vector<8x32xf32>
    %118 = math.tanh %117 : vector<8x32xf32>
    %cst_51 = arith.constant 1.000000e+00 : f32
    %119 = vector.broadcast %cst_51 : f32 to vector<8x32xf32>
    %120 = arith.subf %119, %113 : vector<8x32xf32>
    %121 = arith.mulf %120, %118 : vector<8x32xf32>
    %122 = arith.mulf %113, %61 : vector<8x32xf32>
    %123 = arith.addf %121, %122 : vector<8x32xf32>
    %124 = arith.truncf %123 : vector<8x32xf32> to vector<8x32xbf16>
    %cst_52 = arith.constant dense<0.000000e+00> : vector<8x32xf32>
    %125 = tpu.matmul %124, %6, %cst_52 {dimension_numbers = #tpu.dot_dimension_numbers<[1], [0], [0], [1], [0, 0, 1, 1], [], []>} : vector<8x32xbf16>, vector<32x32xbf16>, vector<8x32xf32> -> vector<8x32xf32>
    %cst_53 = arith.constant dense<0.000000e+00> : vector<8x32xf32>
    %126 = tpu.matmul %124, %7, %cst_53 {dimension_numbers = #tpu.dot_dimension_numbers<[1], [0], [0], [1], [0, 0, 1, 1], [], []>} : vector<8x32xbf16>, vector<32x32xbf16>, vector<8x32xf32> -> vector<8x32xf32>
    %cst_54 = arith.constant dense<0.000000e+00> : vector<8x32xf32>
    %127 = tpu.matmul %124, %8, %cst_54 {dimension_numbers = #tpu.dot_dimension_numbers<[1], [0], [0], [1], [0, 0, 1, 1], [], []>} : vector<8x32xbf16>, vector<32x32xbf16>, vector<8x32xf32> -> vector<8x32xf32>
    %128 = arith.addf %125, %94 : vector<8x32xf32>
    %129 = arith.addf %128, %16 : vector<8x32xf32>
    %130 = arith.negf %129 : vector<8x32xf32>
    %131 = math.exp %130 : vector<8x32xf32>
    %cst_55 = arith.constant 1.000000e+00 : f32
    %132 = vector.broadcast %cst_55 : f32 to vector<8x32xf32>
    %133 = arith.addf %132, %131 : vector<8x32xf32>
    %134 = arith.divf %132, %133 : vector<8x32xf32>
    %135 = arith.addf %126, %95 : vector<8x32xf32>
    %136 = arith.addf %135, %17 : vector<8x32xf32>
    %137 = arith.negf %136 : vector<8x32xf32>
    %138 = math.exp %137 : vector<8x32xf32>
    %cst_56 = arith.constant 1.000000e+00 : f32
    %139 = vector.broadcast %cst_56 : f32 to vector<8x32xf32>
    %140 = arith.addf %139, %138 : vector<8x32xf32>
    %141 = arith.divf %139, %140 : vector<8x32xf32>
    %142 = arith.addf %127, %18 : vector<8x32xf32>
    %143 = arith.mulf %134, %97 : vector<8x32xf32>
    %144 = arith.addf %142, %143 : vector<8x32xf32>
    %145 = math.tanh %144 : vector<8x32xf32>
    %cst_57 = arith.constant 1.000000e+00 : f32
    %146 = vector.broadcast %cst_57 : f32 to vector<8x32xf32>
    %147 = arith.subf %146, %141 : vector<8x32xf32>
    %148 = arith.mulf %147, %145 : vector<8x32xf32>
    %149 = arith.mulf %141, %88 : vector<8x32xf32>
    %150 = arith.addf %148, %149 : vector<8x32xf32>
    %151 = arith.truncf %150 : vector<8x32xf32> to vector<8x32xbf16>
    %cst_58 = arith.constant dense<0.000000e+00> : vector<8x32xf32>
    %152 = tpu.matmul %124, %3, %cst_58 {dimension_numbers = #tpu.dot_dimension_numbers<[1], [0], [0], [1], [0, 0, 1, 1], [], []>} : vector<8x32xbf16>, vector<32x32xbf16>, vector<8x32xf32> -> vector<8x32xf32>
    %cst_59 = arith.constant dense<0.000000e+00> : vector<8x32xf32>
    %153 = tpu.matmul %124, %4, %cst_59 {dimension_numbers = #tpu.dot_dimension_numbers<[1], [0], [0], [1], [0, 0, 1, 1], [], []>} : vector<8x32xbf16>, vector<32x32xbf16>, vector<8x32xf32> -> vector<8x32xf32>
    %cst_60 = arith.constant dense<0.000000e+00> : vector<8x32xf32>
    %154 = tpu.matmul %124, %5, %cst_60 {dimension_numbers = #tpu.dot_dimension_numbers<[1], [0], [0], [1], [0, 0, 1, 1], [], []>} : vector<8x32xbf16>, vector<32x32xbf16>, vector<8x32xf32> -> vector<8x32xf32>
    %155 = arith.addf %154, %15 : vector<8x32xf32>
    %cst_61 = arith.constant dense<0.000000e+00> : vector<8x32xf32>
    %156 = tpu.matmul %151, %9, %cst_61 {dimension_numbers = #tpu.dot_dimension_numbers<[1], [0], [0], [1], [0, 0, 1, 1], [], []>} : vector<8x32xbf16>, vector<32x32xbf16>, vector<8x32xf32> -> vector<8x32xf32>
    %cst_62 = arith.constant dense<0.000000e+00> : vector<8x32xf32>
    %157 = tpu.matmul %151, %10, %cst_62 {dimension_numbers = #tpu.dot_dimension_numbers<[1], [0], [0], [1], [0, 0, 1, 1], [], []>} : vector<8x32xbf16>, vector<32x32xbf16>, vector<8x32xf32> -> vector<8x32xf32>
    %cst_63 = arith.constant dense<0.000000e+00> : vector<8x32xf32>
    %158 = tpu.matmul %151, %11, %cst_63 {dimension_numbers = #tpu.dot_dimension_numbers<[1], [0], [0], [1], [0, 0, 1, 1], [], []>} : vector<8x32xbf16>, vector<32x32xbf16>, vector<8x32xf32> -> vector<8x32xf32>
    %159 = arith.addf %158, %19 : vector<8x32xf32>
    %160 = vector.extract_strided_slice %21 {offsets = [16, 0], sizes = [8, 32], strides = [1, 1]} : vector<64x32xf32> to vector<8x32xf32>
    %161 = arith.addf %160, %152 : vector<8x32xf32>
    %162 = arith.addf %161, %12 : vector<8x32xf32>
    %163 = arith.negf %162 : vector<8x32xf32>
    %164 = math.exp %163 : vector<8x32xf32>
    %cst_64 = arith.constant 1.000000e+00 : f32
    %165 = vector.broadcast %cst_64 : f32 to vector<8x32xf32>
    %166 = arith.addf %165, %164 : vector<8x32xf32>
    %167 = arith.divf %165, %166 : vector<8x32xf32>
    %168 = vector.extract_strided_slice %22 {offsets = [16, 0], sizes = [8, 32], strides = [1, 1]} : vector<64x32xf32> to vector<8x32xf32>
    %169 = arith.addf %168, %153 : vector<8x32xf32>
    %170 = arith.addf %169, %13 : vector<8x32xf32>
    %171 = arith.negf %170 : vector<8x32xf32>
    %172 = math.exp %171 : vector<8x32xf32>
    %cst_65 = arith.constant 1.000000e+00 : f32
    %173 = vector.broadcast %cst_65 : f32 to vector<8x32xf32>
    %174 = arith.addf %173, %172 : vector<8x32xf32>
    %175 = arith.divf %173, %174 : vector<8x32xf32>
    %176 = vector.extract_strided_slice %23 {offsets = [16, 0], sizes = [8, 32], strides = [1, 1]} : vector<64x32xf32> to vector<8x32xf32>
    %177 = arith.addf %176, %14 : vector<8x32xf32>
    %178 = arith.mulf %167, %155 : vector<8x32xf32>
    %179 = arith.addf %177, %178 : vector<8x32xf32>
    %180 = math.tanh %179 : vector<8x32xf32>
    %cst_66 = arith.constant 1.000000e+00 : f32
    %181 = vector.broadcast %cst_66 : f32 to vector<8x32xf32>
    %182 = arith.subf %181, %175 : vector<8x32xf32>
    %183 = arith.mulf %182, %180 : vector<8x32xf32>
    %184 = arith.mulf %175, %123 : vector<8x32xf32>
    %185 = arith.addf %183, %184 : vector<8x32xf32>
    %186 = arith.truncf %185 : vector<8x32xf32> to vector<8x32xbf16>
    %cst_67 = arith.constant dense<0.000000e+00> : vector<8x32xf32>
    %187 = tpu.matmul %186, %6, %cst_67 {dimension_numbers = #tpu.dot_dimension_numbers<[1], [0], [0], [1], [0, 0, 1, 1], [], []>} : vector<8x32xbf16>, vector<32x32xbf16>, vector<8x32xf32> -> vector<8x32xf32>
    %cst_68 = arith.constant dense<0.000000e+00> : vector<8x32xf32>
    %188 = tpu.matmul %186, %7, %cst_68 {dimension_numbers = #tpu.dot_dimension_numbers<[1], [0], [0], [1], [0, 0, 1, 1], [], []>} : vector<8x32xbf16>, vector<32x32xbf16>, vector<8x32xf32> -> vector<8x32xf32>
    %cst_69 = arith.constant dense<0.000000e+00> : vector<8x32xf32>
    %189 = tpu.matmul %186, %8, %cst_69 {dimension_numbers = #tpu.dot_dimension_numbers<[1], [0], [0], [1], [0, 0, 1, 1], [], []>} : vector<8x32xbf16>, vector<32x32xbf16>, vector<8x32xf32> -> vector<8x32xf32>
    %190 = arith.addf %187, %156 : vector<8x32xf32>
    %191 = arith.addf %190, %16 : vector<8x32xf32>
    %192 = arith.negf %191 : vector<8x32xf32>
    %193 = math.exp %192 : vector<8x32xf32>
    %cst_70 = arith.constant 1.000000e+00 : f32
    %194 = vector.broadcast %cst_70 : f32 to vector<8x32xf32>
    %195 = arith.addf %194, %193 : vector<8x32xf32>
    %196 = arith.divf %194, %195 : vector<8x32xf32>
    %197 = arith.addf %188, %157 : vector<8x32xf32>
    %198 = arith.addf %197, %17 : vector<8x32xf32>
    %199 = arith.negf %198 : vector<8x32xf32>
    %200 = math.exp %199 : vector<8x32xf32>
    %cst_71 = arith.constant 1.000000e+00 : f32
    %201 = vector.broadcast %cst_71 : f32 to vector<8x32xf32>
    %202 = arith.addf %201, %200 : vector<8x32xf32>
    %203 = arith.divf %201, %202 : vector<8x32xf32>
    %204 = arith.addf %189, %18 : vector<8x32xf32>
    %205 = arith.mulf %196, %159 : vector<8x32xf32>
    %206 = arith.addf %204, %205 : vector<8x32xf32>
    %207 = math.tanh %206 : vector<8x32xf32>
    %cst_72 = arith.constant 1.000000e+00 : f32
    %208 = vector.broadcast %cst_72 : f32 to vector<8x32xf32>
    %209 = arith.subf %208, %203 : vector<8x32xf32>
    %210 = arith.mulf %209, %207 : vector<8x32xf32>
    %211 = arith.mulf %203, %150 : vector<8x32xf32>
    %212 = arith.addf %210, %211 : vector<8x32xf32>
    %213 = arith.truncf %212 : vector<8x32xf32> to vector<8x32xbf16>
    %cst_73 = arith.constant dense<0.000000e+00> : vector<8x32xf32>
    %214 = tpu.matmul %186, %3, %cst_73 {dimension_numbers = #tpu.dot_dimension_numbers<[1], [0], [0], [1], [0, 0, 1, 1], [], []>} : vector<8x32xbf16>, vector<32x32xbf16>, vector<8x32xf32> -> vector<8x32xf32>
    %cst_74 = arith.constant dense<0.000000e+00> : vector<8x32xf32>
    %215 = tpu.matmul %186, %4, %cst_74 {dimension_numbers = #tpu.dot_dimension_numbers<[1], [0], [0], [1], [0, 0, 1, 1], [], []>} : vector<8x32xbf16>, vector<32x32xbf16>, vector<8x32xf32> -> vector<8x32xf32>
    %cst_75 = arith.constant dense<0.000000e+00> : vector<8x32xf32>
    %216 = tpu.matmul %186, %5, %cst_75 {dimension_numbers = #tpu.dot_dimension_numbers<[1], [0], [0], [1], [0, 0, 1, 1], [], []>} : vector<8x32xbf16>, vector<32x32xbf16>, vector<8x32xf32> -> vector<8x32xf32>
    %217 = arith.addf %216, %15 : vector<8x32xf32>
    %cst_76 = arith.constant dense<0.000000e+00> : vector<8x32xf32>
    %218 = tpu.matmul %213, %9, %cst_76 {dimension_numbers = #tpu.dot_dimension_numbers<[1], [0], [0], [1], [0, 0, 1, 1], [], []>} : vector<8x32xbf16>, vector<32x32xbf16>, vector<8x32xf32> -> vector<8x32xf32>
    %cst_77 = arith.constant dense<0.000000e+00> : vector<8x32xf32>
    %219 = tpu.matmul %213, %10, %cst_77 {dimension_numbers = #tpu.dot_dimension_numbers<[1], [0], [0], [1], [0, 0, 1, 1], [], []>} : vector<8x32xbf16>, vector<32x32xbf16>, vector<8x32xf32> -> vector<8x32xf32>
    %cst_78 = arith.constant dense<0.000000e+00> : vector<8x32xf32>
    %220 = tpu.matmul %213, %11, %cst_78 {dimension_numbers = #tpu.dot_dimension_numbers<[1], [0], [0], [1], [0, 0, 1, 1], [], []>} : vector<8x32xbf16>, vector<32x32xbf16>, vector<8x32xf32> -> vector<8x32xf32>
    %221 = arith.addf %220, %19 : vector<8x32xf32>
    %222 = vector.extract_strided_slice %21 {offsets = [24, 0], sizes = [8, 32], strides = [1, 1]} : vector<64x32xf32> to vector<8x32xf32>
    %223 = arith.addf %222, %214 : vector<8x32xf32>
    %224 = arith.addf %223, %12 : vector<8x32xf32>
    %225 = arith.negf %224 : vector<8x32xf32>
    %226 = math.exp %225 : vector<8x32xf32>
    %cst_79 = arith.constant 1.000000e+00 : f32
    %227 = vector.broadcast %cst_79 : f32 to vector<8x32xf32>
    %228 = arith.addf %227, %226 : vector<8x32xf32>
    %229 = arith.divf %227, %228 : vector<8x32xf32>
    %230 = vector.extract_strided_slice %22 {offsets = [24, 0], sizes = [8, 32], strides = [1, 1]} : vector<64x32xf32> to vector<8x32xf32>
    %231 = arith.addf %230, %215 : vector<8x32xf32>
    %232 = arith.addf %231, %13 : vector<8x32xf32>
    %233 = arith.negf %232 : vector<8x32xf32>
    %234 = math.exp %233 : vector<8x32xf32>
    %cst_80 = arith.constant 1.000000e+00 : f32
    %235 = vector.broadcast %cst_80 : f32 to vector<8x32xf32>
    %236 = arith.addf %235, %234 : vector<8x32xf32>
    %237 = arith.divf %235, %236 : vector<8x32xf32>
    %238 = vector.extract_strided_slice %23 {offsets = [24, 0], sizes = [8, 32], strides = [1, 1]} : vector<64x32xf32> to vector<8x32xf32>
    %239 = arith.addf %238, %14 : vector<8x32xf32>
    %240 = arith.mulf %229, %217 : vector<8x32xf32>
    %241 = arith.addf %239, %240 : vector<8x32xf32>
    %242 = math.tanh %241 : vector<8x32xf32>
    %cst_81 = arith.constant 1.000000e+00 : f32
    %243 = vector.broadcast %cst_81 : f32 to vector<8x32xf32>
    %244 = arith.subf %243, %237 : vector<8x32xf32>
    %245 = arith.mulf %244, %242 : vector<8x32xf32>
    %246 = arith.mulf %237, %185 : vector<8x32xf32>
    %247 = arith.addf %245, %246 : vector<8x32xf32>
    %248 = arith.truncf %247 : vector<8x32xf32> to vector<8x32xbf16>
    %cst_82 = arith.constant dense<0.000000e+00> : vector<8x32xf32>
    %249 = tpu.matmul %248, %6, %cst_82 {dimension_numbers = #tpu.dot_dimension_numbers<[1], [0], [0], [1], [0, 0, 1, 1], [], []>} : vector<8x32xbf16>, vector<32x32xbf16>, vector<8x32xf32> -> vector<8x32xf32>
    %cst_83 = arith.constant dense<0.000000e+00> : vector<8x32xf32>
    %250 = tpu.matmul %248, %7, %cst_83 {dimension_numbers = #tpu.dot_dimension_numbers<[1], [0], [0], [1], [0, 0, 1, 1], [], []>} : vector<8x32xbf16>, vector<32x32xbf16>, vector<8x32xf32> -> vector<8x32xf32>
    %cst_84 = arith.constant dense<0.000000e+00> : vector<8x32xf32>
    %251 = tpu.matmul %248, %8, %cst_84 {dimension_numbers = #tpu.dot_dimension_numbers<[1], [0], [0], [1], [0, 0, 1, 1], [], []>} : vector<8x32xbf16>, vector<32x32xbf16>, vector<8x32xf32> -> vector<8x32xf32>
    %252 = arith.addf %249, %218 : vector<8x32xf32>
    %253 = arith.addf %252, %16 : vector<8x32xf32>
    %254 = arith.negf %253 : vector<8x32xf32>
    %255 = math.exp %254 : vector<8x32xf32>
    %cst_85 = arith.constant 1.000000e+00 : f32
    %256 = vector.broadcast %cst_85 : f32 to vector<8x32xf32>
    %257 = arith.addf %256, %255 : vector<8x32xf32>
    %258 = arith.divf %256, %257 : vector<8x32xf32>
    %259 = arith.addf %250, %219 : vector<8x32xf32>
    %260 = arith.addf %259, %17 : vector<8x32xf32>
    %261 = arith.negf %260 : vector<8x32xf32>
    %262 = math.exp %261 : vector<8x32xf32>
    %cst_86 = arith.constant 1.000000e+00 : f32
    %263 = vector.broadcast %cst_86 : f32 to vector<8x32xf32>
    %264 = arith.addf %263, %262 : vector<8x32xf32>
    %265 = arith.divf %263, %264 : vector<8x32xf32>
    %266 = arith.addf %251, %18 : vector<8x32xf32>
    %267 = arith.mulf %258, %221 : vector<8x32xf32>
    %268 = arith.addf %266, %267 : vector<8x32xf32>
    %269 = math.tanh %268 : vector<8x32xf32>
    %cst_87 = arith.constant 1.000000e+00 : f32
    %270 = vector.broadcast %cst_87 : f32 to vector<8x32xf32>
    %271 = arith.subf %270, %265 : vector<8x32xf32>
    %272 = arith.mulf %271, %269 : vector<8x32xf32>
    %273 = arith.mulf %265, %212 : vector<8x32xf32>
    %274 = arith.addf %272, %273 : vector<8x32xf32>
    %275 = arith.truncf %274 : vector<8x32xf32> to vector<8x32xbf16>
    %cst_88 = arith.constant dense<0.000000e+00> : vector<8x32xf32>
    %276 = tpu.matmul %248, %3, %cst_88 {dimension_numbers = #tpu.dot_dimension_numbers<[1], [0], [0], [1], [0, 0, 1, 1], [], []>} : vector<8x32xbf16>, vector<32x32xbf16>, vector<8x32xf32> -> vector<8x32xf32>
    %cst_89 = arith.constant dense<0.000000e+00> : vector<8x32xf32>
    %277 = tpu.matmul %248, %4, %cst_89 {dimension_numbers = #tpu.dot_dimension_numbers<[1], [0], [0], [1], [0, 0, 1, 1], [], []>} : vector<8x32xbf16>, vector<32x32xbf16>, vector<8x32xf32> -> vector<8x32xf32>
    %cst_90 = arith.constant dense<0.000000e+00> : vector<8x32xf32>
    %278 = tpu.matmul %248, %5, %cst_90 {dimension_numbers = #tpu.dot_dimension_numbers<[1], [0], [0], [1], [0, 0, 1, 1], [], []>} : vector<8x32xbf16>, vector<32x32xbf16>, vector<8x32xf32> -> vector<8x32xf32>
    %279 = arith.addf %278, %15 : vector<8x32xf32>
    %cst_91 = arith.constant dense<0.000000e+00> : vector<8x32xf32>
    %280 = tpu.matmul %275, %9, %cst_91 {dimension_numbers = #tpu.dot_dimension_numbers<[1], [0], [0], [1], [0, 0, 1, 1], [], []>} : vector<8x32xbf16>, vector<32x32xbf16>, vector<8x32xf32> -> vector<8x32xf32>
    %cst_92 = arith.constant dense<0.000000e+00> : vector<8x32xf32>
    %281 = tpu.matmul %275, %10, %cst_92 {dimension_numbers = #tpu.dot_dimension_numbers<[1], [0], [0], [1], [0, 0, 1, 1], [], []>} : vector<8x32xbf16>, vector<32x32xbf16>, vector<8x32xf32> -> vector<8x32xf32>
    %cst_93 = arith.constant dense<0.000000e+00> : vector<8x32xf32>
    %282 = tpu.matmul %275, %11, %cst_93 {dimension_numbers = #tpu.dot_dimension_numbers<[1], [0], [0], [1], [0, 0, 1, 1], [], []>} : vector<8x32xbf16>, vector<32x32xbf16>, vector<8x32xf32> -> vector<8x32xf32>
    %283 = arith.addf %282, %19 : vector<8x32xf32>
    %284 = vector.extract_strided_slice %21 {offsets = [32, 0], sizes = [8, 32], strides = [1, 1]} : vector<64x32xf32> to vector<8x32xf32>
    %285 = arith.addf %284, %276 : vector<8x32xf32>
    %286 = arith.addf %285, %12 : vector<8x32xf32>
    %287 = arith.negf %286 : vector<8x32xf32>
    %288 = math.exp %287 : vector<8x32xf32>
    %cst_94 = arith.constant 1.000000e+00 : f32
    %289 = vector.broadcast %cst_94 : f32 to vector<8x32xf32>
    %290 = arith.addf %289, %288 : vector<8x32xf32>
    %291 = arith.divf %289, %290 : vector<8x32xf32>
    %292 = vector.extract_strided_slice %22 {offsets = [32, 0], sizes = [8, 32], strides = [1, 1]} : vector<64x32xf32> to vector<8x32xf32>
    %293 = arith.addf %292, %277 : vector<8x32xf32>
    %294 = arith.addf %293, %13 : vector<8x32xf32>
    %295 = arith.negf %294 : vector<8x32xf32>
    %296 = math.exp %295 : vector<8x32xf32>
    %cst_95 = arith.constant 1.000000e+00 : f32
    %297 = vector.broadcast %cst_95 : f32 to vector<8x32xf32>
    %298 = arith.addf %297, %296 : vector<8x32xf32>
    %299 = arith.divf %297, %298 : vector<8x32xf32>
    %300 = vector.extract_strided_slice %23 {offsets = [32, 0], sizes = [8, 32], strides = [1, 1]} : vector<64x32xf32> to vector<8x32xf32>
    %301 = arith.addf %300, %14 : vector<8x32xf32>
    %302 = arith.mulf %291, %279 : vector<8x32xf32>
    %303 = arith.addf %301, %302 : vector<8x32xf32>
    %304 = math.tanh %303 : vector<8x32xf32>
    %cst_96 = arith.constant 1.000000e+00 : f32
    %305 = vector.broadcast %cst_96 : f32 to vector<8x32xf32>
    %306 = arith.subf %305, %299 : vector<8x32xf32>
    %307 = arith.mulf %306, %304 : vector<8x32xf32>
    %308 = arith.mulf %299, %247 : vector<8x32xf32>
    %309 = arith.addf %307, %308 : vector<8x32xf32>
    %310 = arith.truncf %309 : vector<8x32xf32> to vector<8x32xbf16>
    %cst_97 = arith.constant dense<0.000000e+00> : vector<8x32xf32>
    %311 = tpu.matmul %310, %6, %cst_97 {dimension_numbers = #tpu.dot_dimension_numbers<[1], [0], [0], [1], [0, 0, 1, 1], [], []>} : vector<8x32xbf16>, vector<32x32xbf16>, vector<8x32xf32> -> vector<8x32xf32>
    %cst_98 = arith.constant dense<0.000000e+00> : vector<8x32xf32>
    %312 = tpu.matmul %310, %7, %cst_98 {dimension_numbers = #tpu.dot_dimension_numbers<[1], [0], [0], [1], [0, 0, 1, 1], [], []>} : vector<8x32xbf16>, vector<32x32xbf16>, vector<8x32xf32> -> vector<8x32xf32>
    %cst_99 = arith.constant dense<0.000000e+00> : vector<8x32xf32>
    %313 = tpu.matmul %310, %8, %cst_99 {dimension_numbers = #tpu.dot_dimension_numbers<[1], [0], [0], [1], [0, 0, 1, 1], [], []>} : vector<8x32xbf16>, vector<32x32xbf16>, vector<8x32xf32> -> vector<8x32xf32>
    %314 = arith.addf %311, %280 : vector<8x32xf32>
    %315 = arith.addf %314, %16 : vector<8x32xf32>
    %316 = arith.negf %315 : vector<8x32xf32>
    %317 = math.exp %316 : vector<8x32xf32>
    %cst_100 = arith.constant 1.000000e+00 : f32
    %318 = vector.broadcast %cst_100 : f32 to vector<8x32xf32>
    %319 = arith.addf %318, %317 : vector<8x32xf32>
    %320 = arith.divf %318, %319 : vector<8x32xf32>
    %321 = arith.addf %312, %281 : vector<8x32xf32>
    %322 = arith.addf %321, %17 : vector<8x32xf32>
    %323 = arith.negf %322 : vector<8x32xf32>
    %324 = math.exp %323 : vector<8x32xf32>
    %cst_101 = arith.constant 1.000000e+00 : f32
    %325 = vector.broadcast %cst_101 : f32 to vector<8x32xf32>
    %326 = arith.addf %325, %324 : vector<8x32xf32>
    %327 = arith.divf %325, %326 : vector<8x32xf32>
    %328 = arith.addf %313, %18 : vector<8x32xf32>
    %329 = arith.mulf %320, %283 : vector<8x32xf32>
    %330 = arith.addf %328, %329 : vector<8x32xf32>
    %331 = math.tanh %330 : vector<8x32xf32>
    %cst_102 = arith.constant 1.000000e+00 : f32
    %332 = vector.broadcast %cst_102 : f32 to vector<8x32xf32>
    %333 = arith.subf %332, %327 : vector<8x32xf32>
    %334 = arith.mulf %333, %331 : vector<8x32xf32>
    %335 = arith.mulf %327, %274 : vector<8x32xf32>
    %336 = arith.addf %334, %335 : vector<8x32xf32>
    %337 = arith.truncf %336 : vector<8x32xf32> to vector<8x32xbf16>
    %cst_103 = arith.constant dense<0.000000e+00> : vector<8x32xf32>
    %338 = tpu.matmul %310, %3, %cst_103 {dimension_numbers = #tpu.dot_dimension_numbers<[1], [0], [0], [1], [0, 0, 1, 1], [], []>} : vector<8x32xbf16>, vector<32x32xbf16>, vector<8x32xf32> -> vector<8x32xf32>
    %cst_104 = arith.constant dense<0.000000e+00> : vector<8x32xf32>
    %339 = tpu.matmul %310, %4, %cst_104 {dimension_numbers = #tpu.dot_dimension_numbers<[1], [0], [0], [1], [0, 0, 1, 1], [], []>} : vector<8x32xbf16>, vector<32x32xbf16>, vector<8x32xf32> -> vector<8x32xf32>
    %cst_105 = arith.constant dense<0.000000e+00> : vector<8x32xf32>
    %340 = tpu.matmul %310, %5, %cst_105 {dimension_numbers = #tpu.dot_dimension_numbers<[1], [0], [0], [1], [0, 0, 1, 1], [], []>} : vector<8x32xbf16>, vector<32x32xbf16>, vector<8x32xf32> -> vector<8x32xf32>
    %341 = arith.addf %340, %15 : vector<8x32xf32>
    %cst_106 = arith.constant dense<0.000000e+00> : vector<8x32xf32>
    %342 = tpu.matmul %337, %9, %cst_106 {dimension_numbers = #tpu.dot_dimension_numbers<[1], [0], [0], [1], [0, 0, 1, 1], [], []>} : vector<8x32xbf16>, vector<32x32xbf16>, vector<8x32xf32> -> vector<8x32xf32>
    %cst_107 = arith.constant dense<0.000000e+00> : vector<8x32xf32>
    %343 = tpu.matmul %337, %10, %cst_107 {dimension_numbers = #tpu.dot_dimension_numbers<[1], [0], [0], [1], [0, 0, 1, 1], [], []>} : vector<8x32xbf16>, vector<32x32xbf16>, vector<8x32xf32> -> vector<8x32xf32>
    %cst_108 = arith.constant dense<0.000000e+00> : vector<8x32xf32>
    %344 = tpu.matmul %337, %11, %cst_108 {dimension_numbers = #tpu.dot_dimension_numbers<[1], [0], [0], [1], [0, 0, 1, 1], [], []>} : vector<8x32xbf16>, vector<32x32xbf16>, vector<8x32xf32> -> vector<8x32xf32>
    %345 = arith.addf %344, %19 : vector<8x32xf32>
    %346 = vector.extract_strided_slice %21 {offsets = [40, 0], sizes = [8, 32], strides = [1, 1]} : vector<64x32xf32> to vector<8x32xf32>
    %347 = arith.addf %346, %338 : vector<8x32xf32>
    %348 = arith.addf %347, %12 : vector<8x32xf32>
    %349 = arith.negf %348 : vector<8x32xf32>
    %350 = math.exp %349 : vector<8x32xf32>
    %cst_109 = arith.constant 1.000000e+00 : f32
    %351 = vector.broadcast %cst_109 : f32 to vector<8x32xf32>
    %352 = arith.addf %351, %350 : vector<8x32xf32>
    %353 = arith.divf %351, %352 : vector<8x32xf32>
    %354 = vector.extract_strided_slice %22 {offsets = [40, 0], sizes = [8, 32], strides = [1, 1]} : vector<64x32xf32> to vector<8x32xf32>
    %355 = arith.addf %354, %339 : vector<8x32xf32>
    %356 = arith.addf %355, %13 : vector<8x32xf32>
    %357 = arith.negf %356 : vector<8x32xf32>
    %358 = math.exp %357 : vector<8x32xf32>
    %cst_110 = arith.constant 1.000000e+00 : f32
    %359 = vector.broadcast %cst_110 : f32 to vector<8x32xf32>
    %360 = arith.addf %359, %358 : vector<8x32xf32>
    %361 = arith.divf %359, %360 : vector<8x32xf32>
    %362 = vector.extract_strided_slice %23 {offsets = [40, 0], sizes = [8, 32], strides = [1, 1]} : vector<64x32xf32> to vector<8x32xf32>
    %363 = arith.addf %362, %14 : vector<8x32xf32>
    %364 = arith.mulf %353, %341 : vector<8x32xf32>
    %365 = arith.addf %363, %364 : vector<8x32xf32>
    %366 = math.tanh %365 : vector<8x32xf32>
    %cst_111 = arith.constant 1.000000e+00 : f32
    %367 = vector.broadcast %cst_111 : f32 to vector<8x32xf32>
    %368 = arith.subf %367, %361 : vector<8x32xf32>
    %369 = arith.mulf %368, %366 : vector<8x32xf32>
    %370 = arith.mulf %361, %309 : vector<8x32xf32>
    %371 = arith.addf %369, %370 : vector<8x32xf32>
    %372 = arith.truncf %371 : vector<8x32xf32> to vector<8x32xbf16>
    %cst_112 = arith.constant dense<0.000000e+00> : vector<8x32xf32>
    %373 = tpu.matmul %372, %6, %cst_112 {dimension_numbers = #tpu.dot_dimension_numbers<[1], [0], [0], [1], [0, 0, 1, 1], [], []>} : vector<8x32xbf16>, vector<32x32xbf16>, vector<8x32xf32> -> vector<8x32xf32>
    %cst_113 = arith.constant dense<0.000000e+00> : vector<8x32xf32>
    %374 = tpu.matmul %372, %7, %cst_113 {dimension_numbers = #tpu.dot_dimension_numbers<[1], [0], [0], [1], [0, 0, 1, 1], [], []>} : vector<8x32xbf16>, vector<32x32xbf16>, vector<8x32xf32> -> vector<8x32xf32>
    %cst_114 = arith.constant dense<0.000000e+00> : vector<8x32xf32>
    %375 = tpu.matmul %372, %8, %cst_114 {dimension_numbers = #tpu.dot_dimension_numbers<[1], [0], [0], [1], [0, 0, 1, 1], [], []>} : vector<8x32xbf16>, vector<32x32xbf16>, vector<8x32xf32> -> vector<8x32xf32>
    %376 = arith.addf %373, %342 : vector<8x32xf32>
    %377 = arith.addf %376, %16 : vector<8x32xf32>
    %378 = arith.negf %377 : vector<8x32xf32>
    %379 = math.exp %378 : vector<8x32xf32>
    %cst_115 = arith.constant 1.000000e+00 : f32
    %380 = vector.broadcast %cst_115 : f32 to vector<8x32xf32>
    %381 = arith.addf %380, %379 : vector<8x32xf32>
    %382 = arith.divf %380, %381 : vector<8x32xf32>
    %383 = arith.addf %374, %343 : vector<8x32xf32>
    %384 = arith.addf %383, %17 : vector<8x32xf32>
    %385 = arith.negf %384 : vector<8x32xf32>
    %386 = math.exp %385 : vector<8x32xf32>
    %cst_116 = arith.constant 1.000000e+00 : f32
    %387 = vector.broadcast %cst_116 : f32 to vector<8x32xf32>
    %388 = arith.addf %387, %386 : vector<8x32xf32>
    %389 = arith.divf %387, %388 : vector<8x32xf32>
    %390 = arith.addf %375, %18 : vector<8x32xf32>
    %391 = arith.mulf %382, %345 : vector<8x32xf32>
    %392 = arith.addf %390, %391 : vector<8x32xf32>
    %393 = math.tanh %392 : vector<8x32xf32>
    %cst_117 = arith.constant 1.000000e+00 : f32
    %394 = vector.broadcast %cst_117 : f32 to vector<8x32xf32>
    %395 = arith.subf %394, %389 : vector<8x32xf32>
    %396 = arith.mulf %395, %393 : vector<8x32xf32>
    %397 = arith.mulf %389, %336 : vector<8x32xf32>
    %398 = arith.addf %396, %397 : vector<8x32xf32>
    %399 = arith.truncf %398 : vector<8x32xf32> to vector<8x32xbf16>
    %cst_118 = arith.constant dense<0.000000e+00> : vector<8x32xf32>
    %400 = tpu.matmul %372, %3, %cst_118 {dimension_numbers = #tpu.dot_dimension_numbers<[1], [0], [0], [1], [0, 0, 1, 1], [], []>} : vector<8x32xbf16>, vector<32x32xbf16>, vector<8x32xf32> -> vector<8x32xf32>
    %cst_119 = arith.constant dense<0.000000e+00> : vector<8x32xf32>
    %401 = tpu.matmul %372, %4, %cst_119 {dimension_numbers = #tpu.dot_dimension_numbers<[1], [0], [0], [1], [0, 0, 1, 1], [], []>} : vector<8x32xbf16>, vector<32x32xbf16>, vector<8x32xf32> -> vector<8x32xf32>
    %cst_120 = arith.constant dense<0.000000e+00> : vector<8x32xf32>
    %402 = tpu.matmul %372, %5, %cst_120 {dimension_numbers = #tpu.dot_dimension_numbers<[1], [0], [0], [1], [0, 0, 1, 1], [], []>} : vector<8x32xbf16>, vector<32x32xbf16>, vector<8x32xf32> -> vector<8x32xf32>
    %403 = arith.addf %402, %15 : vector<8x32xf32>
    %cst_121 = arith.constant dense<0.000000e+00> : vector<8x32xf32>
    %404 = tpu.matmul %399, %9, %cst_121 {dimension_numbers = #tpu.dot_dimension_numbers<[1], [0], [0], [1], [0, 0, 1, 1], [], []>} : vector<8x32xbf16>, vector<32x32xbf16>, vector<8x32xf32> -> vector<8x32xf32>
    %cst_122 = arith.constant dense<0.000000e+00> : vector<8x32xf32>
    %405 = tpu.matmul %399, %10, %cst_122 {dimension_numbers = #tpu.dot_dimension_numbers<[1], [0], [0], [1], [0, 0, 1, 1], [], []>} : vector<8x32xbf16>, vector<32x32xbf16>, vector<8x32xf32> -> vector<8x32xf32>
    %cst_123 = arith.constant dense<0.000000e+00> : vector<8x32xf32>
    %406 = tpu.matmul %399, %11, %cst_123 {dimension_numbers = #tpu.dot_dimension_numbers<[1], [0], [0], [1], [0, 0, 1, 1], [], []>} : vector<8x32xbf16>, vector<32x32xbf16>, vector<8x32xf32> -> vector<8x32xf32>
    %407 = arith.addf %406, %19 : vector<8x32xf32>
    %408 = vector.extract_strided_slice %21 {offsets = [48, 0], sizes = [8, 32], strides = [1, 1]} : vector<64x32xf32> to vector<8x32xf32>
    %409 = arith.addf %408, %400 : vector<8x32xf32>
    %410 = arith.addf %409, %12 : vector<8x32xf32>
    %411 = arith.negf %410 : vector<8x32xf32>
    %412 = math.exp %411 : vector<8x32xf32>
    %cst_124 = arith.constant 1.000000e+00 : f32
    %413 = vector.broadcast %cst_124 : f32 to vector<8x32xf32>
    %414 = arith.addf %413, %412 : vector<8x32xf32>
    %415 = arith.divf %413, %414 : vector<8x32xf32>
    %416 = vector.extract_strided_slice %22 {offsets = [48, 0], sizes = [8, 32], strides = [1, 1]} : vector<64x32xf32> to vector<8x32xf32>
    %417 = arith.addf %416, %401 : vector<8x32xf32>
    %418 = arith.addf %417, %13 : vector<8x32xf32>
    %419 = arith.negf %418 : vector<8x32xf32>
    %420 = math.exp %419 : vector<8x32xf32>
    %cst_125 = arith.constant 1.000000e+00 : f32
    %421 = vector.broadcast %cst_125 : f32 to vector<8x32xf32>
    %422 = arith.addf %421, %420 : vector<8x32xf32>
    %423 = arith.divf %421, %422 : vector<8x32xf32>
    %424 = vector.extract_strided_slice %23 {offsets = [48, 0], sizes = [8, 32], strides = [1, 1]} : vector<64x32xf32> to vector<8x32xf32>
    %425 = arith.addf %424, %14 : vector<8x32xf32>
    %426 = arith.mulf %415, %403 : vector<8x32xf32>
    %427 = arith.addf %425, %426 : vector<8x32xf32>
    %428 = math.tanh %427 : vector<8x32xf32>
    %cst_126 = arith.constant 1.000000e+00 : f32
    %429 = vector.broadcast %cst_126 : f32 to vector<8x32xf32>
    %430 = arith.subf %429, %423 : vector<8x32xf32>
    %431 = arith.mulf %430, %428 : vector<8x32xf32>
    %432 = arith.mulf %423, %371 : vector<8x32xf32>
    %433 = arith.addf %431, %432 : vector<8x32xf32>
    %434 = arith.truncf %433 : vector<8x32xf32> to vector<8x32xbf16>
    %cst_127 = arith.constant dense<0.000000e+00> : vector<8x32xf32>
    %435 = tpu.matmul %434, %6, %cst_127 {dimension_numbers = #tpu.dot_dimension_numbers<[1], [0], [0], [1], [0, 0, 1, 1], [], []>} : vector<8x32xbf16>, vector<32x32xbf16>, vector<8x32xf32> -> vector<8x32xf32>
    %cst_128 = arith.constant dense<0.000000e+00> : vector<8x32xf32>
    %436 = tpu.matmul %434, %7, %cst_128 {dimension_numbers = #tpu.dot_dimension_numbers<[1], [0], [0], [1], [0, 0, 1, 1], [], []>} : vector<8x32xbf16>, vector<32x32xbf16>, vector<8x32xf32> -> vector<8x32xf32>
    %cst_129 = arith.constant dense<0.000000e+00> : vector<8x32xf32>
    %437 = tpu.matmul %434, %8, %cst_129 {dimension_numbers = #tpu.dot_dimension_numbers<[1], [0], [0], [1], [0, 0, 1, 1], [], []>} : vector<8x32xbf16>, vector<32x32xbf16>, vector<8x32xf32> -> vector<8x32xf32>
    %438 = arith.addf %435, %404 : vector<8x32xf32>
    %439 = arith.addf %438, %16 : vector<8x32xf32>
    %440 = arith.negf %439 : vector<8x32xf32>
    %441 = math.exp %440 : vector<8x32xf32>
    %cst_130 = arith.constant 1.000000e+00 : f32
    %442 = vector.broadcast %cst_130 : f32 to vector<8x32xf32>
    %443 = arith.addf %442, %441 : vector<8x32xf32>
    %444 = arith.divf %442, %443 : vector<8x32xf32>
    %445 = arith.addf %436, %405 : vector<8x32xf32>
    %446 = arith.addf %445, %17 : vector<8x32xf32>
    %447 = arith.negf %446 : vector<8x32xf32>
    %448 = math.exp %447 : vector<8x32xf32>
    %cst_131 = arith.constant 1.000000e+00 : f32
    %449 = vector.broadcast %cst_131 : f32 to vector<8x32xf32>
    %450 = arith.addf %449, %448 : vector<8x32xf32>
    %451 = arith.divf %449, %450 : vector<8x32xf32>
    %452 = arith.addf %437, %18 : vector<8x32xf32>
    %453 = arith.mulf %444, %407 : vector<8x32xf32>
    %454 = arith.addf %452, %453 : vector<8x32xf32>
    %455 = math.tanh %454 : vector<8x32xf32>
    %cst_132 = arith.constant 1.000000e+00 : f32
    %456 = vector.broadcast %cst_132 : f32 to vector<8x32xf32>
    %457 = arith.subf %456, %451 : vector<8x32xf32>
    %458 = arith.mulf %457, %455 : vector<8x32xf32>
    %459 = arith.mulf %451, %398 : vector<8x32xf32>
    %460 = arith.addf %458, %459 : vector<8x32xf32>
    %461 = arith.truncf %460 : vector<8x32xf32> to vector<8x32xbf16>
    %cst_133 = arith.constant dense<0.000000e+00> : vector<8x32xf32>
    %462 = tpu.matmul %434, %3, %cst_133 {dimension_numbers = #tpu.dot_dimension_numbers<[1], [0], [0], [1], [0, 0, 1, 1], [], []>} : vector<8x32xbf16>, vector<32x32xbf16>, vector<8x32xf32> -> vector<8x32xf32>
    %cst_134 = arith.constant dense<0.000000e+00> : vector<8x32xf32>
    %463 = tpu.matmul %434, %4, %cst_134 {dimension_numbers = #tpu.dot_dimension_numbers<[1], [0], [0], [1], [0, 0, 1, 1], [], []>} : vector<8x32xbf16>, vector<32x32xbf16>, vector<8x32xf32> -> vector<8x32xf32>
    %cst_135 = arith.constant dense<0.000000e+00> : vector<8x32xf32>
    %464 = tpu.matmul %434, %5, %cst_135 {dimension_numbers = #tpu.dot_dimension_numbers<[1], [0], [0], [1], [0, 0, 1, 1], [], []>} : vector<8x32xbf16>, vector<32x32xbf16>, vector<8x32xf32> -> vector<8x32xf32>
    %465 = arith.addf %464, %15 : vector<8x32xf32>
    %cst_136 = arith.constant dense<0.000000e+00> : vector<8x32xf32>
    %466 = tpu.matmul %461, %9, %cst_136 {dimension_numbers = #tpu.dot_dimension_numbers<[1], [0], [0], [1], [0, 0, 1, 1], [], []>} : vector<8x32xbf16>, vector<32x32xbf16>, vector<8x32xf32> -> vector<8x32xf32>
    %cst_137 = arith.constant dense<0.000000e+00> : vector<8x32xf32>
    %467 = tpu.matmul %461, %10, %cst_137 {dimension_numbers = #tpu.dot_dimension_numbers<[1], [0], [0], [1], [0, 0, 1, 1], [], []>} : vector<8x32xbf16>, vector<32x32xbf16>, vector<8x32xf32> -> vector<8x32xf32>
    %cst_138 = arith.constant dense<0.000000e+00> : vector<8x32xf32>
    %468 = tpu.matmul %461, %11, %cst_138 {dimension_numbers = #tpu.dot_dimension_numbers<[1], [0], [0], [1], [0, 0, 1, 1], [], []>} : vector<8x32xbf16>, vector<32x32xbf16>, vector<8x32xf32> -> vector<8x32xf32>
    %469 = arith.addf %468, %19 : vector<8x32xf32>
    %470 = vector.extract_strided_slice %21 {offsets = [56, 0], sizes = [8, 32], strides = [1, 1]} : vector<64x32xf32> to vector<8x32xf32>
    %471 = arith.addf %470, %462 : vector<8x32xf32>
    %472 = arith.addf %471, %12 : vector<8x32xf32>
    %473 = arith.negf %472 : vector<8x32xf32>
    %474 = math.exp %473 : vector<8x32xf32>
    %cst_139 = arith.constant 1.000000e+00 : f32
    %475 = vector.broadcast %cst_139 : f32 to vector<8x32xf32>
    %476 = arith.addf %475, %474 : vector<8x32xf32>
    %477 = arith.divf %475, %476 : vector<8x32xf32>
    %478 = vector.extract_strided_slice %22 {offsets = [56, 0], sizes = [8, 32], strides = [1, 1]} : vector<64x32xf32> to vector<8x32xf32>
    %479 = arith.addf %478, %463 : vector<8x32xf32>
    %480 = arith.addf %479, %13 : vector<8x32xf32>
    %481 = arith.negf %480 : vector<8x32xf32>
    %482 = math.exp %481 : vector<8x32xf32>
    %cst_140 = arith.constant 1.000000e+00 : f32
    %483 = vector.broadcast %cst_140 : f32 to vector<8x32xf32>
    %484 = arith.addf %483, %482 : vector<8x32xf32>
    %485 = arith.divf %483, %484 : vector<8x32xf32>
    %486 = vector.extract_strided_slice %23 {offsets = [56, 0], sizes = [8, 32], strides = [1, 1]} : vector<64x32xf32> to vector<8x32xf32>
    %487 = arith.addf %486, %14 : vector<8x32xf32>
    %488 = arith.mulf %477, %465 : vector<8x32xf32>
    %489 = arith.addf %487, %488 : vector<8x32xf32>
    %490 = math.tanh %489 : vector<8x32xf32>
    %cst_141 = arith.constant 1.000000e+00 : f32
    %491 = vector.broadcast %cst_141 : f32 to vector<8x32xf32>
    %492 = arith.subf %491, %485 : vector<8x32xf32>
    %493 = arith.mulf %492, %490 : vector<8x32xf32>
    %494 = arith.mulf %485, %433 : vector<8x32xf32>
    %495 = arith.addf %493, %494 : vector<8x32xf32>
    %496 = arith.truncf %495 : vector<8x32xf32> to vector<8x32xbf16>
    %cst_142 = arith.constant dense<0.000000e+00> : vector<8x32xf32>
    %497 = tpu.matmul %496, %6, %cst_142 {dimension_numbers = #tpu.dot_dimension_numbers<[1], [0], [0], [1], [0, 0, 1, 1], [], []>} : vector<8x32xbf16>, vector<32x32xbf16>, vector<8x32xf32> -> vector<8x32xf32>
    %cst_143 = arith.constant dense<0.000000e+00> : vector<8x32xf32>
    %498 = tpu.matmul %496, %7, %cst_143 {dimension_numbers = #tpu.dot_dimension_numbers<[1], [0], [0], [1], [0, 0, 1, 1], [], []>} : vector<8x32xbf16>, vector<32x32xbf16>, vector<8x32xf32> -> vector<8x32xf32>
    %cst_144 = arith.constant dense<0.000000e+00> : vector<8x32xf32>
    %499 = tpu.matmul %496, %8, %cst_144 {dimension_numbers = #tpu.dot_dimension_numbers<[1], [0], [0], [1], [0, 0, 1, 1], [], []>} : vector<8x32xbf16>, vector<32x32xbf16>, vector<8x32xf32> -> vector<8x32xf32>
    %500 = arith.addf %497, %466 : vector<8x32xf32>
    %501 = arith.addf %500, %16 : vector<8x32xf32>
    %502 = arith.negf %501 : vector<8x32xf32>
    %503 = math.exp %502 : vector<8x32xf32>
    %cst_145 = arith.constant 1.000000e+00 : f32
    %504 = vector.broadcast %cst_145 : f32 to vector<8x32xf32>
    %505 = arith.addf %504, %503 : vector<8x32xf32>
    %506 = arith.divf %504, %505 : vector<8x32xf32>
    %507 = arith.addf %498, %467 : vector<8x32xf32>
    %508 = arith.addf %507, %17 : vector<8x32xf32>
    %509 = arith.negf %508 : vector<8x32xf32>
    %510 = math.exp %509 : vector<8x32xf32>
    %cst_146 = arith.constant 1.000000e+00 : f32
    %511 = vector.broadcast %cst_146 : f32 to vector<8x32xf32>
    %512 = arith.addf %511, %510 : vector<8x32xf32>
    %513 = arith.divf %511, %512 : vector<8x32xf32>
    %514 = arith.addf %499, %18 : vector<8x32xf32>
    %515 = arith.mulf %506, %469 : vector<8x32xf32>
    %516 = arith.addf %514, %515 : vector<8x32xf32>
    %517 = math.tanh %516 : vector<8x32xf32>
    %cst_147 = arith.constant 1.000000e+00 : f32
    %518 = vector.broadcast %cst_147 : f32 to vector<8x32xf32>
    %519 = arith.subf %518, %513 : vector<8x32xf32>
    %520 = arith.mulf %519, %517 : vector<8x32xf32>
    %521 = arith.mulf %513, %460 : vector<8x32xf32>
    %522 = arith.addf %520, %521 : vector<8x32xf32>
    %523 = arith.truncf %522 : vector<8x32xf32> to vector<8x32xbf16>
    %c0_148 = arith.constant 0 : index
    %c0_149 = arith.constant 0 : index
    %524 = vector.load %arg2[%c0_148, %c0_149] : memref<32x128xbf16, #tpu.memory_space<vmem>>, vector<32x128xbf16>
    %c0_150 = arith.constant 0 : index
    %c0_151 = arith.constant 0 : index
    %525 = vector.load %arg4[%c0_150, %c0_151] : memref<8x128xf32, #tpu.memory_space<vmem>>, vector<8x128xf32>
    %cst_152 = arith.constant 0.000000e+00 : f32
    %526 = vector.broadcast %cst_152 : f32 to vector<8x128xf32>
    %cst_153 = arith.constant dense<0.000000e+00> : vector<8x128xf32>
    %527 = tpu.matmul %89, %524, %cst_153 {dimension_numbers = #tpu.dot_dimension_numbers<[1], [0], [0], [1], [0, 0, 1, 1], [], []>} : vector<8x32xbf16>, vector<32x128xbf16>, vector<8x128xf32> -> vector<8x128xf32>
    %528 = arith.addf %527, %525 : vector<8x128xf32>
    %cst_154 = arith.constant dense<0xFF800000> : vector<8xf32>
    %529 = vector.multi_reduction <maximumf>, %528, %cst_154 [1] : vector<8x128xf32> to vector<8xf32>
    %530 = vector.shape_cast %529 : vector<8xf32> to vector<8x1xf32>
    %531 = vector.broadcast %530 : vector<8x1xf32> to vector<8x128xf32>
    %532 = arith.subf %528, %531 : vector<8x128xf32>
    %533 = math.exp %532 : vector<8x128xf32>
    %cst_155 = arith.constant dense<0.000000e+00> : vector<8xf32>
    %534 = vector.multi_reduction <add>, %533, %cst_155 [1] : vector<8x128xf32> to vector<8xf32>
    %535 = vector.shape_cast %534 : vector<8xf32> to vector<8x1xf32>
    %536 = math.log %535 : vector<8x1xf32>
    %537 = arith.addf %536, %530 : vector<8x1xf32>
    %538 = vector.broadcast %537 : vector<8x1xf32> to vector<8x128xf32>
    %539 = arith.subf %528, %538 : vector<8x128xf32>
    %540 = arith.addf %526, %539 : vector<8x128xf32>
    %cst_156 = arith.constant dense<0.000000e+00> : vector<8x128xf32>
    %541 = tpu.matmul %151, %524, %cst_156 {dimension_numbers = #tpu.dot_dimension_numbers<[1], [0], [0], [1], [0, 0, 1, 1], [], []>} : vector<8x32xbf16>, vector<32x128xbf16>, vector<8x128xf32> -> vector<8x128xf32>
    %542 = arith.addf %541, %525 : vector<8x128xf32>
    %cst_157 = arith.constant dense<0xFF800000> : vector<8xf32>
    %543 = vector.multi_reduction <maximumf>, %542, %cst_157 [1] : vector<8x128xf32> to vector<8xf32>
    %544 = vector.shape_cast %543 : vector<8xf32> to vector<8x1xf32>
    %545 = vector.broadcast %544 : vector<8x1xf32> to vector<8x128xf32>
    %546 = arith.subf %542, %545 : vector<8x128xf32>
    %547 = math.exp %546 : vector<8x128xf32>
    %cst_158 = arith.constant dense<0.000000e+00> : vector<8xf32>
    %548 = vector.multi_reduction <add>, %547, %cst_158 [1] : vector<8x128xf32> to vector<8xf32>
    %549 = vector.shape_cast %548 : vector<8xf32> to vector<8x1xf32>
    %550 = math.log %549 : vector<8x1xf32>
    %551 = arith.addf %550, %544 : vector<8x1xf32>
    %552 = vector.broadcast %551 : vector<8x1xf32> to vector<8x128xf32>
    %553 = arith.subf %542, %552 : vector<8x128xf32>
    %554 = arith.addf %540, %553 : vector<8x128xf32>
    %cst_159 = arith.constant dense<0.000000e+00> : vector<8x128xf32>
    %555 = tpu.matmul %213, %524, %cst_159 {dimension_numbers = #tpu.dot_dimension_numbers<[1], [0], [0], [1], [0, 0, 1, 1], [], []>} : vector<8x32xbf16>, vector<32x128xbf16>, vector<8x128xf32> -> vector<8x128xf32>
    %556 = arith.addf %555, %525 : vector<8x128xf32>
    %cst_160 = arith.constant dense<0xFF800000> : vector<8xf32>
    %557 = vector.multi_reduction <maximumf>, %556, %cst_160 [1] : vector<8x128xf32> to vector<8xf32>
    %558 = vector.shape_cast %557 : vector<8xf32> to vector<8x1xf32>
    %559 = vector.broadcast %558 : vector<8x1xf32> to vector<8x128xf32>
    %560 = arith.subf %556, %559 : vector<8x128xf32>
    %561 = math.exp %560 : vector<8x128xf32>
    %cst_161 = arith.constant dense<0.000000e+00> : vector<8xf32>
    %562 = vector.multi_reduction <add>, %561, %cst_161 [1] : vector<8x128xf32> to vector<8xf32>
    %563 = vector.shape_cast %562 : vector<8xf32> to vector<8x1xf32>
    %564 = math.log %563 : vector<8x1xf32>
    %565 = arith.addf %564, %558 : vector<8x1xf32>
    %566 = vector.broadcast %565 : vector<8x1xf32> to vector<8x128xf32>
    %567 = arith.subf %556, %566 : vector<8x128xf32>
    %568 = arith.addf %554, %567 : vector<8x128xf32>
    %cst_162 = arith.constant dense<0.000000e+00> : vector<8x128xf32>
    %569 = tpu.matmul %275, %524, %cst_162 {dimension_numbers = #tpu.dot_dimension_numbers<[1], [0], [0], [1], [0, 0, 1, 1], [], []>} : vector<8x32xbf16>, vector<32x128xbf16>, vector<8x128xf32> -> vector<8x128xf32>
    %570 = arith.addf %569, %525 : vector<8x128xf32>
    %cst_163 = arith.constant dense<0xFF800000> : vector<8xf32>
    %571 = vector.multi_reduction <maximumf>, %570, %cst_163 [1] : vector<8x128xf32> to vector<8xf32>
    %572 = vector.shape_cast %571 : vector<8xf32> to vector<8x1xf32>
    %573 = vector.broadcast %572 : vector<8x1xf32> to vector<8x128xf32>
    %574 = arith.subf %570, %573 : vector<8x128xf32>
    %575 = math.exp %574 : vector<8x128xf32>
    %cst_164 = arith.constant dense<0.000000e+00> : vector<8xf32>
    %576 = vector.multi_reduction <add>, %575, %cst_164 [1] : vector<8x128xf32> to vector<8xf32>
    %577 = vector.shape_cast %576 : vector<8xf32> to vector<8x1xf32>
    %578 = math.log %577 : vector<8x1xf32>
    %579 = arith.addf %578, %572 : vector<8x1xf32>
    %580 = vector.broadcast %579 : vector<8x1xf32> to vector<8x128xf32>
    %581 = arith.subf %570, %580 : vector<8x128xf32>
    %582 = arith.addf %568, %581 : vector<8x128xf32>
    %cst_165 = arith.constant dense<0.000000e+00> : vector<8x128xf32>
    %583 = tpu.matmul %337, %524, %cst_165 {dimension_numbers = #tpu.dot_dimension_numbers<[1], [0], [0], [1], [0, 0, 1, 1], [], []>} : vector<8x32xbf16>, vector<32x128xbf16>, vector<8x128xf32> -> vector<8x128xf32>
    %584 = arith.addf %583, %525 : vector<8x128xf32>
    %cst_166 = arith.constant dense<0xFF800000> : vector<8xf32>
    %585 = vector.multi_reduction <maximumf>, %584, %cst_166 [1] : vector<8x128xf32> to vector<8xf32>
    %586 = vector.shape_cast %585 : vector<8xf32> to vector<8x1xf32>
    %587 = vector.broadcast %586 : vector<8x1xf32> to vector<8x128xf32>
    %588 = arith.subf %584, %587 : vector<8x128xf32>
    %589 = math.exp %588 : vector<8x128xf32>
    %cst_167 = arith.constant dense<0.000000e+00> : vector<8xf32>
    %590 = vector.multi_reduction <add>, %589, %cst_167 [1] : vector<8x128xf32> to vector<8xf32>
    %591 = vector.shape_cast %590 : vector<8xf32> to vector<8x1xf32>
    %592 = math.log %591 : vector<8x1xf32>
    %593 = arith.addf %592, %586 : vector<8x1xf32>
    %594 = vector.broadcast %593 : vector<8x1xf32> to vector<8x128xf32>
    %595 = arith.subf %584, %594 : vector<8x128xf32>
    %596 = arith.addf %582, %595 : vector<8x128xf32>
    %cst_168 = arith.constant dense<0.000000e+00> : vector<8x128xf32>
    %597 = tpu.matmul %399, %524, %cst_168 {dimension_numbers = #tpu.dot_dimension_numbers<[1], [0], [0], [1], [0, 0, 1, 1], [], []>} : vector<8x32xbf16>, vector<32x128xbf16>, vector<8x128xf32> -> vector<8x128xf32>
    %598 = arith.addf %597, %525 : vector<8x128xf32>
    %cst_169 = arith.constant dense<0xFF800000> : vector<8xf32>
    %599 = vector.multi_reduction <maximumf>, %598, %cst_169 [1] : vector<8x128xf32> to vector<8xf32>
    %600 = vector.shape_cast %599 : vector<8xf32> to vector<8x1xf32>
    %601 = vector.broadcast %600 : vector<8x1xf32> to vector<8x128xf32>
    %602 = arith.subf %598, %601 : vector<8x128xf32>
    %603 = math.exp %602 : vector<8x128xf32>
    %cst_170 = arith.constant dense<0.000000e+00> : vector<8xf32>
    %604 = vector.multi_reduction <add>, %603, %cst_170 [1] : vector<8x128xf32> to vector<8xf32>
    %605 = vector.shape_cast %604 : vector<8xf32> to vector<8x1xf32>
    %606 = math.log %605 : vector<8x1xf32>
    %607 = arith.addf %606, %600 : vector<8x1xf32>
    %608 = vector.broadcast %607 : vector<8x1xf32> to vector<8x128xf32>
    %609 = arith.subf %598, %608 : vector<8x128xf32>
    %610 = arith.addf %596, %609 : vector<8x128xf32>
    %cst_171 = arith.constant dense<0.000000e+00> : vector<8x128xf32>
    %611 = tpu.matmul %461, %524, %cst_171 {dimension_numbers = #tpu.dot_dimension_numbers<[1], [0], [0], [1], [0, 0, 1, 1], [], []>} : vector<8x32xbf16>, vector<32x128xbf16>, vector<8x128xf32> -> vector<8x128xf32>
    %612 = arith.addf %611, %525 : vector<8x128xf32>
    %cst_172 = arith.constant dense<0xFF800000> : vector<8xf32>
    %613 = vector.multi_reduction <maximumf>, %612, %cst_172 [1] : vector<8x128xf32> to vector<8xf32>
    %614 = vector.shape_cast %613 : vector<8xf32> to vector<8x1xf32>
    %615 = vector.broadcast %614 : vector<8x1xf32> to vector<8x128xf32>
    %616 = arith.subf %612, %615 : vector<8x128xf32>
    %617 = math.exp %616 : vector<8x128xf32>
    %cst_173 = arith.constant dense<0.000000e+00> : vector<8xf32>
    %618 = vector.multi_reduction <add>, %617, %cst_173 [1] : vector<8x128xf32> to vector<8xf32>
    %619 = vector.shape_cast %618 : vector<8xf32> to vector<8x1xf32>
    %620 = math.log %619 : vector<8x1xf32>
    %621 = arith.addf %620, %614 : vector<8x1xf32>
    %622 = vector.broadcast %621 : vector<8x1xf32> to vector<8x128xf32>
    %623 = arith.subf %612, %622 : vector<8x128xf32>
    %624 = arith.addf %610, %623 : vector<8x128xf32>
    %cst_174 = arith.constant dense<0.000000e+00> : vector<8x128xf32>
    %625 = tpu.matmul %523, %524, %cst_174 {dimension_numbers = #tpu.dot_dimension_numbers<[1], [0], [0], [1], [0, 0, 1, 1], [], []>} : vector<8x32xbf16>, vector<32x128xbf16>, vector<8x128xf32> -> vector<8x128xf32>
    %626 = arith.addf %625, %525 : vector<8x128xf32>
    %cst_175 = arith.constant dense<0xFF800000> : vector<8xf32>
    %627 = vector.multi_reduction <maximumf>, %626, %cst_175 [1] : vector<8x128xf32> to vector<8xf32>
    %628 = vector.shape_cast %627 : vector<8xf32> to vector<8x1xf32>
    %629 = vector.broadcast %628 : vector<8x1xf32> to vector<8x128xf32>
    %630 = arith.subf %626, %629 : vector<8x128xf32>
    %631 = math.exp %630 : vector<8x128xf32>
    %cst_176 = arith.constant dense<0.000000e+00> : vector<8xf32>
    %632 = vector.multi_reduction <add>, %631, %cst_176 [1] : vector<8x128xf32> to vector<8xf32>
    %633 = vector.shape_cast %632 : vector<8xf32> to vector<8x1xf32>
    %634 = math.log %633 : vector<8x1xf32>
    %635 = arith.addf %634, %628 : vector<8x1xf32>
    %636 = vector.broadcast %635 : vector<8x1xf32> to vector<8x128xf32>
    %637 = arith.subf %626, %636 : vector<8x128xf32>
    %638 = arith.addf %624, %637 : vector<8x128xf32>
    %cst_177 = arith.constant 1.250000e-01 : f32
    %639 = vector.broadcast %cst_177 : f32 to vector<8x128xf32>
    %640 = arith.mulf %638, %639 : vector<8x128xf32>
    %c0_178 = arith.constant 0 : index
    %c0_179 = arith.constant 0 : index
    %641 = vector.load %arg5[%c0_178, %c0_179] : memref<8x128xf32, #tpu.memory_space<vmem>>, vector<8x128xf32>
    tpu.vector_store %arg5[%c0_178, %c0_179], %640 {strides = array<i32>} : memref<8x128xf32, #tpu.memory_space<vmem>>, vector<8x128xf32>,
    return
  }
}

</mosaic_0001>

<bundles_post_ra>
// kernel: gru_keyword_spotter.1
= control target key start
LH: loop header
LB: loop body
LE: loop exit
PB: predicated region body
PF: predicated region fallthrough
CT: control target
= control target key end

     0   :  { %vm117_vm0 = vcmask 261120   ;;  %v2838_v12 = vmov 0   ;;  %s3759_s1 = inlined_call_operand.vmem [shape: bf16[384,32], index: 1, kind: input, shape index: {}]   ;;  %s3760_s0 = inlined_call_operand.vmem [shape: bf16[64,32], index: 0, kind: input, shape index: {}]   ;;  %s3761_s3 = inlined_call_operand.vmem [shape: f32[64,32], index: 3, kind: input, shape index: {}]   ;;  %s3762_s2 = inlined_call_operand.vmem [shape: bf16[32,128], index: 2, kind: input, shape index: {}]   ;;  %s3763_s4 = inlined_call_operand.vmem [shape: f32[8,128], index: 4, kind: input, shape index: {}]   ;;  %s3764_s5 = inlined_call_operand.vmem [shape: f32[8,128], index: 5, kind: output, shape index: {}]  }
   0x1   :  { %v2872_v0 = vld [vmem:[%s3759_s1 + $0x38] sm:$0xff]  ;;  %v2590_v1 = vld [vmem:[%s3759_s1 + $0x8] sm:$0xff]  ;;  %v2881_v2 = vld [vmem:[%s3759_s1 + $0x30] sm:$0xff] }
   0x2   :  { %262 = vmatpush.bf16.msra.mxu3 %v2872_v0  ;;  %136 = vmatpush.bf16.msra.mxu0 %v2590_v1  ;;  %v2589_v3 = vld [vmem:[%s3759_s1] sm:$0xff]  ;;  %v2592_v4 = vld [vmem:[%s3759_s1 + $0x18] sm:$0xff]  ;;  %v2892_v5 = vld [vmem:[%s3759_s1 + $0x48] sm:$0xff] }
   0x3   :  { %v2594_v6 = vld [vmem:[%s3759_s1 + $0x28] sm:$0xff]  ;;  %177 = vmatpush.bf16.msra.mxu1 %v2592_v4  ;;  %v2591_v7 = vld [vmem:[%s3759_s1 + $0x10] sm:$0xff]  ;;  %v2613_v8 = vld [vmem:[%s3760_s0] sm:$0xff] }
   0x4   :  { %218 = vmatpush.bf16.msra.mxu2 %v2594_v6  ;;  %v2593_v9 = vld [vmem:[%s3759_s1 + $0x20] sm:$0xff]  ;;  %v2916_v11 = vld [vmem:[%s3759_s1 + $0x58] sm:$0xff]  ;;  %v2927_v14 = vld [vmem:[%s3759_s1 + $0x68] sm:$0xff] }
   0x5   :  { %v2911_v10 = vld [vmem:[%s3759_s1 + $0x40] sm:$0xff]  ;;  %v2922_v13 = vld [vmem:[%s3759_s1 + $0xb8] sm:$0xff]  ;;  %v2935_v15 = vld [vmem:[%s3759_s1 + $0x50] sm:$0xff] }
   0x6   :  { %263 = vmatpush.bf16.msra.mxu3 %v2881_v2  ;;  %137 = vmatpush.bf16.msra.mxu0 %v2589_v3  ;;  %v2614_v16 = vld [vmem:[%s3760_s0 + $0x8] sm:$0xff]  ;;  %v2615_v17 = vld [vmem:[%s3760_s0 + $0x10] sm:$0xff]  ;;  %v2616_v19 = vld [vmem:[%s3760_s0 + $0x18] sm:$0xff] }
   0x7   :  { %178 = vmatpush.bf16.msra.mxu1 %v2591_v7  ;;  %v2956_v18 = vld [vmem:[%s3759_s1 + $0xa8] sm:$0xff]  ;;  %v2968_v21 = vld [vmem:[%s3761_s3] sm:$0xff]  ;;  %v2973_v24 = vld [vmem:[%s3759_s1 + $0x98] sm:$0xff] }
   0x8   :  { %219 = vmatpush.bf16.msra.mxu2 %v2593_v9  ;;  %v2980_v26 = vld [vmem:[%s3759_s1 + $0xb0] sm:$0xff]  ;;  %v2990_v29 = vld [vmem:[%s3759_s1 + $0xa0] sm:$0xff]  ;;  %v3008_v35 = vld [vmem:[%s3761_s3 + $0x8] sm:$0xff] }
   0x9   :  { %264 = vmatmul.bf16.vlgmr.msra.gmra.mxu3 %v2838_v12  ;;  %2375 = vmatmul.msk.bf16.vlgmr.msra.gmra.mxu0 %vm117_vm0, %v2613_v8  ;;  %v2985_v28 = vld [vmem:[%s3759_s1 + $0x90] sm:$0xff]  ;;  %v2999_v31 = vld [vmem:[%s3759_s1 + $0x60] sm:$0xff]  ;;  %v3013_v38 = vld [vmem:[%s3759_s1 + $0x78] sm:$0xff] }
   0xa   :  { %287 = vmatpush.bf16.msrb.mxu3 %v2892_v5  ;;  %2387 = vmatmul.msk.bf16.vlgmr.msra.gmra.mxu1 %vm117_vm0, %v2613_v8  ;;  %v3018_v39 = vld [vmem:[%s3759_s1 + $0x88] sm:$0xff]  ;;  %v3028_v42 = vld [vmem:[%s3759_s1 + $0x70] sm:$0xff]  ;;  %v3033_v43 = vld [vmem:[%s3759_s1 + $0x80] sm:$0xff] }
   0xb   :  { %387 = vmatpush.bf16.msrb.mxu1 %v2922_v13  ;;  %2399 = vmatmul.msk.bf16.vlgmr.msra.gmra.mxu2 %vm117_vm0, %v2613_v8  ;;  %v3044_v53 = vld [vmem:[%s3761_s3 + $0x18] sm:$0xff]  ;;  %v3049_v57 = vld [vmem:[%s3761_s3 + $0x10] sm:$0xff] }
   0xc   :  { %466 = vmatpush.bf16.msrb.mxu2 %v2927_v14  ;;  %362 = vmatpush.bf16.msrb.mxu0 %v2956_v18 }
   0xe   :  { %288 = vmatpush.bf16.msrb.mxu3 %v2911_v10 }
   0xf   :  { %388 = vmatpush.bf16.msrb.mxu1 %v2980_v26 }
  0x10   :  { %363 = vmatpush.bf16.msrb.mxu0 %v2990_v29  ;;  %467 = vmatpush.bf16.msrb.mxu2 %v2999_v31 }
  0x12   :  { %312 = vmatpush.bf16.msra.mxu3 %v2916_v11 }
  0x13   :  { %577 = vmatpush.bf16.msra.mxu1 %v2872_v0 }
  0x14   :  { %590 = vmatpush.bf16.msra.mxu2 %v2892_v5  ;;  %556 = vmatpush.bf16.msra.mxu0 %v3018_v39 }
  0x16   :  { %313 = vmatpush.bf16.msra.mxu3 %v2935_v15 }
  0x17   :  { %578 = vmatpush.bf16.msra.mxu1 %v2881_v2 }
  0x18   :  { %591 = vmatpush.bf16.msra.mxu2 %v2911_v10  ;;  %557 = vmatpush.bf16.msra.mxu0 %v3033_v43 }
  0x19   :  { %289 = vmatmul.bf16.vlgmr.msrb.gmra.mxu3 %v2838_v12  ;;  %2376 = vmatmul.msk.bf16.gmra.mxu0 %vm117_vm0, %v2614_v16 }
  0x1a   :  { %2388 = vmatmul.msk.bf16.gmra.mxu1 %vm117_vm0, %v2614_v16  ;;  %337 = vmatpush.bf16.msrb.mxu3 %v2973_v24 }
  0x1b   :  { %2400 = vmatmul.msk.bf16.gmra.mxu2 %vm117_vm0, %v2614_v16 }
  0x1e   :  { %338 = vmatpush.bf16.msrb.mxu3 %v2985_v28 }
  0x29   :  { %314 = vmatmul.bf16.vlgmr.msra.gmra.mxu3 %v2838_v12  ;;  %2377 = vmatmul.msk.bf16.gmra.mxu0 %vm117_vm0, %v2615_v17 }
  0x2a   :  { %2389 = vmatmul.msk.bf16.gmra.mxu1 %vm117_vm0, %v2615_v17  ;;  %511 = vmatpush.bf16.msra.mxu3 %v3013_v38 }
  0x2b   :  { %2401 = vmatmul.msk.bf16.gmra.mxu2 %vm117_vm0, %v2615_v17 }
  0x2e   :  { %512 = vmatpush.bf16.msra.mxu3 %v3028_v42 }
  0x39   :  { %2378 = vmatmul.msk.bf16.gmra.mxu0 %vm117_vm0, %v2616_v19  ;;  %339 = vmatmul.bf16.vlgmr.msrb.gmra.mxu3 %v2838_v12 }
  0x3a   :  { %2390 = vmatmul.msk.bf16.gmra.mxu1 %vm117_vm0, %v2616_v19  ;;  %603 = vmatpush.bf16.msrb.mxu3 %v2916_v11 }
  0x3b   :  { %2402 = vmatmul.msk.bf16.gmra.mxu2 %vm117_vm0, %v2616_v19 }
  0x3e   :  { %604 = vmatpush.bf16.msrb.mxu3 %v2935_v15 }
  0x49   :  { %364 = vmatmul.bf16.vlgmr.msrb.gmra.mxu0 %v2838_v12 }
  0x4a   :  { %389 = vmatmul.bf16.vlgmr.msrb.gmra.mxu1 %v2838_v12  ;;  %619 = vmatpush.bf16.msrb.mxu0 %v2973_v24 }
  0x4b   :  { %632 = vmatpush.bf16.msrb.mxu1 %v2956_v18 }
  0x4e   :  { %620 = vmatpush.bf16.msrb.mxu0 %v2985_v28 }
  0x4f   :  { %633 = vmatpush.bf16.msrb.mxu1 %v2990_v29 }
  0x86   :  { %v139_v20 = vpop.f32.mrf.mxu0 }
  0x87   :  { %v180_v34 = vpop.f32.mrf.mxu1 }
  0x8c   :  { %v265_v22 = vpop.f32.mrf.mxu3 }
  0x8d   :  { %v394_v23 = vadd.f32 %v265_v22, %v139_v20 }
  0x8e   :  { %v221_v60 = vpop.f32.mrf.mxu2 }
  0x8f   :  { %v395_v25 = vadd.f32 %v394_v23, %v2968_v21  ;;  %v436_v62 = vadd.f32 %v221_v60, %v3049_v57 }
  0x91   :  { %v2451_v27 = vmul.f32 -1.442695, %v395_v25 }
  0x93   :  { %2620 = vpow2.f32 %v2451_v27 }
  0x94   :  { %v267_v30 = vpop.f32.mrf.mxu3 }
  0x99   :  { %v2621_v32 = vpop.eup %2620 }
  0x9a   :  { %v399_v33 = vadd.f32 1.0, %v2621_v32 }
  0x9c   :  { %2622 = vrcp.f32 %v399_v33  ;;  %v290_v36 = vpop.f32.mrf.mxu3  ;;  %v411_v51 = vand.u32 2147483648, %v399_v33  ;;  %vm405_vm2 = vweird.f32 %v399_v33  ;;  %v409_v54 = vand.u32 2147483647, %v399_v33 }
  0x9d   :  { %v415_v37 = vadd.f32 %v290_v36, %v180_v34  ;;  %v3071_v34 = vpop.f32.mrf.mxu1 }
  0x9e   :  { %v412_v59 = vor.u32 1.1754944e-38, %v411_v51  ;;  %vm410_vm4 = vcmp.eq.f32.partialorder %v409_v54, 8.507059e+37 }
  0x9f   :  { %v416_v40 = vadd.f32 %v415_v37, %v3008_v35 }
  0xa1   :  { %v2452_v41 = vmul.f32 -1.442695, %v416_v40 }
  0xa2   :  { %v2623_v44 = vpop.eup %2622 }
  0xa3   :  { %2624 = vpow2.f32 %v2452_v41  ;;  %v401_v45 = vmul.f32 %v2623_v44, %v399_v33  ;;  %vm406_vm1 = vweird.f32 %v2623_v44  ;;  %v141_v33 = vpop.f32.mrf.mxu0 }
  0xa4   :  { %v292_v46 = vpop.f32.mrf.mxu3  ;;  %vm407_vm3 = vmor %vm405_vm2, %vm406_vm1 }
  0xa5   :  { %v402_v47 = vsub.f32 1.0, %v401_v45  ;;  %v3079_v37 = vpop.f32.mrf.mxu1 }
  0xa7   :  { %v403_v48 = vmul.f32 %v2623_v44, %v402_v47 }
  0xa9   :  { %v2625_v49 = vpop.eup %2624  ;;  %v404_v50 = vadd.f32 %v2623_v44, %v403_v48 }
  0xaa   :  { %v420_v52 = vadd.f32 1.0, %v2625_v49 }
  0xab   :  { %v408_v56 = vsel %vm407_vm3, %v2623_v44, %v404_v50  ;;  %v3077_v36 = vpop.f32.mrf.mxu0  ;;  %v3097_v50 = vpop.f32.mrf.mxu2 }
  0xac   :  { %2626 = vrcp.f32 %v420_v52  ;;  %v315_v55 = vpop.f32.mrf.mxu3  ;;  %v413_v61 = vsel %vm410_vm4, %v412_v59, %v408_v56  ;;  %v432_v8 = vand.u32 2147483648, %v420_v52  ;;  %v430_v12 = vand.u32 2147483647, %v420_v52 }
  0xad   :  { %v316_v58 = vadd.f32 %v315_v55, %v3044_v53  ;;  %vm426_vm6 = vweird.f32 %v420_v52  ;;  %v3083_v41 = vpop.f32.mrf.mxu1 }
  0xae   :  { %v433_v17 = vor.u32 1.1754944e-38, %v432_v8  ;;  %vm431_vm8 = vcmp.eq.f32.partialorder %v430_v12, 8.507059e+37 }
  0xaf   :  { %v437_v63 = vmul.f32 %v413_v61, %v316_v58 }
  0xb1   :  { %v438_v4 = vadd.f32 %v437_v63, %v436_v62 }
  0xb2   :  { %v2627_v1 = vpop.eup %2626 }
  0xb3   :  { %v422_v3 = vmul.f32 %v2627_v1, %v420_v52  ;;  %vm427_vm5 = vweird.f32 %v2627_v1  ;;  %2628 = vtanh.f32 %v438_v4  ;;  %v3081_v40 = vpop.f32.mrf.mxu0  ;;  %v3103_v54 = vpop.f32.mrf.mxu2 }
  0xb4   :  { %v317_v6 = vpop.f32.mrf.mxu3  ;;  %vm428_vm7 = vmor %vm426_vm6, %vm427_vm5 }
  0xb5   :  { %v423_v7 = vsub.f32 1.0, %v422_v3  ;;  %v3087_v45 = vpop.f32.mrf.mxu1 }
  0xb7   :  { %v424_v9 = vmul.f32 %v2627_v1, %v423_v7 }
  0xb9   :  { %v425_v16 = vadd.f32 %v2627_v1, %v424_v9  ;;  %v2629_v23 = vpop.eup %2628 }
  0xbb   :  { %v429_v19 = vsel %vm428_vm7, %v2627_v1, %v425_v16  ;;  %v3085_v44 = vpop.f32.mrf.mxu0  ;;  %v3107_v58 = vpop.f32.mrf.mxu2  ;;  %v3123_v16 = vld [vmem:[%s3761_s3 + $0x20] sm:$0xff] }
  0xbc   :  { %v434_v20 = vsel %vm431_vm8, %v433_v17, %v429_v19  ;;  %v340_v59 = vpop.f32.mrf.mxu3  ;;  %v3128_v19 = vld [vmem:[%s3761_s3 + $0x28] sm:$0xff] }
  0xbd   :  { %v440_v22 = vsub.f32 1.0, %v434_v20  ;;  %v442_v27 = vmul.f32 0.0, %v434_v20  ;;  %v3091_v47 = vpop.f32.mrf.mxu1 }
  0xbe   :  { %3766 = vst [vmem:[#allocation3_spill] sm:$0xff] %v3091_v47 }
  0xbf   :  { %v441_v25 = vmul.f32 %v2629_v23, %v440_v22 }
  0xc1   :  { %v3053_v30 = vadd.f32 %v442_v27, %v441_v25 }
  0xc3   :  { %v444_v32 = vpack.c.bf16 %v3053_v30, %v3053_v30  ;;  %v3089_v46 = vpop.f32.mrf.mxu0  ;;  %v3109_v63 = vpop.f32.mrf.mxu2 }
  0xc4   :  { %3765 = vst [vmem:[#allocation2_spill] sm:$0xff] %v3089_v46  ;;  %v342_v62 = vpop.f32.mrf.mxu3 }
  0xc5   :  { %2461 = vmatmul.msk.bf16.vlgmr.msrb.gmra.mxu2 %vm117_vm0, %v444_v32  ;;  %2471 = vmatmul.msk.bf16.vlgmr.msra.gmra.mxu3 %vm117_vm0, %v444_v32  ;;  %v3095_v49 = vpop.f32.mrf.mxu1 }
  0xc6   :  { %2481 = vmatmul.msk.bf16.vlgmr.msra.gmra.mxu0 %vm117_vm0, %v444_v32  ;;  %2482 = vmatmul.msk.bf16.vlgmr.msra.gmra.mxu1 %vm117_vm0, %v444_v32  ;;  %3768 = vst [vmem:[#allocation5_spill] sm:$0xff] %v3095_v49 }
  0xc7   :  { %645 = vmatpush.bf16.msrb.mxu2 %v2922_v13  ;;  %712 = vmatpush.bf16.msra.mxu3 %v2927_v14 }
  0xc8   :  { %745 = vmatpush.bf16.msra.mxu0 %v3013_v38  ;;  %778 = vmatpush.bf16.msra.mxu1 %v3018_v39 }
  0xcb   :  { %646 = vmatpush.bf16.msrb.mxu2 %v2980_v26  ;;  %713 = vmatpush.bf16.msra.mxu3 %v2999_v31  ;;  %v3093_v48 = vpop.f32.mrf.mxu0  ;;  %v3111_v1 = vpop.f32.mrf.mxu2 }
  0xcc   :  { %746 = vmatpush.bf16.msra.mxu0 %v3028_v42  ;;  %779 = vmatpush.bf16.msra.mxu1 %v3033_v43  ;;  %3767 = vst [vmem:[#allocation4_spill] sm:$0xff] %v3093_v48 }
  0xcd   :  { %v3101_v52 = vpop.f32.mrf.mxu1  ;;  %3771 = vst [vmem:[#allocation8_spill] sm:$0xff] %v3111_v1 }
  0xce   :  { %3770 = vst [vmem:[#allocation7_spill] sm:$0xff] %v3101_v52 }
  0xd3   :  { %v3099_v51 = vpop.f32.mrf.mxu0  ;;  %v3113_v3 = vpop.f32.mrf.mxu2 }
  0xd4   :  { %3769 = vst [vmem:[#allocation6_spill] sm:$0xff] %v3099_v51 }
  0xd5   :  { %2483 = vmatmul.msk.bf16.vlgmr.msra.gmra.mxu2 %vm117_vm0, %v444_v32  ;;  %2484 = vmatmul.msk.bf16.vlgmr.msrb.gmra.mxu3 %vm117_vm0, %v444_v32  ;;  %v3105_v55 = vpop.f32.mrf.mxu1  ;;  %3772 = vst [vmem:[#allocation9_spill] sm:$0xff] %v3113_v3 }
  0xd6   :  { %799 = vmatpush.bf16.msra.mxu2 %v2872_v0  ;;  %812 = vmatpush.bf16.msrb.mxu3 %v2892_v5 }
  0xda   :  { %800 = vmatpush.bf16.msra.mxu2 %v2881_v2  ;;  %813 = vmatpush.bf16.msrb.mxu3 %v2911_v10 }
  0xdb   :  { %v365_v56 = vpop.f32.mrf.mxu0  ;;  %v3115_v4 = vpop.f32.mrf.mxu2 }
  0xdc   :  { %3773 = vst [vmem:[#allocation10_spill] sm:$0xff] %v3115_v4 }
  0xdd   :  { %v392_v60 = vpop.f32.mrf.mxu1 }
  0xe3   :  { %v367_v61 = vpop.f32.mrf.mxu0 }
 0x143   :  { %v3117_v6 = vpop.f32.mrf.mxu0  ;;  %v580_v7 = vpop.f32.mrf.mxu1 }
 0x144   :  { %v652_v8 = vadd.f32 %v580_v7, %v141_v33 }
 0x146   :  { %v653_v9 = vadd.f32 %v652_v8, %v2968_v21 }
 0x148   :  { %v2488_v12 = vmul.f32 -1.442695, %v653_v9  ;;  %v469_v17 = vpop.f32.mrf.mxu2  ;;  %v514_v20 = vpop.f32.mrf.mxu3 }
 0x149   :  { %v470_v22 = vadd.f32 %v469_v17, %v340_v59  ;;  %v515_v23 = vadd.f32 %v514_v20, %v365_v56 }
 0x14a   :  { %2630 = vpow2.f32 %v2488_v12 }
 0x14b   :  { %v473_v25 = vadd.f32 %v470_v22, %v3123_v16  ;;  %v518_v27 = vadd.f32 %v515_v23, %v3128_v19  ;;  %v561_v32 = vpop.f32.mrf.mxu0  ;;  %v582_v33 = vpop.f32.mrf.mxu1 }
 0x14d   :  { %v2462_v60 = vmul.f32 -1.442695, %v473_v25  ;;  %v2472_v61 = vmul.f32 -1.442695, %v518_v27 }
 0x14f   :  { %2632 = vpow2.f32 %v2462_v60 }
 0x150   :  { %v2631_v62 = vpop.eup %2630  ;;  %2634 = vpow2.f32 %v2472_v61  ;;  %v471_v7 = vpop.f32.mrf.mxu2 }
 0x151   :  { %v516_v8 = vpop.f32.mrf.mxu3  ;;  %v657_v9 = vadd.f32 1.0, %v2631_v62 }
 0x153   :  { %2636 = vrcp.f32 %v657_v9  ;;  %vm663_vm11 = vweird.f32 %v657_v9 }
 0x155   :  { %v2633_v4 = vpop.eup %2632 }
 0x156   :  { %v2635_v52 = vpop.eup %2634  ;;  %v477_v59 = vadd.f32 1.0, %v2633_v4 }
 0x157   :  { %v3132_v56 = vadd.f32 1.0, %v2635_v52 }
 0x158   :  { %2638 = vrcp.f32 %v477_v59  ;;  %v593_v12 = vpop.f32.mrf.mxu2  ;;  %v489_v51 = vand.u32 2147483648, %v477_v59  ;;  %vm483_vm12 = vweird.f32 %v477_v59 }
 0x159   :  { %v606_v17 = vpop.f32.mrf.mxu3  ;;  %v2637_v20 = vpop.eup %2636  ;;  %2640 = vrcp.f32 %v3132_v56  ;;  %v673_v22 = vadd.f32 %v593_v12, %v3071_v34  ;;  %v3141_v34 = vld [vmem:[%s3761_s3 + $0x38] sm:$0xff]  ;;  %v3146_v12 = vld [vmem:[%s3761_s3 + $0x30] sm:$0xff]  ;;  %v534_v46 = vand.u32 2147483648, %v3132_v56  ;;  %vm528_vm3 = vweird.f32 %v3132_v56 }
 0x15a   :  { %v659_v23 = vmul.f32 %v2637_v20, %v657_v9  ;;  %vm664_vm9 = vweird.f32 %v2637_v20  ;;  %v391_v49 = vadd.f32 %v3105_v55, %v3141_v34  ;;  %v490_v48 = vor.u32 1.1754944e-38, %v489_v51 }
 0x15b   :  { %v674_v25 = vadd.f32 %v673_v22, %v3008_v35  ;;  %vm3148_vm13 = vmor %vm663_vm11, %vm664_vm9  ;;  %v532_v55 = vand.u32 2147483647, %v3132_v56 }
 0x15c   :  { %v660_v27 = vsub.f32 1.0, %v659_v23  ;;  %v487_v23 = vand.u32 2147483647, %v477_v59 }
 0x15d   :  { %v2489_v33 = vmul.f32 -1.442695, %v674_v25  ;;  %vm533_vm5 = vcmp.eq.f32.partialorder %v532_v55, 8.507059e+37 }
 0x15e   :  { %v2639_v32 = vpop.eup %2638  ;;  %v661_v62 = vmul.f32 %v2637_v20, %v660_v27  ;;  %vm488_vm15 = vcmp.eq.f32.partialorder %v487_v23, 8.507059e+37 }
 0x15f   :  { %v2641_v60 = vpop.eup %2640  ;;  %v479_v61 = vmul.f32 %v2639_v32, %v477_v59  ;;  %2642 = vpow2.f32 %v2489_v33  ;;  %vm484_vm10 = vweird.f32 %v2639_v32  ;;  %v669_v33 = vand.u32 2147483648, %v657_v9 }
 0x160   :  { %v524_v52 = vmul.f32 %v2641_v60, %v3132_v56  ;;  %v595_v4 = vpop.f32.mrf.mxu2  ;;  %v662_v25 = vadd.f32 %v2637_v20, %v661_v62  ;;  %vm485_vm14 = vmor %vm483_vm12, %vm484_vm10  ;;  %vm529_vm1 = vweird.f32 %v2641_v60 }
 0x161   :  { %v608_v7 = vpop.f32.mrf.mxu3  ;;  %v480_v8 = vsub.f32 1.0, %v479_v61  ;;  %v667_v4 = vand.u32 2147483647, %v657_v9  ;;  %v670_v47 = vor.u32 1.1754944e-38, %v669_v33  ;;  %vm530_vm4 = vmor %vm528_vm3, %vm529_vm1 }
 0x162   :  { %v525_v3 = vsub.f32 1.0, %v524_v52  ;;  %v666_v59 = vsel %vm3148_vm13, %v2637_v20, %v662_v25  ;;  %v535_v20 = vor.u32 1.1754944e-38, %v534_v46 }
 0x163   :  { %v481_v22 = vmul.f32 %v2639_v32, %v480_v8  ;;  %v560_v8 = vadd.f32 %v3117_v6, %v3146_v12  ;;  %vm668_vm2 = vcmp.eq.f32.partialorder %v667_v4, 8.507059e+37  ;;  %v607_v6 = vadd.f32 %v606_v17, %v3044_v53 }
 0x164   :  { %v526_v27 = vmul.f32 %v2641_v60, %v525_v3  ;;  %v671_v51 = vsel %vm668_vm2, %v670_v47, %v666_v59 }
 0x165   :  { %v482_v61 = vadd.f32 %v2639_v32, %v481_v22  ;;  %v2643_v7 = vpop.eup %2642 }
 0x166   :  { %v678_v3 = vadd.f32 1.0, %v2643_v7  ;;  %v527_v1 = vadd.f32 %v2641_v60, %v526_v27 }
 0x167   :  { %v486_v62 = vsel %vm485_vm14, %v2639_v32, %v482_v61 }
 0x168   :  { %v491_v22 = vsel %vm488_vm15, %v490_v48, %v486_v62  ;;  %2644 = vrcp.f32 %v678_v3  ;;  %v531_v23 = vsel %vm530_vm4, %v2641_v60, %v527_v1  ;;  %v695_v48 = vmul.f32 %v671_v51, %v607_v6 }
 0x169   :  { %v563_v9 = vmul.f32 %v491_v22, %v391_v49  ;;  %v694_v49 = vadd.f32 %v3097_v50, %v3049_v57  ;;  %v536_v27 = vsel %vm533_vm5, %v535_v20, %v531_v23  ;;  %v690_v47 = vand.u32 2147483648, %v678_v3 }
 0x16a   :  { %v566_v4 = vsub.f32 1.0, %v536_v27  ;;  %v688_v7 = vand.u32 2147483647, %v678_v3  ;;  %v568_v1 = vmul.f32 0.0, %v536_v27  ;;  %vm684_vm7 = vweird.f32 %v678_v3 }
 0x16b   :  { %v564_v32 = vadd.f32 %v563_v9, %v560_v8  ;;  %v696_v61 = vadd.f32 %v695_v48, %v694_v49  ;;  %v691_v8 = vor.u32 1.1754944e-38, %v690_v47 }
 0x16c   :  { %vm689_vm9 = vcmp.eq.f32.partialorder %v688_v7, 8.507059e+37 }
 0x16d   :  { %2646 = vtanh.f32 %v564_v32 }
 0x16e   :  { %v2645_v25 = vpop.eup %2644  ;;  %2648 = vtanh.f32 %v696_v61 }
 0x16f   :  { %v680_v33 = vmul.f32 %v2645_v25, %v678_v3  ;;  %vm685_vm6 = vweird.f32 %v2645_v25 }
 0x170   :  { %vm686_vm8 = vmor %vm684_vm7, %vm685_vm6 }
 0x171   :  { %v681_v52 = vsub.f32 1.0, %v680_v33 }
 0x173   :  { %v2647_v56 = vpop.eup %2646  ;;  %v682_v62 = vmul.f32 %v2645_v25, %v681_v52 }
 0x174   :  { %v567_v17 = vmul.f32 %v2647_v56, %v566_v4  ;;  %v2649_v3 = vpop.eup %2648 }
 0x175   :  { %v683_v46 = vadd.f32 %v2645_v25, %v682_v62 }
 0x176   :  { %v3164_v60 = vadd.f32 %v568_v1, %v567_v17 }
 0x177   :  { %v687_v50 = vsel %vm686_vm8, %v2645_v25, %v683_v46 }
 0x178   :  { %v3168_v59 = vpack.c.bf16 %v3164_v60, %v3164_v60  ;;  %v692_v22 = vsel %vm689_vm9, %v691_v8, %v687_v50 }
 0x179   :  { %v698_v9 = vsub.f32 1.0, %v692_v22  ;;  %v700_v51 = vmul.f32 %v692_v22, %v3053_v30 }
 0x17a   :  { %2485 = vmatmul.msk.bf16.vlgmr.msrb.gmra.mxu0 %vm117_vm0, %v3168_v59  ;;  %2486 = vmatmul.msk.bf16.vlgmr.msrb.gmra.mxu1 %vm117_vm0, %v3168_v59 }
 0x17b   :  { %2487 = vmatmul.msk.bf16.vlgmr.msrb.gmra.mxu2 %vm117_vm0, %v3168_v59  ;;  %825 = vmatpush.bf16.msrb.mxu0 %v2916_v11  ;;  %v699_v55 = vmul.f32 %v2649_v3, %v698_v9 }
 0x17c   :  { %841 = vmatpush.bf16.msrb.mxu1 %v2973_v24  ;;  %854 = vmatpush.bf16.msrb.mxu2 %v2956_v18 }
 0x17d   :  { %v3180_v6 = vadd.f32 %v700_v51, %v699_v55 }
 0x17f   :  { %826 = vmatpush.bf16.msrb.mxu0 %v2935_v15  ;;  %v702_v32 = vpack.c.bf16 %v3180_v6, %v3180_v6 }
 0x180   :  { %842 = vmatpush.bf16.msrb.mxu1 %v2985_v28  ;;  %855 = vmatpush.bf16.msrb.mxu2 %v2990_v29 }
 0x181   :  { %2490 = vmatmul.msk.bf16.vlgmr.msra.gmra.mxu3 %vm117_vm0, %v702_v32 }
 0x182   :  { %867 = vmatpush.bf16.msra.mxu3 %v2922_v13 }
 0x186   :  { %868 = vmatpush.bf16.msra.mxu3 %v2980_v26 }
 0x18a   :  { %2492 = vmatmul.msk.bf16.vlgmr.msra.gmra.mxu0 %vm117_vm0, %v702_v32  ;;  %2494 = vmatmul.msk.bf16.vlgmr.msra.gmra.mxu1 %vm117_vm0, %v702_v32 }
 0x18b   :  { %2495 = vmatmul.msk.bf16.vlgmr.msra.gmra.mxu2 %vm117_vm0, %v702_v32  ;;  %934 = vmatpush.bf16.msra.mxu0 %v2927_v14 }
 0x18c   :  { %967 = vmatpush.bf16.msra.mxu1 %v3013_v38  ;;  %1000 = vmatpush.bf16.msra.mxu2 %v3018_v39 }
 0x18f   :  { %935 = vmatpush.bf16.msra.mxu0 %v2999_v31 }
 0x190   :  { %968 = vmatpush.bf16.msra.mxu1 %v3028_v42  ;;  %1001 = vmatpush.bf16.msra.mxu2 %v3033_v43 }
 0x191   :  { %2496 = vmatmul.msk.bf16.vlgmr.msrb.gmra.mxu3 %vm117_vm0, %v702_v32 }
 0x192   :  { %1021 = vmatpush.bf16.msrb.mxu3 %v2872_v0 }
 0x196   :  { %1022 = vmatpush.bf16.msrb.mxu3 %v2881_v2 }
 0x19a   :  { %2497 = vmatmul.msk.bf16.vlgmr.msrb.gmra.mxu0 %vm117_vm0, %v702_v32 }
 0x19b   :  { %1034 = vmatpush.bf16.msrb.mxu0 %v2892_v5 }
 0x19f   :  { %1035 = vmatpush.bf16.msrb.mxu0 %v2911_v10 }
 0x1f7   :  { %v622_v30 = vpop.f32.mrf.mxu0  ;;  %v635_v23 = vpop.f32.mrf.mxu1 }
 0x1fe   :  { %v648_v20 = vpop.f32.mrf.mxu2 }
 0x1ff   :  { %v624_v48 = vpop.f32.mrf.mxu0  ;;  %v637_v25 = vpop.f32.mrf.mxu1 }
 0x204   :  { %v715_v49 = vpop.f32.mrf.mxu3 }
 0x205   :  { %v716_v27 = vadd.f32 %v715_v49, %v622_v30 }
 0x206   :  { %v650_v33 = vpop.f32.mrf.mxu2 }
 0x207   :  { %v748_v61 = vpop.f32.mrf.mxu0  ;;  %v781_v52 = vpop.f32.mrf.mxu1  ;;  %v719_v4 = vadd.f32 %v716_v27, %v3123_v16 }
 0x208   :  { %v749_v56 = vadd.f32 %v748_v61, %v635_v23 }
 0x209   :  { %v2491_v47 = vmul.f32 -1.442695, %v719_v4 }
 0x20a   :  { %v752_v7 = vadd.f32 %v749_v56, %v3128_v19 }
 0x20b   :  { %2650 = vpow2.f32 %v2491_v47 }
 0x20c   :  { %v2493_v62 = vmul.f32 -1.442695, %v752_v7  ;;  %v717_v17 = vpop.f32.mrf.mxu3 }
 0x20e   :  { %2652 = vpow2.f32 %v2493_v62  ;;  %v802_v1 = vpop.f32.mrf.mxu2 }
 0x20f   :  { %v874_v46 = vadd.f32 %v802_v1, %v3077_v36  ;;  %v750_v8 = vpop.f32.mrf.mxu0  ;;  %v783_v50 = vpop.f32.mrf.mxu1 }
 0x211   :  { %v875_v22 = vadd.f32 %v874_v46, %v2968_v21  ;;  %v2651_v9 = vpop.eup %2650 }
 0x212   :  { %v723_v3 = vadd.f32 1.0, %v2651_v9 }
 0x213   :  { %v2501_v55 = vmul.f32 -1.442695, %v875_v22 }
 0x214   :  { %v2653_v51 = vpop.eup %2652  ;;  %2654 = vrcp.f32 %v723_v3  ;;  %v815_v30 = vpop.f32.mrf.mxu3  ;;  %v735_v17 = vand.u32 2147483648, %v723_v3  ;;  %v733_v8 = vand.u32 2147483647, %v723_v3  ;;  %vm729_vm11 = vweird.f32 %v723_v3 }
 0x215   :  { %v756_v32 = vadd.f32 1.0, %v2653_v51  ;;  %2656 = vpow2.f32 %v2501_v55  ;;  %v895_v23 = vadd.f32 %v815_v30, %v3079_v37  ;;  %v649_v30 = vadd.f32 %v648_v20, %v3141_v34 }
 0x216   :  { %v804_v48 = vpop.f32.mrf.mxu2  ;;  %v736_v55 = vor.u32 1.1754944e-38, %v735_v17  ;;  %vm734_vm13 = vcmp.eq.f32.partialorder %v733_v8, 8.507059e+37 }
 0x217   :  { %2658 = vrcp.f32 %v756_v32  ;;  %v828_v25 = vpop.f32.mrf.mxu0  ;;  %v896_v49 = vadd.f32 %v895_v23, %v3008_v35  ;;  %v768_v23 = vand.u32 2147483648, %v756_v32  ;;  %vm762_vm15 = vweird.f32 %v756_v32 }
 0x219   :  { %v2502_v36 = vmul.f32 -1.442695, %v896_v49 }
 0x21a   :  { %v2655_v27 = vpop.eup %2654 }
 0x21b   :  { %v2657_v33 = vpop.eup %2656  ;;  %v725_v61 = vmul.f32 %v2655_v27, %v723_v3  ;;  %2660 = vpow2.f32 %v2502_v36  ;;  %vm730_vm10 = vweird.f32 %v2655_v27 }
 0x21c   :  { %v879_v56 = vadd.f32 1.0, %v2657_v33  ;;  %v817_v47 = vpop.f32.mrf.mxu3  ;;  %vm731_vm12 = vmor %vm729_vm11, %vm730_vm10 }
 0x21d   :  { %v2659_v4 = vpop.eup %2658  ;;  %v726_v62 = vsub.f32 1.0, %v725_v61  ;;  %v782_v61 = vadd.f32 %v781_v52, %v3146_v12 }
 0x21e   :  { %v758_v7 = vmul.f32 %v2659_v4, %v756_v32  ;;  %2662 = vrcp.f32 %v879_v56  ;;  %vm763_vm14 = vweird.f32 %v2659_v4  ;;  %v891_v20 = vand.u32 2147483648, %v879_v56 }
 0x21f   :  { %v830_v1 = vpop.f32.mrf.mxu0  ;;  %v727_v37 = vmul.f32 %v2655_v27, %v726_v62  ;;  %v766_v62 = vand.u32 2147483647, %v756_v32  ;;  %vm764_vm1 = vmor %vm762_vm15, %vm763_vm14  ;;  %vm885_vm4 = vweird.f32 %v879_v56  ;;  %v829_v32 = vadd.f32 %v828_v25, %v3044_v53 }
 0x220   :  { %v759_v46 = vsub.f32 1.0, %v758_v7  ;;  %v892_v52 = vor.u32 1.1754944e-38, %v891_v20 }
 0x221   :  { %v2661_v50 = vpop.eup %2660  ;;  %v728_v9 = vadd.f32 %v2655_v27, %v727_v37  ;;  %v889_v37 = vand.u32 2147483647, %v879_v56  ;;  %vm767_vm3 = vcmp.eq.f32.partialorder %v766_v62, 8.507059e+37 }
 0x222   :  { %v760_v22 = vmul.f32 %v2659_v4, %v759_v46  ;;  %v900_v51 = vadd.f32 1.0, %v2661_v50  ;;  %v769_v46 = vor.u32 1.1754944e-38, %v768_v23 }
 0x223   :  { %v732_v48 = vsel %vm731_vm12, %v2655_v27, %v728_v9  ;;  %vm890_vm6 = vcmp.eq.f32.partialorder %v889_v37, 8.507059e+37 }
 0x224   :  { %v2663_v49 = vpop.eup %2662  ;;  %v737_v36 = vsel %vm734_vm13, %v736_v55, %v732_v48  ;;  %v761_v33 = vadd.f32 %v2659_v4, %v760_v22  ;;  %2664 = vrcp.f32 %v900_v51  ;;  %v910_v62 = vand.u32 2147483647, %v900_v51 }
 0x225   :  { %v785_v47 = vmul.f32 %v737_v36, %v649_v30  ;;  %v881_v7 = vmul.f32 %v2663_v49, %v879_v56  ;;  %vm886_vm2 = vweird.f32 %v2663_v49  ;;  %vm906_vm8 = vweird.f32 %v900_v51 }
 0x226   :  { %v765_v1 = vsel %vm764_vm1, %v2659_v4, %v761_v33  ;;  %vm887_vm5 = vmor %vm885_vm4, %vm886_vm2  ;;  %v916_v4 = vadd.f32 %v3103_v54, %v3049_v57  ;;  %vm911_vm10 = vcmp.eq.f32.partialorder %v910_v62, 8.507059e+37 }
 0x227   :  { %v786_v3 = vadd.f32 %v785_v47, %v782_v61  ;;  %v882_v17 = vsub.f32 1.0, %v881_v7  ;;  %v770_v50 = vsel %vm767_vm3, %v769_v46, %v765_v1  ;;  %v912_v61 = vand.u32 2147483648, %v900_v51 }
 0x228   :  { %v788_v23 = vsub.f32 1.0, %v770_v50  ;;  %v790_v56 = vmul.f32 %v770_v50, %v3164_v60 }
 0x229   :  { %2666 = vtanh.f32 %v786_v3  ;;  %v883_v27 = vmul.f32 %v2663_v49, %v882_v17 }
 0x22a   :  { %v2665_v8 = vpop.eup %2664 }
 0x22b   :  { %v902_v22 = vmul.f32 %v2665_v8, %v900_v51  ;;  %v884_v9 = vadd.f32 %v2663_v49, %v883_v27  ;;  %vm907_vm7 = vweird.f32 %v2665_v8 }
 0x22c   :  { %vm908_vm9 = vmor %vm906_vm8, %vm907_vm7 }
 0x22d   :  { %v903_v55 = vsub.f32 1.0, %v902_v22  ;;  %v888_v30 = vsel %vm887_vm5, %v2663_v49, %v884_v9  ;;  %v913_v49 = vor.u32 1.1754944e-38, %v912_v61 }
 0x22e   :  { %v893_v48 = vsel %vm890_vm6, %v892_v52, %v888_v30 }
 0x22f   :  { %v2667_v36 = vpop.eup %2666  ;;  %v904_v33 = vmul.f32 %v2665_v8, %v903_v55  ;;  %v917_v47 = vmul.f32 %v893_v48, %v829_v32 }
 0x230   :  { %v789_v7 = vmul.f32 %v2667_v36, %v788_v23 }
 0x231   :  { %v905_v3 = vadd.f32 %v2665_v8, %v904_v33  ;;  %v918_v17 = vadd.f32 %v917_v47, %v916_v4 }
 0x232   :  { %v3217_v25 = vadd.f32 %v790_v56, %v789_v7 }
 0x233   :  { %v909_v1 = vsel %vm908_vm9, %v2665_v8, %v905_v3  ;;  %2668 = vtanh.f32 %v918_v17 }
 0x234   :  { %v3221_v54 = vpack.c.bf16 %v3217_v25, %v3217_v25  ;;  %v914_v46 = vsel %vm911_vm10, %v913_v49, %v909_v1 }
 0x235   :  { %v920_v60 = vsub.f32 1.0, %v914_v46  ;;  %v922_v27 = vmul.f32 %v914_v46, %v3180_v6 }
 0x236   :  { %2498 = vmatmul.msk.bf16.vlgmr.msrb.gmra.mxu1 %vm117_vm0, %v3221_v54  ;;  %2499 = vmatmul.msk.bf16.vlgmr.msrb.gmra.mxu2 %vm117_vm0, %v3221_v54 }
 0x237   :  { %2500 = vmatmul.msk.bf16.vlgmr.msra.gmra.mxu3 %vm117_vm0, %v3221_v54  ;;  %1047 = vmatpush.bf16.msrb.mxu1 %v2916_v11 }
 0x238   :  { %1063 = vmatpush.bf16.msrb.mxu2 %v2973_v24  ;;  %1076 = vmatpush.bf16.msra.mxu3 %v2956_v18 }
 0x239   :  { %v2669_v51 = vpop.eup %2668 }
 0x23a   :  { %v921_v20 = vmul.f32 %v2669_v51, %v920_v60 }
 0x23b   :  { %1048 = vmatpush.bf16.msrb.mxu1 %v2935_v15 }
 0x23c   :  { %v3234_v37 = vadd.f32 %v922_v27, %v921_v20  ;;  %1064 = vmatpush.bf16.msrb.mxu2 %v2985_v28  ;;  %1077 = vmatpush.bf16.msra.mxu3 %v2990_v29 }
 0x23e   :  { %v924_v11 = vpack.c.bf16 %v3234_v37, %v3234_v37 }
 0x240   :  { %2503 = vmatmul.msk.bf16.vlgmr.msra.gmra.mxu0 %vm117_vm0, %v924_v11 }
 0x241   :  { %1089 = vmatpush.bf16.msra.mxu0 %v2922_v13 }
 0x245   :  { %1090 = vmatpush.bf16.msra.mxu0 %v2980_v26 }
 0x246   :  { %2505 = vmatmul.msk.bf16.vlgmr.msra.gmra.mxu1 %vm117_vm0, %v924_v11  ;;  %2507 = vmatmul.msk.bf16.vlgmr.msra.gmra.mxu2 %vm117_vm0, %v924_v11 }
 0x247   :  { %2508 = vmatmul.msk.bf16.vlgmr.msrb.gmra.mxu3 %vm117_vm0, %v924_v11  ;;  %1156 = vmatpush.bf16.msra.mxu1 %v2927_v14 }
 0x248   :  { %1189 = vmatpush.bf16.msra.mxu2 %v3013_v38  ;;  %1222 = vmatpush.bf16.msrb.mxu3 %v3018_v39 }
 0x24b   :  { %1157 = vmatpush.bf16.msra.mxu1 %v2999_v31 }
 0x24c   :  { %1190 = vmatpush.bf16.msra.mxu2 %v3028_v42  ;;  %1223 = vmatpush.bf16.msrb.mxu3 %v3033_v43 }
 0x250   :  { %2509 = vmatmul.msk.bf16.vlgmr.msrb.gmra.mxu0 %vm117_vm0, %v924_v11 }
 0x251   :  { %1243 = vmatpush.bf16.msrb.mxu0 %v2872_v0 }
 0x255   :  { %1244 = vmatpush.bf16.msrb.mxu0 %v2881_v2 }
 0x256   :  { %2510 = vmatmul.msk.bf16.vlgmr.msrb.gmra.mxu1 %vm117_vm0, %v924_v11 }
 0x257   :  { %1256 = vmatpush.bf16.msrb.mxu1 %v2892_v5 }
 0x25b   :  { %1257 = vmatpush.bf16.msrb.mxu1 %v2911_v10 }
 0x2b3   :  { %v844_v13 = vpop.f32.mrf.mxu1 }
 0x2b9   :  { %v857_v14 = vpop.f32.mrf.mxu2 }
 0x2ba   :  { %v870_v15 = vpop.f32.mrf.mxu3 }
 0x2bb   :  { %v846_v18 = vpop.f32.mrf.mxu1  ;;  %v871_v27 = vadd.f32 %v870_v15, %v3141_v34 }
 0x2bd   :  { %v937_v24 = vpop.f32.mrf.mxu0 }
 0x2be   :  { %v938_v26 = vadd.f32 %v937_v24, %v844_v13 }
 0x2c0   :  { %v941_v28 = vadd.f32 %v938_v26, %v3123_v16 }
 0x2c1   :  { %v859_v29 = vpop.f32.mrf.mxu2 }
 0x2c2   :  { %v2504_v31 = vmul.f32 -1.442695, %v941_v28  ;;  %v872_v38 = vpop.f32.mrf.mxu3 }
 0x2c3   :  { %v970_v0 = vpop.f32.mrf.mxu1 }
 0x2c4   :  { %2670 = vpow2.f32 %v2504_v31  ;;  %v971_v2 = vadd.f32 %v970_v0, %v857_v14 }
 0x2c5   :  { %v939_v39 = vpop.f32.mrf.mxu0 }
 0x2c6   :  { %v974_v42 = vadd.f32 %v971_v2, %v3128_v19 }
 0x2c8   :  { %v2506_v5 = vmul.f32 -1.442695, %v974_v42 }
 0x2c9   :  { %v1003_v43 = vpop.f32.mrf.mxu2 }
 0x2ca   :  { %v2671_v10 = vpop.eup %2670  ;;  %2672 = vpow2.f32 %v2506_v5  ;;  %v1024_v6 = vpop.f32.mrf.mxu3  ;;  %v1004_v18 = vadd.f32 %v1003_v43, %v3146_v12 }
 0x2cb   :  { %v945_v8 = vadd.f32 1.0, %v2671_v10  ;;  %v1096_v50 = vadd.f32 %v1024_v6, %v3081_v40  ;;  %v972_v22 = vpop.f32.mrf.mxu1 }
 0x2cd   :  { %2674 = vrcp.f32 %v945_v8  ;;  %v1037_v9 = vpop.f32.mrf.mxu0  ;;  %v1097_v52 = vadd.f32 %v1096_v50, %v2968_v21  ;;  %v957_v62 = vand.u32 2147483648, %v945_v8  ;;  %vm951_vm12 = vweird.f32 %v945_v8 }
 0x2ce   :  { %v1117_v55 = vadd.f32 %v1037_v9, %v3083_v41  ;;  %v955_v41 = vand.u32 2147483647, %v945_v8 }
 0x2cf   :  { %v2514_v30 = vmul.f32 -1.442695, %v1097_v52  ;;  %v958_v60 = vor.u32 1.1754944e-38, %v957_v62 }
 0x2d0   :  { %v2673_v32 = vpop.eup %2672  ;;  %v1118_v4 = vadd.f32 %v1117_v55, %v3008_v35  ;;  %vm956_vm14 = vcmp.eq.f32.partialorder %v955_v41, 8.507059e+37  ;;  %v3304_v41 = vld [vmem:[%s3759_s1 + $0x98] sm:$0xff] }
 0x2d1   :  { %v978_v23 = vadd.f32 1.0, %v2673_v32  ;;  %v1005_v48 = vpop.f32.mrf.mxu2  ;;  %2676 = vpow2.f32 %v2514_v30 }
 0x2d2   :  { %v2515_v36 = vmul.f32 -1.442695, %v1118_v4  ;;  %v1026_v33 = vpop.f32.mrf.mxu3 }
 0x2d3   :  { %v2675_v61 = vpop.eup %2674  ;;  %2678 = vrcp.f32 %v978_v23  ;;  %v1050_v47 = vpop.f32.mrf.mxu1  ;;  %v990_v26 = vand.u32 2147483648, %v978_v23  ;;  %v988_v29 = vand.u32 2147483647, %v978_v23  ;;  %vm984_vm1 = vweird.f32 %v978_v23 }
 0x2d4   :  { %v947_v40 = vmul.f32 %v2675_v61, %v945_v8  ;;  %2680 = vpow2.f32 %v2515_v36  ;;  %vm952_vm11 = vweird.f32 %v2675_v61  ;;  %v1051_v36 = vadd.f32 %v1050_v47, %v3044_v53 }
 0x2d5   :  { %v1039_v7 = vpop.f32.mrf.mxu0  ;;  %vm953_vm13 = vmor %vm951_vm12, %vm952_vm11  ;;  %v991_v15 = vor.u32 1.1754944e-38, %v990_v26  ;;  %vm989_vm3 = vcmp.eq.f32.partialorder %v988_v29, 8.507059e+37  ;;  %v3367_v26 = vld [vmem:[%s3759_s1 + $0xb0] sm:$0xff] }
 0x2d6   :  { %v948_v56 = vsub.f32 1.0, %v947_v40  ;;  %v1138_v7 = vadd.f32 %v3107_v58, %v3049_v57  ;;  %v3298_v58 = vld [vmem:[%s3759_s1 + $0x58] sm:$0xff]  ;;  %v3379_v29 = vld [vmem:[%s3759_s1 + $0x70] sm:$0xff] }
 0x2d7   :  { %v2677_v21 = vpop.eup %2676 }
 0x2d8   :  { %v949_v3 = vmul.f32 %v2675_v61, %v948_v56  ;;  %v1101_v49 = vadd.f32 1.0, %v2677_v21 }
 0x2d9   :  { %v2679_v17 = vpop.eup %2678 }
 0x2da   :  { %v2681_v35 = vpop.eup %2680  ;;  %v980_v1 = vmul.f32 %v2679_v17, %v978_v23  ;;  %v950_v46 = vadd.f32 %v2675_v61, %v949_v3  ;;  %2682 = vrcp.f32 %v1101_v49  ;;  %vm985_vm15 = vweird.f32 %v2679_v17 }
 0x2db   :  { %v3264_v51 = vadd.f32 1.0, %v2681_v35  ;;  %v1052_v20 = vpop.f32.mrf.mxu1  ;;  %vm986_vm2 = vmor %vm984_vm1, %vm985_vm15  ;;  %v1113_v8 = vand.u32 2147483648, %v1101_v49  ;;  %v1111_v9 = vand.u32 2147483647, %v1101_v49  ;;  %vm1107_vm5 = vweird.f32 %v1101_v49  ;;  %v3316_v35 = vld [vmem:[%s3759_s1 + $0x50] sm:$0xff] }
 0x2dc   :  { %v981_v11 = vsub.f32 1.0, %v980_v1  ;;  %v954_v13 = vsel %vm953_vm13, %v2675_v61, %v950_v46  ;;  %v3322_v1 = vld [vmem:[%s3759_s1 + $0x90] sm:$0xff]  ;;  %v3328_v46 = vld [vmem:[%s3759_s1 + $0xa0] sm:$0xff] }
 0x2dd   :  { %v959_v14 = vsel %vm956_vm14, %v958_v60, %v954_v13  ;;  %2684 = vrcp.f32 %v3264_v51  ;;  %v1114_v23 = vor.u32 1.1754944e-38, %v1113_v8  ;;  %vm1112_vm7 = vcmp.eq.f32.partialorder %v1111_v9, 8.507059e+37 }
 0x2de   :  { %v982_v24 = vmul.f32 %v2679_v17, %v981_v11  ;;  %v1007_v28 = vmul.f32 %v959_v14, %v871_v27  ;;  %v1134_v56 = vand.u32 2147483648, %v3264_v51  ;;  %vm1128_vm9 = vweird.f32 %v3264_v51  ;;  %v3343_v14 = vld [vmem:[%s3759_s1 + $0xb8] sm:$0xff] }
 0x2df   :  { %v1132_v21 = vand.u32 2147483647, %v3264_v51 }
 0x2e0   :  { %v983_v31 = vadd.f32 %v2679_v17, %v982_v24  ;;  %v1008_v38 = vadd.f32 %v1007_v28, %v1004_v18  ;;  %v2683_v0 = vpop.eup %2682  ;;  %v1135_v3 = vor.u32 1.1754944e-38, %v1134_v56  ;;  %v3355_v18 = vld [vmem:[%s3759_s1 + $0x78] sm:$0xff]  ;;  %v3361_v24 = vld [vmem:[%s3759_s1 + $0x88] sm:$0xff]  ;;  %v3373_v28 = vld [vmem:[%s3759_s1 + $0x60] sm:$0xff] }
 0x2e1   :  { %v1103_v39 = vmul.f32 %v2683_v0, %v1101_v49  ;;  %vm1108_vm4 = vweird.f32 %v2683_v0  ;;  %vm1133_vm11 = vcmp.eq.f32.partialorder %v1132_v21, 8.507059e+37 }
 0x2e2   :  { %v987_v2 = vsel %vm986_vm2, %v2679_v17, %v983_v31  ;;  %2686 = vtanh.f32 %v1008_v38  ;;  %vm1109_vm6 = vmor %vm1107_vm5, %vm1108_vm4  ;;  %v3310_v17 = vld [vmem:[%s3759_s1 + $0xa8] sm:$0xff]  ;;  %v3385_v31 = vld [vmem:[%s3759_s1 + $0x80] sm:$0xff] }
 0x2e3   :  { %v2685_v42 = vpop.eup %2684  ;;  %v992_v5 = vsel %vm989_vm3, %v991_v15, %v987_v2  ;;  %v1104_v10 = vsub.f32 1.0, %v1103_v39  ;;  %v3393_v38 = vld [vmem:[%s3759_s1 + $0x38] sm:$0xff]  ;;  %v3405_v2 = vld [vmem:[%s3759_s1 + $0x30] sm:$0xff]  ;;  %v3411_v15 = vld [vmem:[%s3759_s1 + $0x40] sm:$0xff] }
 0x2e4   :  { %v1124_v43 = vmul.f32 %v2685_v42, %v3264_v51  ;;  %v1010_v50 = vsub.f32 1.0, %v992_v5  ;;  %v1012_v30 = vmul.f32 %v992_v5, %v3217_v25  ;;  %vm1129_vm8 = vweird.f32 %v2685_v42 }
 0x2e5   :  { %v1105_v22 = vmul.f32 %v2683_v0, %v1104_v10  ;;  %vm3283_vm10 = vmor %vm1128_vm9, %vm1129_vm8 }
 0x2e6   :  { %v1125_v6 = vsub.f32 1.0, %v1124_v43 }
 0x2e7   :  { %v1106_v4 = vadd.f32 %v2683_v0, %v1105_v22 }
 0x2e8   :  { %v2687_v52 = vpop.eup %2686  ;;  %v1126_v55 = vmul.f32 %v2685_v42, %v1125_v6 }
 0x2e9   :  { %v1011_v32 = vmul.f32 %v2687_v52, %v1010_v50  ;;  %v1110_v33 = vsel %vm1109_vm6, %v2683_v0, %v1106_v4  ;;  %v3399_v0 = vld [vmem:[%s3759_s1 + $0x48] sm:$0xff] }
 0x2ea   :  { %v1115_v61 = vsel %vm1112_vm7, %v1114_v23, %v1110_v33  ;;  %v1127_v40 = vadd.f32 %v2685_v42, %v1126_v55 }
 0x2eb   :  { %v3271_v48 = vadd.f32 %v1012_v30, %v1011_v32  ;;  %v1139_v62 = vmul.f32 %v1115_v61, %v1051_v36  ;;  %v3419_v32 = vld [vmem:[%s3761_s3] sm:$0xff] }
 0x2ec   :  { %v1131_v57 = vsel %vm3283_vm10, %v2685_v42, %v1127_v40 }
 0x2ed   :  { %v3279_v25 = vpack.c.bf16 %v3271_v48, %v3271_v48  ;;  %v1140_v47 = vadd.f32 %v1139_v62, %v1138_v7  ;;  %v1136_v49 = vsel %vm1133_vm11, %v1135_v3, %v1131_v57 }
 0x2ee   :  { %v1142_v60 = vsub.f32 1.0, %v1136_v49  ;;  %v1144_v27 = vmul.f32 %v1136_v49, %v3234_v37  ;;  %v3349_v37 = vld [vmem:[%s3759_s1 + $0x68] sm:$0xff] }
 0x2ef   :  { %2511 = vmatmul.msk.bf16.vlgmr.msrb.gmra.mxu2 %vm117_vm0, %v3279_v25  ;;  %2512 = vmatmul.msk.bf16.vlgmr.msra.gmra.mxu3 %vm117_vm0, %v3279_v25  ;;  %2688 = vtanh.f32 %v1140_v47  ;;  %v3427_v49 = vld [vmem:[%s3761_s3 + $0x8] sm:$0xff] }
 0x2f0   :  { %2513 = vmatmul.msk.bf16.vlgmr.msra.gmra.mxu0 %vm117_vm0, %v3279_v25  ;;  %1269 = vmatpush.bf16.msrb.mxu2 %v3298_v58 }
 0x2f1   :  { %1285 = vmatpush.bf16.msra.mxu3 %v3304_v41  ;;  %1298 = vmatpush.bf16.msra.mxu0 %v3310_v17 }
 0x2f4   :  { %1270 = vmatpush.bf16.msrb.mxu2 %v3316_v35 }
 0x2f5   :  { %1286 = vmatpush.bf16.msra.mxu3 %v3322_v1  ;;  %1299 = vmatpush.bf16.msra.mxu0 %v3328_v46  ;;  %v2689_v51 = vpop.eup %2688 }
 0x2f6   :  { %v1143_v20 = vmul.f32 %v2689_v51, %v1142_v60 }
 0x2f8   :  { %v3332_v11 = vadd.f32 %v1144_v27, %v1143_v20 }
 0x2fa   :  { %v1146_v13 = vpack.c.bf16 %v3332_v11, %v3332_v11 }
 0x2fc   :  { %2516 = vmatmul.msk.bf16.vlgmr.msra.gmra.mxu1 %vm117_vm0, %v1146_v13 }
 0x2fd   :  { %1311 = vmatpush.bf16.msra.mxu1 %v3343_v14 }
 0x2ff   :  { %2518 = vmatmul.msk.bf16.vlgmr.msra.gmra.mxu2 %vm117_vm0, %v1146_v13  ;;  %2520 = vmatmul.msk.bf16.vlgmr.msrb.gmra.mxu3 %vm117_vm0, %v1146_v13 }
 0x300   :  { %2521 = vmatmul.msk.bf16.vlgmr.msrb.gmra.mxu0 %vm117_vm0, %v1146_v13  ;;  %1378 = vmatpush.bf16.msra.mxu2 %v3349_v37 }
 0x301   :  { %1411 = vmatpush.bf16.msrb.mxu3 %v3355_v18  ;;  %1444 = vmatpush.bf16.msrb.mxu0 %v3361_v24 }
 0x302   :  { %1312 = vmatpush.bf16.msra.mxu1 %v3367_v26 }
 0x304   :  { %1379 = vmatpush.bf16.msra.mxu2 %v3373_v28 }
 0x305   :  { %1412 = vmatpush.bf16.msrb.mxu3 %v3379_v29  ;;  %1445 = vmatpush.bf16.msrb.mxu0 %v3385_v31 }
 0x30c   :  { %2522 = vmatmul.msk.bf16.vlgmr.msrb.gmra.mxu1 %vm117_vm0, %v1146_v13 }
 0x30d   :  { %1465 = vmatpush.bf16.msrb.mxu1 %v3393_v38 }
 0x30f   :  { %2523 = vmatmul.msk.bf16.vlgmr.msrb.gmra.mxu2 %vm117_vm0, %v1146_v13 }
 0x310   :  { %1478 = vmatpush.bf16.msrb.mxu2 %v3399_v0 }
 0x311   :  { %1466 = vmatpush.bf16.msrb.mxu1 %v3405_v2 }
 0x314   :  { %1479 = vmatpush.bf16.msrb.mxu2 %v3411_v15 }
 0x36d   :  { %v1092_v39 = vpop.f32.mrf.mxu0 }
 0x372   :  { %v1066_v42 = vpop.f32.mrf.mxu2  ;;  %v1079_v5 = vpop.f32.mrf.mxu3 }
 0x375   :  { %v1094_v43 = vpop.f32.mrf.mxu0 }
 0x379   :  { %v1159_v8 = vpop.f32.mrf.mxu1 }
 0x37a   :  { %v1068_v10 = vpop.f32.mrf.mxu2  ;;  %v1081_v6 = vpop.f32.mrf.mxu3  ;;  %v1160_v50 = vadd.f32 %v1159_v8, %v1066_v42 }
 0x37c   :  { %v1163_v9 = vadd.f32 %v1160_v50, %v3123_v16 }
 0x37d   :  { %v1246_v22 = vpop.f32.mrf.mxu0 }
 0x37e   :  { %v1318_v52 = vadd.f32 %v1246_v22, %v3085_v44  ;;  %v2517_v55 = vmul.f32 -1.442695, %v1163_v9  ;;  %v1093_v9 = vadd.f32 %v1092_v39, %v3141_v34 }
 0x380   :  { %v1319_v30 = vadd.f32 %v3419_v32, %v1318_v52  ;;  %2690 = vpow2.f32 %v2517_v55 }
 0x381   :  { %v1161_v33 = vpop.f32.mrf.mxu1 }
 0x382   :  { %v2527_v4 = vmul.f32 -1.442695, %v1319_v30  ;;  %v1192_v23 = vpop.f32.mrf.mxu2  ;;  %v1225_v36 = vpop.f32.mrf.mxu3 }
 0x383   :  { %v1193_v61 = vadd.f32 %v1192_v23, %v1079_v5 }
 0x384   :  { %2692 = vpow2.f32 %v2527_v4 }
 0x385   :  { %v1196_v40 = vadd.f32 %v1193_v61, %v3128_v19  ;;  %v1248_v16 = vpop.f32.mrf.mxu0 }
 0x386   :  { %v2691_v44 = vpop.eup %2690  ;;  %v1226_v16 = vadd.f32 %v1225_v36, %v3146_v12  ;;  %v3435_v36 = vld [vmem:[%s3761_s3 + $0x18] sm:$0xff] }
 0x387   :  { %v2519_v7 = vmul.f32 -1.442695, %v1196_v40  ;;  %v1167_v56 = vadd.f32 1.0, %v2691_v44 }
 0x389   :  { %2694 = vpow2.f32 %v2519_v7  ;;  %v1259_v57 = vpop.f32.mrf.mxu1  ;;  %v1179_v6 = vand.u32 2147483648, %v1167_v56  ;;  %v1177_v50 = vand.u32 2147483647, %v1167_v56  ;;  %vm1173_vm13 = vweird.f32 %v1167_v56 }
 0x38a   :  { %v2693_v62 = vpop.eup %2692  ;;  %v1194_v21 = vpop.f32.mrf.mxu2  ;;  %2696 = vrcp.f32 %v1167_v56  ;;  %v1339_v3 = vadd.f32 %v1259_v57, %v3087_v45 }
 0x38b   :  { %v1227_v53 = vpop.f32.mrf.mxu3  ;;  %v1323_v47 = vadd.f32 1.0, %v2693_v62  ;;  %v1180_v40 = vor.u32 1.1754944e-38, %v1179_v6  ;;  %vm1178_vm1 = vcmp.eq.f32.partialorder %v1177_v50, 8.507059e+37 }
 0x38c   :  { %v1340_v19 = vadd.f32 %v3427_v49, %v1339_v3 }
 0x38d   :  { %2698 = vrcp.f32 %v1323_v47  ;;  %v1333_v52 = vand.u32 2147483647, %v1323_v47  ;;  %v1335_v23 = vand.u32 2147483648, %v1323_v47  ;;  %vm1329_vm2 = vweird.f32 %v1323_v47 }
 0x38e   :  { %v2528_v20 = vmul.f32 -1.442695, %v1340_v19 }
 0x38f   :  { %v2695_v60 = vpop.eup %2694  ;;  %vm1334_vm3 = vcmp.eq.f32.partialorder %v1333_v52, 8.507059e+37  ;;  %v1336_v57 = vor.u32 1.1754944e-38, %v1335_v23 }
 0x390   :  { %v1200_v51 = vadd.f32 1.0, %v2695_v60  ;;  %v2697_v27 = vpop.eup %2696 }
 0x391   :  { %v1169_v13 = vmul.f32 %v2697_v27, %v1167_v56  ;;  %v1261_v43 = vpop.f32.mrf.mxu1  ;;  %vm1174_vm12 = vweird.f32 %v2697_v27 }
 0x392   :  { %2700 = vrcp.f32 %v1200_v51  ;;  %v1272_v42 = vpop.f32.mrf.mxu2  ;;  %vm1175_vm14 = vmor %vm1173_vm13, %vm1174_vm12  ;;  %v1212_v39 = vand.u32 2147483648, %v1200_v51  ;;  %v1210_v19 = vand.u32 2147483647, %v1200_v51  ;;  %vm1206_vm6 = vweird.f32 %v1200_v51 }
 0x393   :  { %v2699_v5 = vpop.eup %2698  ;;  %2702 = vpow2.f32 %v2528_v20  ;;  %v1170_v10 = vsub.f32 1.0, %v1169_v13  ;;  %v1273_v20 = vadd.f32 %v3435_v36, %v1272_v42 }
 0x394   :  { %v1325_v45 = vmul.f32 %v2699_v5, %v1323_v47  ;;  %vm1330_vm15 = vweird.f32 %v2699_v5  ;;  %v1213_v13 = vor.u32 1.1754944e-38, %v1212_v39  ;;  %vm1211_vm8 = vcmp.eq.f32.partialorder %v1210_v19, 8.507059e+37 }
 0x395   :  { %v1171_v8 = vmul.f32 %v2697_v27, %v1170_v10  ;;  %vm1331_vm4 = vmor %vm1329_vm2, %vm1330_vm15 }
 0x396   :  { %v1326_v22 = vsub.f32 1.0, %v1325_v45 }
 0x397   :  { %v1172_v30 = vadd.f32 %v2697_v27, %v1171_v8 }
 0x398   :  { %v2701_v55 = vpop.eup %2700  ;;  %v1327_v4 = vmul.f32 %v2699_v5, %v1326_v22 }
 0x399   :  { %v2703_v33 = vpop.eup %2702  ;;  %v1202_v61 = vmul.f32 %v2701_v55, %v1200_v51  ;;  %v1176_v7 = vsel %vm1175_vm14, %v2697_v27, %v1172_v30  ;;  %vm1207_vm5 = vweird.f32 %v2701_v55 }
 0x39a   :  { %v1344_v44 = vadd.f32 1.0, %v2703_v33  ;;  %v1328_v62 = vadd.f32 %v2699_v5, %v1327_v4  ;;  %v1274_v21 = vpop.f32.mrf.mxu2  ;;  %v1181_v34 = vsel %vm1178_vm1, %v1180_v40, %v1176_v7  ;;  %vm1208_vm7 = vmor %vm1206_vm6, %vm1207_vm5 }
 0x39b   :  { %v1203_v53 = vsub.f32 1.0, %v1202_v61  ;;  %v1229_v56 = vmul.f32 %v1181_v34, %v1093_v9 }
 0x39c   :  { %2704 = vrcp.f32 %v1344_v44  ;;  %v1332_v60 = vsel %vm1331_vm4, %v2699_v5, %v1328_v62  ;;  %v3441_v5 = vld [vmem:[%s3761_s3 + $0x10] sm:$0xff]  ;;  %v1356_v52 = vand.u32 2147483648, %v1344_v44  ;;  %v1354_v30 = vand.u32 2147483647, %v1344_v44 }
 0x39d   :  { %v1204_v3 = vmul.f32 %v2701_v55, %v1203_v53  ;;  %v1230_v12 = vadd.f32 %v1229_v56, %v1226_v16  ;;  %v1337_v27 = vsel %vm1334_vm3, %v1336_v57, %v1332_v60  ;;  %v1360_v6 = vadd.f32 %v3441_v5, %v3109_v63 }
 0x39e   :  { %v1361_v43 = vmul.f32 %v1337_v27, %v1273_v20  ;;  %vm1350_vm10 = vweird.f32 %v1344_v44  ;;  %v1357_v63 = vor.u32 1.1754944e-38, %v1356_v52  ;;  %vm1355_vm12 = vcmp.eq.f32.partialorder %v1354_v30, 8.507059e+37  ;;  %v3492_v27 = vld [vmem:[%s3761_s3 + $0x20] sm:$0xff] }
 0x39f   :  { %v1205_v47 = vadd.f32 %v2701_v55, %v1204_v3  ;;  %2706 = vtanh.f32 %v1230_v12 }
 0x3a0   :  { %v1362_v51 = vadd.f32 %v1361_v43, %v1360_v6  ;;  %v3778_v43 = vld [vmem:[#allocation2_spill] sm:$0xff] }
 0x3a1   :  { %v1209_v10 = vsel %vm1208_vm7, %v2701_v55, %v1205_v47 }
 0x3a2   :  { %v2705_v45 = vpop.eup %2704  ;;  %v1214_v8 = vsel %vm1211_vm8, %v1213_v13, %v1209_v10  ;;  %2708 = vtanh.f32 %v1362_v51 }
 0x3a3   :  { %v1232_v42 = vsub.f32 1.0, %v1214_v8  ;;  %v1346_v50 = vmul.f32 %v2705_v45, %v1344_v44  ;;  %v1234_v55 = vmul.f32 %v1214_v8, %v3271_v48  ;;  %vm1351_vm9 = vweird.f32 %v2705_v45 }
 0x3a4   :  { %vm1352_vm11 = vmor %vm1350_vm10, %vm1351_vm9 }
 0x3a5   :  { %v1347_v22 = vsub.f32 1.0, %v1346_v50  ;;  %v2707_v9 = vpop.eup %2706 }
 0x3a6   :  { %v1233_v4 = vmul.f32 %v2707_v9, %v1232_v42  ;;  %v3500_v9 = vld [vmem:[%s3761_s3 + $0x28] sm:$0xff] }
 0x3a7   :  { %v1348_v23 = vmul.f32 %v2705_v45, %v1347_v22 }
 0x3a8   :  { %v3446_v33 = vadd.f32 %v1234_v55, %v1233_v4  ;;  %v2709_v48 = vpop.eup %2708 }
 0x3a9   :  { %v1349_v61 = vadd.f32 %v2705_v45, %v1348_v23 }
 0x3aa   :  { %v3450_v40 = vpack.c.bf16 %v3446_v33, %v3446_v33 }
 0x3ab   :  { %v1353_v16 = vsel %vm1352_vm11, %v2705_v45, %v1349_v61 }
 0x3ac   :  { %v1358_v7 = vsel %vm1355_vm12, %v1357_v63, %v1353_v16  ;;  %2524 = vmatmul.msk.bf16.vlgmr.msra.gmra.mxu3 %vm117_vm0, %v3450_v40  ;;  %2525 = vmatmul.msk.bf16.vlgmr.msra.gmra.mxu0 %vm117_vm0, %v3450_v40 }
 0x3ad   :  { %v1364_v62 = vsub.f32 1.0, %v1358_v7  ;;  %2526 = vmatmul.msk.bf16.vlgmr.msra.gmra.mxu1 %vm117_vm0, %v3450_v40  ;;  %1491 = vmatpush.bf16.msra.mxu3 %v3298_v58  ;;  %v1366_v21 = vmul.f32 %v1358_v7, %v3332_v11 }
 0x3ae   :  { %1507 = vmatpush.bf16.msra.mxu0 %v3304_v41  ;;  %1520 = vmatpush.bf16.msra.mxu1 %v3310_v17 }
 0x3af   :  { %v1365_v44 = vmul.f32 %v2709_v48, %v1364_v62  ;;  %v3779_v62 = vld [vmem:[#allocation3_spill] sm:$0xff] }
 0x3b1   :  { %v3462_v53 = vadd.f32 %v1366_v21, %v1365_v44  ;;  %1492 = vmatpush.bf16.msra.mxu3 %v3316_v35 }
 0x3b2   :  { %1508 = vmatpush.bf16.msra.mxu0 %v3322_v1  ;;  %1521 = vmatpush.bf16.msra.mxu1 %v3328_v46 }
 0x3b3   :  { %v1368_v34 = vpack.c.bf16 %v3462_v53, %v3462_v53 }
 0x3b5   :  { %2529 = vmatmul.msk.bf16.vlgmr.msra.gmra.mxu2 %vm117_vm0, %v1368_v34 }
 0x3b6   :  { %1533 = vmatpush.bf16.msra.mxu2 %v3343_v14 }
 0x3ba   :  { %1534 = vmatpush.bf16.msra.mxu2 %v3367_v26 }
 0x3bc   :  { %2531 = vmatmul.msk.bf16.vlgmr.msrb.gmra.mxu3 %vm117_vm0, %v1368_v34  ;;  %2533 = vmatmul.msk.bf16.vlgmr.msrb.gmra.mxu0 %vm117_vm0, %v1368_v34 }
 0x3bd   :  { %2534 = vmatmul.msk.bf16.vlgmr.msrb.gmra.mxu1 %vm117_vm0, %v1368_v34  ;;  %1600 = vmatpush.bf16.msrb.mxu3 %v3349_v37 }
 0x3be   :  { %1633 = vmatpush.bf16.msrb.mxu0 %v3355_v18  ;;  %1666 = vmatpush.bf16.msrb.mxu1 %v3361_v24 }
 0x3c1   :  { %1601 = vmatpush.bf16.msrb.mxu3 %v3373_v28 }
 0x3c2   :  { %1634 = vmatpush.bf16.msrb.mxu0 %v3379_v29  ;;  %1667 = vmatpush.bf16.msrb.mxu1 %v3385_v31 }
 0x3c5   :  { %2535 = vmatmul.msk.bf16.vlgmr.msrb.gmra.mxu2 %vm117_vm0, %v1368_v34 }
 0x3c6   :  { %1687 = vmatpush.bf16.msrb.mxu2 %v3393_v38 }
 0x3ca   :  { %1688 = vmatpush.bf16.msrb.mxu2 %v3405_v2 }
 0x3cc   :  { %2536 = vmatmul.msk.bf16.vlgmr.msra.gmra.mxu3 %vm117_vm0, %v1368_v34 }
 0x3cd   :  { %1700 = vmatpush.bf16.msra.mxu3 %v3399_v0 }
 0x3d1   :  { %1701 = vmatpush.bf16.msra.mxu3 %v3411_v15 }
 0x429   :  { %v1301_v11 = vpop.f32.mrf.mxu0 }
 0x42a   :  { %v1314_v39 = vpop.f32.mrf.mxu1 }
 0x42f   :  { %v1288_v56 = vpop.f32.mrf.mxu3 }
 0x431   :  { %v1303_v57 = vpop.f32.mrf.mxu0 }
 0x432   :  { %v1316_v3 = vpop.f32.mrf.mxu1 }
 0x437   :  { %v1290_v60 = vpop.f32.mrf.mxu3 }
 0x438   :  { %v1381_v19 = vpop.f32.mrf.mxu2 }
 0x439   :  { %v1382_v12 = vadd.f32 %v1381_v19, %v1288_v56  ;;  %v3487_v20 = vpop.f32.mrf.mxu0 }
 0x43a   :  { %v1468_v13 = vpop.f32.mrf.mxu1 }
 0x43b   :  { %v1385_v47 = vadd.f32 %v3492_v27, %v1382_v12  ;;  %v1540_v10 = vadd.f32 %v1468_v13, %v3778_v43 }
 0x43d   :  { %v2530_v45 = vmul.f32 -1.442695, %v1385_v47  ;;  %v1541_v6 = vadd.f32 %v3419_v32, %v1540_v10 }
 0x43f   :  { %2710 = vpow2.f32 %v2530_v45  ;;  %v2540_v8 = vmul.f32 -1.442695, %v1541_v6  ;;  %v1414_v50 = vpop.f32.mrf.mxu3 }
 0x440   :  { %v1383_v42 = vpop.f32.mrf.mxu2  ;;  %v1415_v51 = vadd.f32 %v1414_v50, %v1301_v11 }
 0x441   :  { %2712 = vpow2.f32 %v2540_v8  ;;  %v1449_v22 = vpop.f32.mrf.mxu0  ;;  %v3508_v8 = vld [vmem:[%s3761_s3 + $0x38] sm:$0xff] }
 0x442   :  { %v1418_v52 = vadd.f32 %v3500_v9, %v1415_v51  ;;  %v1470_v30 = vpop.f32.mrf.mxu1  ;;  %v1315_v42 = vadd.f32 %v3508_v8, %v1314_v39 }
 0x444   :  { %v2532_v55 = vmul.f32 -1.442695, %v1418_v52 }
 0x445   :  { %v2711_v4 = vpop.eup %2710 }
 0x446   :  { %v1389_v23 = vadd.f32 1.0, %v2711_v4  ;;  %2714 = vpow2.f32 %v2532_v55 }
 0x447   :  { %v2713_v61 = vpop.eup %2712  ;;  %v1416_v16 = vpop.f32.mrf.mxu3 }
 0x448   :  { %2716 = vrcp.f32 %v1389_v23  ;;  %v1481_v63 = vpop.f32.mrf.mxu2  ;;  %v1545_v7 = vadd.f32 1.0, %v2713_v61  ;;  %v1401_v47 = vand.u32 2147483648, %v1389_v23  ;;  %v1399_v10 = vand.u32 2147483647, %v1389_v23 }
 0x449   :  { %v1561_v48 = vadd.f32 %v1481_v63, %v3779_v62  ;;  %vm1395_vm14 = vweird.f32 %v1389_v23  ;;  %v3514_v62 = vld [vmem:[%s3761_s3 + $0x30] sm:$0xff] }
 0x44a   :  { %2718 = vrcp.f32 %v1545_v7  ;;  %v1555_v51 = vand.u32 2147483647, %v1545_v7  ;;  %v1402_v52 = vor.u32 1.1754944e-38, %v1401_v47  ;;  %v1557_v55 = vand.u32 2147483648, %v1545_v7 }
 0x44b   :  { %v1562_v44 = vadd.f32 %v3427_v49, %v1561_v48  ;;  %vm1400_vm1 = vcmp.eq.f32.partialorder %v1399_v10, 8.507059e+37  ;;  %v1448_v39 = vadd.f32 %v3514_v62, %v3487_v20  ;;  %vm1551_vm3 = vweird.f32 %v1545_v7 }
 0x44c   :  { %v2715_v21 = vpop.eup %2714  ;;  %vm1556_vm4 = vcmp.eq.f32.partialorder %v1555_v51, 8.507059e+37 }
 0x44d   :  { %v2541_v34 = vmul.f32 -1.442695, %v1562_v44  ;;  %v1422_v56 = vadd.f32 1.0, %v2715_v21 }
 0x44e   :  { %v2717_v11 = vpop.eup %2716 }
 0x44f   :  { %v1391_v57 = vmul.f32 %v2717_v11, %v1389_v23  ;;  %2720 = vpow2.f32 %v2541_v34  ;;  %v1494_v19 = vpop.f32.mrf.mxu3  ;;  %vm1396_vm13 = vweird.f32 %v2717_v11  ;;  %v1432_v34 = vand.u32 2147483647, %v1422_v56 }
 0x450   :  { %2722 = vrcp.f32 %v1422_v56  ;;  %v1483_v3 = vpop.f32.mrf.mxu2  ;;  %v2719_v60 = vpop.eup %2718  ;;  %vm1397_vm15 = vmor %vm1395_vm14, %vm1396_vm13  ;;  %vm1428_vm7 = vweird.f32 %v1422_v56 }
 0x451   :  { %v1392_v12 = vsub.f32 1.0, %v1391_v57  ;;  %v1547_v13 = vmul.f32 %v2719_v60, %v1545_v7  ;;  %vm1552_vm2 = vweird.f32 %v2719_v60  ;;  %v1495_v57 = vadd.f32 %v3435_v36, %v1494_v19 }
 0x452   :  { %vm1553_vm5 = vmor %vm1551_vm3, %vm1552_vm2  ;;  %v1558_v3 = vor.u32 1.1754944e-38, %v1557_v55  ;;  %vm1433_vm9 = vcmp.eq.f32.partialorder %v1432_v34, 8.507059e+37 }
 0x453   :  { %v1393_v43 = vmul.f32 %v2717_v11, %v1392_v12  ;;  %v1548_v45 = vsub.f32 1.0, %v1547_v13 }
 0x455   :  { %v2721_v6 = vpop.eup %2720  ;;  %v1394_v50 = vadd.f32 %v2717_v11, %v1393_v43  ;;  %v1549_v4 = vmul.f32 %v2719_v60, %v1548_v45  ;;  %v3780_v45 = vld [vmem:[#allocation8_spill] sm:$0xff] }
 0x456   :  { %v2723_v22 = vpop.eup %2722  ;;  %v1566_v30 = vadd.f32 1.0, %v2721_v6  ;;  %v1582_v6 = vadd.f32 %v3441_v5, %v3780_v45 }
 0x457   :  { %v1398_v61 = vsel %vm1397_vm15, %v2717_v11, %v1394_v50  ;;  %v1424_v63 = vmul.f32 %v2723_v22, %v1422_v56  ;;  %v1496_v23 = vpop.f32.mrf.mxu3  ;;  %v1550_v21 = vadd.f32 %v2719_v60, %v1549_v4  ;;  %v1434_v11 = vand.u32 2147483648, %v1422_v56 }
 0x458   :  { %v1403_v16 = vsel %vm1400_vm1, %v1402_v52, %v1398_v61  ;;  %2724 = vrcp.f32 %v1566_v30  ;;  %vm1429_vm6 = vweird.f32 %v2723_v22  ;;  %v1578_v61 = vand.u32 2147483648, %v1566_v30 }
 0x459   :  { %v1451_v48 = vmul.f32 %v1403_v16, %v1315_v42  ;;  %v1425_v44 = vsub.f32 1.0, %v1424_v63  ;;  %v1554_v13 = vsel %vm1553_vm5, %v2719_v60, %v1550_v21  ;;  %vm1430_vm8 = vmor %vm1428_vm7, %vm1429_vm6  ;;  %v1435_v42 = vor.u32 1.1754944e-38, %v1434_v11 }
 0x45a   :  { %v1559_v43 = vsel %vm1556_vm4, %v1558_v3, %v1554_v13  ;;  %v1576_v16 = vand.u32 2147483647, %v1566_v30  ;;  %vm1572_vm11 = vweird.f32 %v1566_v30 }
 0x45b   :  { %v1452_v12 = vadd.f32 %v1451_v48, %v1448_v39  ;;  %v1426_v47 = vmul.f32 %v2723_v22, %v1425_v44  ;;  %v1583_v7 = vmul.f32 %v1559_v43, %v1495_v57  ;;  %v1579_v48 = vor.u32 1.1754944e-38, %v1578_v61 }
 0x45c   :  { %vm1577_vm13 = vcmp.eq.f32.partialorder %v1576_v16, 8.507059e+37 }
 0x45d   :  { %2726 = vtanh.f32 %v1452_v12  ;;  %v1427_v20 = vadd.f32 %v2723_v22, %v1426_v47  ;;  %v1584_v52 = vadd.f32 %v1583_v7, %v1582_v6 }
 0x45e   :  { %v2725_v10 = vpop.eup %2724 }
 0x45f   :  { %v1431_v50 = vsel %vm1430_vm8, %v2723_v22, %v1427_v20  ;;  %v1568_v19 = vmul.f32 %v2725_v10, %v1566_v30  ;;  %vm1573_vm10 = vweird.f32 %v2725_v10  ;;  %2728 = vtanh.f32 %v1584_v52  ;;  %v3781_v52 = vld [vmem:[#allocation4_spill] sm:$0xff] }
 0x460   :  { %v1436_v51 = vsel %vm1433_vm9, %v1435_v42, %v1431_v50  ;;  %vm1574_vm12 = vmor %vm1572_vm11, %vm1573_vm10 }
 0x461   :  { %v1454_v4 = vsub.f32 1.0, %v1436_v51  ;;  %v1569_v55 = vsub.f32 1.0, %v1568_v19  ;;  %v1456_v39 = vmul.f32 %v1436_v51, %v3446_v33 }
 0x463   :  { %v2727_v60 = vpop.eup %2726  ;;  %v1570_v63 = vmul.f32 %v2725_v10, %v1569_v55 }
 0x464   :  { %v1455_v56 = vmul.f32 %v2727_v60, %v1454_v4 }
 0x465   :  { %v1571_v23 = vadd.f32 %v2725_v10, %v1570_v63  ;;  %v2729_v57 = vpop.eup %2728 }
 0x466   :  { %v3522_v22 = vadd.f32 %v1456_v39, %v1455_v56 }
 0x467   :  { %v1575_v44 = vsel %vm1574_vm12, %v2725_v10, %v1571_v23 }
 0x468   :  { %v1580_v21 = vsel %vm1577_vm13, %v1579_v48, %v1575_v44  ;;  %v3526_v34 = vpack.c.bf16 %v3522_v22, %v3522_v22  ;;  %v3782_v44 = vld [vmem:[#allocation5_spill] sm:$0xff] }
 0x469   :  { %v1586_v11 = vsub.f32 1.0, %v1580_v21  ;;  %v1588_v30 = vmul.f32 %v1580_v21, %v3462_v53 }
 0x46a   :  { %2537 = vmatmul.msk.bf16.vlgmr.msra.gmra.mxu0 %vm117_vm0, %v3526_v34  ;;  %2538 = vmatmul.msk.bf16.vlgmr.msra.gmra.mxu1 %vm117_vm0, %v3526_v34 }
 0x46b   :  { %v1587_v33 = vmul.f32 %v2729_v57, %v1586_v11  ;;  %2539 = vmatmul.msk.bf16.vlgmr.msra.gmra.mxu2 %vm117_vm0, %v3526_v34  ;;  %1713 = vmatpush.bf16.msra.mxu0 %v3298_v58 }
 0x46c   :  { %1729 = vmatpush.bf16.msra.mxu1 %v3304_v41  ;;  %1742 = vmatpush.bf16.msra.mxu2 %v3310_v17 }
 0x46d   :  { %v3538_v3 = vadd.f32 %v1588_v30, %v1587_v33 }
 0x46f   :  { %v1590_v12 = vpack.c.bf16 %v3538_v3, %v3538_v3  ;;  %1714 = vmatpush.bf16.msra.mxu0 %v3316_v35 }
 0x470   :  { %1730 = vmatpush.bf16.msra.mxu1 %v3322_v1  ;;  %1743 = vmatpush.bf16.msra.mxu2 %v3328_v46 }
 0x471   :  { %2542 = vmatmul.msk.bf16.vlgmr.msrb.gmra.mxu3 %vm117_vm0, %v1590_v12 }
 0x472   :  { %1755 = vmatpush.bf16.msrb.mxu3 %v3343_v14 }
 0x476   :  { %1756 = vmatpush.bf16.msrb.mxu3 %v3367_v26 }
 0x47a   :  { %2544 = vmatmul.msk.bf16.vlgmr.msrb.gmra.mxu0 %vm117_vm0, %v1590_v12  ;;  %2546 = vmatmul.msk.bf16.vlgmr.msrb.gmra.mxu1 %vm117_vm0, %v1590_v12 }
 0x47b   :  { %2547 = vmatmul.msk.bf16.vlgmr.msrb.gmra.mxu2 %vm117_vm0, %v1590_v12  ;;  %1822 = vmatpush.bf16.msrb.mxu0 %v3349_v37 }
 0x47c   :  { %1855 = vmatpush.bf16.msrb.mxu1 %v3355_v18  ;;  %1888 = vmatpush.bf16.msrb.mxu2 %v3361_v24 }
 0x47f   :  { %1823 = vmatpush.bf16.msrb.mxu0 %v3373_v28 }
 0x480   :  { %1856 = vmatpush.bf16.msrb.mxu1 %v3379_v29  ;;  %1889 = vmatpush.bf16.msrb.mxu2 %v3385_v31 }
 0x481   :  { %2548 = vmatmul.msk.bf16.vlgmr.msra.gmra.mxu3 %vm117_vm0, %v1590_v12 }
 0x482   :  { %1909 = vmatpush.bf16.msra.mxu3 %v3393_v38 }
 0x486   :  { %1910 = vmatpush.bf16.msra.mxu3 %v3405_v2 }
 0x48a   :  { %2549 = vmatmul.msk.bf16.vlgmr.msra.gmra.mxu0 %vm117_vm0, %v1590_v12 }
 0x48b   :  { %1922 = vmatpush.bf16.msra.mxu0 %v3399_v0 }
 0x48f   :  { %1923 = vmatpush.bf16.msra.mxu0 %v3411_v15 }
 0x4e7   :  { %v1510_v53 = vpop.f32.mrf.mxu0  ;;  %v1523_v47 = vpop.f32.mrf.mxu1 }
 0x4ee   :  { %v1536_v13 = vpop.f32.mrf.mxu2 }
 0x4ef   :  { %v1512_v43 = vpop.f32.mrf.mxu0  ;;  %v1525_v20 = vpop.f32.mrf.mxu1 }
 0x4f4   :  { %v1603_v7 = vpop.f32.mrf.mxu3 }
 0x4f5   :  { %v1604_v10 = vadd.f32 %v1603_v7, %v1510_v53 }
 0x4f6   :  { %v1538_v45 = vpop.f32.mrf.mxu2 }
 0x4f7   :  { %v1607_v6 = vadd.f32 %v3492_v27, %v1604_v10  ;;  %v1636_v42 = vpop.f32.mrf.mxu0  ;;  %v1669_v38 = vpop.f32.mrf.mxu1 }
 0x4f8   :  { %v1637_v50 = vadd.f32 %v1636_v42, %v1523_v47 }
 0x4f9   :  { %v2543_v2 = vmul.f32 -1.442695, %v1607_v6 }
 0x4fa   :  { %v1640_v19 = vadd.f32 %v3500_v9, %v1637_v50 }
 0x4fb   :  { %2730 = vpow2.f32 %v2543_v2 }
 0x4fc   :  { %v2545_v0 = vmul.f32 -1.442695, %v1640_v19  ;;  %v1605_v51 = vpop.f32.mrf.mxu3 }
 0x4fe   :  { %2732 = vpow2.f32 %v2545_v0  ;;  %v1690_v15 = vpop.f32.mrf.mxu2 }
 0x4ff   :  { %v1762_v4 = vadd.f32 %v1690_v15, %v3781_v52  ;;  %v1638_v55 = vpop.f32.mrf.mxu0  ;;  %v1671_v61 = vpop.f32.mrf.mxu1 }
 0x501   :  { %v2731_v60 = vpop.eup %2730  ;;  %v1763_v63 = vadd.f32 %v3419_v32, %v1762_v4  ;;  %v1537_v4 = vadd.f32 %v3508_v8, %v1536_v13 }
 0x502   :  { %v1611_v16 = vadd.f32 1.0, %v2731_v60 }
 0x503   :  { %v2553_v56 = vmul.f32 -1.442695, %v1763_v63 }
 0x504   :  { %v2733_v39 = vpop.eup %2732  ;;  %2734 = vrcp.f32 %v1611_v16  ;;  %v1703_v23 = vpop.f32.mrf.mxu3  ;;  %v1623_v6 = vand.u32 2147483648, %v1611_v16  ;;  %v1621_v50 = vand.u32 2147483647, %v1611_v16  ;;  %vm1617_vm15 = vweird.f32 %v1611_v16 }
 0x505   :  { %v1644_v48 = vadd.f32 1.0, %v2733_v39  ;;  %2736 = vpow2.f32 %v2553_v56  ;;  %v1783_v21 = vadd.f32 %v1703_v23, %v3782_v44  ;;  %v1670_v23 = vadd.f32 %v3514_v62, %v1669_v38 }
 0x506   :  { %v1692_v11 = vpop.f32.mrf.mxu2  ;;  %v1624_v52 = vor.u32 1.1754944e-38, %v1623_v6  ;;  %vm1622_vm2 = vcmp.eq.f32.partialorder %v1621_v50, 8.507059e+37 }
 0x507   :  { %2738 = vrcp.f32 %v1644_v48  ;;  %v1716_v57 = vpop.f32.mrf.mxu0  ;;  %v1784_v33 = vadd.f32 %v3427_v49, %v1783_v21  ;;  %v1656_v39 = vand.u32 2147483648, %v1644_v48  ;;  %vm1650_vm4 = vweird.f32 %v1644_v48 }
 0x508   :  { %v1717_v6 = vadd.f32 %v3435_v36, %v1716_v57 }
 0x509   :  { %v2554_v12 = vmul.f32 -1.442695, %v1784_v33  ;;  %v1657_v13 = vor.u32 1.1754944e-38, %v1656_v39 }
 0x50a   :  { %v2735_v30 = vpop.eup %2734 }
 0x50b   :  { %v2737_v53 = vpop.eup %2736  ;;  %v1613_v47 = vmul.f32 %v2735_v30, %v1611_v16  ;;  %2740 = vpow2.f32 %v2554_v12  ;;  %vm1618_vm14 = vweird.f32 %v2735_v30  ;;  %v1654_v16 = vand.u32 2147483647, %v1644_v48 }
 0x50c   :  { %v1767_v43 = vadd.f32 1.0, %v2737_v53  ;;  %v1705_v20 = vpop.f32.mrf.mxu3  ;;  %vm1619_vm1 = vmor %vm1617_vm15, %vm1618_vm14 }
 0x50d   :  { %v2739_v7 = vpop.eup %2738  ;;  %v1614_v10 = vsub.f32 1.0, %v1613_v47  ;;  %vm1655_vm6 = vcmp.eq.f32.partialorder %v1654_v16, 8.507059e+37 }
 0x50e   :  { %v1646_v45 = vmul.f32 %v2739_v7, %v1644_v48  ;;  %2742 = vrcp.f32 %v1767_v43  ;;  %vm1651_vm3 = vweird.f32 %v2739_v7  ;;  %v1777_v47 = vand.u32 2147483647, %v1767_v43 }
 0x50f   :  { %v1615_v42 = vmul.f32 %v2735_v30, %v1614_v10  ;;  %v1718_v2 = vpop.f32.mrf.mxu0  ;;  %vm1652_vm5 = vmor %vm1650_vm4, %vm1651_vm3  ;;  %vm1773_vm8 = vweird.f32 %v1767_v43 }
 0x510   :  { %v1647_v19 = vsub.f32 1.0, %v1646_v45  ;;  %vm1778_vm10 = vcmp.eq.f32.partialorder %v1777_v47, 8.507059e+37  ;;  %v3784_v47 = vld [vmem:[#allocation6_spill] sm:$0xff] }
 0x511   :  { %v1616_v0 = vadd.f32 %v2735_v30, %v1615_v42  ;;  %v2741_v51 = vpop.eup %2740 }
 0x512   :  { %v1648_v15 = vmul.f32 %v2739_v7, %v1647_v19  ;;  %v1788_v61 = vadd.f32 1.0, %v2741_v51  ;;  %v3783_v19 = vld [vmem:[#allocation9_spill] sm:$0xff] }
 0x513   :  { %v1620_v55 = vsel %vm1619_vm1, %v2735_v30, %v1616_v0  ;;  %v1779_v30 = vand.u32 2147483648, %v1767_v43  ;;  %v1804_v0 = vadd.f32 %v3441_v5, %v3783_v19 }
 0x514   :  { %v2743_v60 = vpop.eup %2742  ;;  %v1625_v63 = vsel %vm1622_vm2, %v1624_v52, %v1620_v55  ;;  %v1649_v56 = vadd.f32 %v2739_v7, %v1648_v15  ;;  %2744 = vrcp.f32 %v1788_v61  ;;  %v1800_v15 = vand.u32 2147483648, %v1788_v61 }
 0x515   :  { %v1673_v44 = vmul.f32 %v1625_v63, %v1537_v4  ;;  %v1769_v21 = vmul.f32 %v2743_v60, %v1767_v43  ;;  %vm1774_vm7 = vweird.f32 %v2743_v60  ;;  %v1780_v48 = vor.u32 1.1754944e-38, %v1779_v30 }
 0x516   :  { %v1653_v33 = vsel %vm1652_vm5, %v2739_v7, %v1649_v56  ;;  %vm1775_vm9 = vmor %vm1773_vm8, %vm1774_vm7  ;;  %v1798_v63 = vand.u32 2147483647, %v1788_v61  ;;  %vm1794_vm12 = vweird.f32 %v1788_v61 }
 0x517   :  { %v1674_v11 = vadd.f32 %v1673_v44, %v1670_v23  ;;  %v1770_v12 = vsub.f32 1.0, %v1769_v21  ;;  %v1658_v10 = vsel %vm1655_vm6, %v1657_v13, %v1653_v33  ;;  %v1801_v23 = vor.u32 1.1754944e-38, %v1800_v15 }
 0x518   :  { %v1676_v42 = vsub.f32 1.0, %v1658_v10  ;;  %v1678_v51 = vmul.f32 %v1658_v10, %v3522_v22  ;;  %vm1799_vm14 = vcmp.eq.f32.partialorder %v1798_v63, 8.507059e+37 }
 0x519   :  { %2746 = vtanh.f32 %v1674_v11  ;;  %v1771_v53 = vmul.f32 %v2743_v60, %v1770_v12 }
 0x51a   :  { %v2745_v20 = vpop.eup %2744 }
 0x51b   :  { %v1790_v45 = vmul.f32 %v2745_v20, %v1788_v61  ;;  %v1772_v38 = vadd.f32 %v2743_v60, %v1771_v53  ;;  %vm1795_vm11 = vweird.f32 %v2745_v20 }
 0x51c   :  { %vm1796_vm13 = vmor %vm1794_vm12, %vm1795_vm11 }
 0x51d   :  { %v1791_v50 = vsub.f32 1.0, %v1790_v45  ;;  %v1776_v7 = vsel %vm1775_vm9, %v2743_v60, %v1772_v38 }
 0x51e   :  { %v1781_v52 = vsel %vm1778_vm10, %v1780_v48, %v1776_v7 }
 0x51f   :  { %v2747_v2 = vpop.eup %2746  ;;  %v1792_v55 = vmul.f32 %v2745_v20, %v1791_v50  ;;  %v1805_v43 = vmul.f32 %v1781_v52, %v1717_v6 }
 0x520   :  { %v1677_v4 = vmul.f32 %v2747_v2, %v1676_v42  ;;  %v3785_v42 = vld [vmem:[#allocation7_spill] sm:$0xff] }
 0x521   :  { %v1793_v56 = vadd.f32 %v2745_v20, %v1792_v55  ;;  %v1806_v39 = vadd.f32 %v1805_v43, %v1804_v0 }
 0x522   :  { %v3575_v57 = vadd.f32 %v1678_v51, %v1677_v4 }
 0x523   :  { %v1797_v44 = vsel %vm1796_vm13, %v2745_v20, %v1793_v56  ;;  %2748 = vtanh.f32 %v1806_v39 }
 0x524   :  { %v3579_v60 = vpack.c.bf16 %v3575_v57, %v3575_v57  ;;  %v1802_v22 = vsel %vm1799_vm14, %v1801_v23, %v1797_v44 }
 0x525   :  { %v1808_v61 = vsub.f32 1.0, %v1802_v22  ;;  %v1810_v11 = vmul.f32 %v1802_v22, %v3538_v3 }
 0x526   :  { %2550 = vmatmul.msk.bf16.vlgmr.msra.gmra.mxu1 %vm117_vm0, %v3579_v60  ;;  %2551 = vmatmul.msk.bf16.vlgmr.msra.gmra.mxu2 %vm117_vm0, %v3579_v60 }
 0x527   :  { %2552 = vmatmul.msk.bf16.vlgmr.msrb.gmra.mxu3 %vm117_vm0, %v3579_v60  ;;  %1935 = vmatpush.bf16.msra.mxu1 %v3298_v58 }
 0x528   :  { %1951 = vmatpush.bf16.msra.mxu2 %v3304_v41  ;;  %1964 = vmatpush.bf16.msrb.mxu3 %v3310_v17 }
 0x529   :  { %v2749_v16 = vpop.eup %2748 }
 0x52a   :  { %v1809_v21 = vmul.f32 %v2749_v16, %v1808_v61 }
 0x52b   :  { %1936 = vmatpush.bf16.msra.mxu1 %v3316_v35 }
 0x52c   :  { %1952 = vmatpush.bf16.msra.mxu2 %v3322_v1  ;;  %1965 = vmatpush.bf16.msrb.mxu3 %v3328_v46  ;;  %v3594_v33 = vadd.f32 %v1810_v11, %v1809_v21 }
 0x52e   :  { %v1812_v58 = vpack.c.bf16 %v3594_v33, %v3594_v33 }
 0x530   :  { %2555 = vmatmul.msk.bf16.vlgmr.msrb.gmra.mxu0 %vm117_vm0, %v1812_v58 }
 0x531   :  { %1977 = vmatpush.bf16.msrb.mxu0 %v3343_v14 }
 0x535   :  { %1978 = vmatpush.bf16.msrb.mxu0 %v3367_v26 }
 0x536   :  { %2557 = vmatmul.msk.bf16.vlgmr.msrb.gmra.mxu1 %vm117_vm0, %v1812_v58  ;;  %2559 = vmatmul.msk.bf16.vlgmr.msrb.gmra.mxu2 %vm117_vm0, %v1812_v58 }
 0x537   :  { %2560 = vmatmul.msk.bf16.vlgmr.msra.gmra.mxu3 %vm117_vm0, %v1812_v58  ;;  %2044 = vmatpush.bf16.msrb.mxu1 %v3349_v37 }
 0x538   :  { %2077 = vmatpush.bf16.msrb.mxu2 %v3355_v18  ;;  %2110 = vmatpush.bf16.msra.mxu3 %v3361_v24 }
 0x53b   :  { %2045 = vmatpush.bf16.msrb.mxu1 %v3373_v28 }
 0x53c   :  { %2078 = vmatpush.bf16.msrb.mxu2 %v3379_v29  ;;  %2111 = vmatpush.bf16.msra.mxu3 %v3385_v31 }
 0x540   :  { %2561 = vmatmul.msk.bf16.vlgmr.msra.gmra.mxu0 %vm117_vm0, %v1812_v58 }
 0x546   :  { %2562 = vmatmul.msk.bf16.vlgmr.msra.gmra.mxu1 %vm117_vm0, %v1812_v58 }
 0x5a3   :  { %v1732_v41 = vpop.f32.mrf.mxu1 }
 0x5a9   :  { %v1745_v17 = vpop.f32.mrf.mxu2 }
 0x5aa   :  { %v1758_v35 = vpop.f32.mrf.mxu3 }
 0x5ab   :  { %v1734_v1 = vpop.f32.mrf.mxu1 }
 0x5ac   :  { %v1759_v1 = vadd.f32 %v3508_v8, %v1758_v35 }
 0x5ad   :  { %v1825_v46 = vpop.f32.mrf.mxu0 }
 0x5ae   :  { %v1826_v14 = vadd.f32 %v1825_v46, %v1732_v41 }
 0x5b0   :  { %v1829_v37 = vadd.f32 %v3492_v27, %v1826_v14 }
 0x5b1   :  { %v1747_v18 = vpop.f32.mrf.mxu2 }
 0x5b2   :  { %v1760_v24 = vpop.f32.mrf.mxu3  ;;  %v2556_v26 = vmul.f32 -1.442695, %v1829_v37 }
 0x5b3   :  { %v1858_v28 = vpop.f32.mrf.mxu1 }
 0x5b4   :  { %v1859_v3 = vadd.f32 %v1858_v28, %v1745_v17  ;;  %2750 = vpow2.f32 %v2556_v26  ;;  %v3630_v17 = vld [vmem:[%s3762_s2] sm:$0xff] }
 0x5b5   :  { %v1827_v31 = vpop.f32.mrf.mxu0 }
 0x5b6   :  { %v1862_v29 = vadd.f32 %v3500_v9, %v1859_v3 }
 0x5b8   :  { %v2558_v12 = vmul.f32 -1.442695, %v1862_v29 }
 0x5b9   :  { %v1891_v13 = vpop.f32.mrf.mxu2 }
 0x5ba   :  { %2752 = vpow2.f32 %v2558_v12  ;;  %v1912_v30 = vpop.f32.mrf.mxu3  ;;  %v2751_v53 = vpop.eup %2750  ;;  %v1892_v26 = vadd.f32 %v3514_v62, %v1891_v13 }
 0x5bb   :  { %v1984_v20 = vadd.f32 %v1912_v30, %v3784_v47  ;;  %v1860_v10 = vpop.f32.mrf.mxu1  ;;  %v1833_v45 = vadd.f32 1.0, %v2751_v53 }
 0x5bd   :  { %v1985_v38 = vadd.f32 %v3419_v32, %v1984_v20  ;;  %2754 = vrcp.f32 %v1833_v45  ;;  %v1925_v6 = vpop.f32.mrf.mxu0  ;;  %v1845_v56 = vand.u32 2147483648, %v1833_v45  ;;  %v1843_v22 = vand.u32 2147483647, %v1833_v45 }
 0x5be   :  { %v2005_v50 = vadd.f32 %v1925_v6, %v3785_v42  ;;  %vm1839_vm1 = vweird.f32 %v1833_v45 }
 0x5bf   :  { %v2566_v48 = vmul.f32 -1.442695, %v1985_v38  ;;  %v1846_v41 = vor.u32 1.1754944e-38, %v1845_v56  ;;  %vm1844_vm3 = vcmp.eq.f32.partialorder %v1843_v22, 8.507059e+37 }
 0x5c0   :  { %v2753_v7 = vpop.eup %2752  ;;  %v2006_v19 = vadd.f32 %v3427_v49, %v2005_v50  ;;  %v3623_v49 = vld [vmem:[%s3762_s2 + $0x8] sm:$0xff] }
 0x5c1   :  { %v1866_v2 = vadd.f32 1.0, %v2753_v7  ;;  %2756 = vpow2.f32 %v2566_v48  ;;  %v1893_v0 = vpop.f32.mrf.mxu2  ;;  %2148 = vmatpush.bf16.msra.mxu0 %v3623_v49  ;;  %2173 = vmatpush.bf16.msra.mxu1 %v3623_v49 }
 0x5c2   :  { %v1914_v51 = vpop.f32.mrf.mxu3  ;;  %v2567_v4 = vmul.f32 -1.442695, %v2006_v19 }
 0x5c3   :  { %2758 = vrcp.f32 %v1866_v2  ;;  %v3618_v15 = vpop.f32.mrf.mxu1  ;;  %v2755_v52 = vpop.eup %2754  ;;  %v1878_v24 = vand.u32 2147483648, %v1866_v2  ;;  %vm1872_vm5 = vweird.f32 %v1866_v2  ;;  %v1876_v31 = vand.u32 2147483647, %v1866_v2 }
 0x5c4   :  { %v1835_v55 = vmul.f32 %v2755_v52, %v1833_v45  ;;  %2760 = vpow2.f32 %v2567_v4  ;;  %vm1840_vm15 = vweird.f32 %v2755_v52  ;;  %v1939_v0 = vadd.f32 %v3435_v36, %v3618_v15 }
 0x5c5   :  { %v1927_v32 = vpop.f32.mrf.mxu0  ;;  %vm1841_vm2 = vmor %vm1839_vm1, %vm1840_vm15  ;;  %2149 = vmatpush.bf16.msra.mxu0 %v3630_v17  ;;  %2174 = vmatpush.bf16.msra.mxu1 %v3630_v17  ;;  %v1879_v53 = vor.u32 1.1754944e-38, %v1878_v24  ;;  %vm1877_vm7 = vcmp.eq.f32.partialorder %v1876_v31, 8.507059e+37 }
 0x5c6   :  { %v1836_v63 = vsub.f32 1.0, %v1835_v55  ;;  %v3786_v32 = vld [vmem:[#allocation10_spill] sm:$0xff] }
 0x5c7   :  { %v2757_v43 = vpop.eup %2756 }
 0x5c8   :  { %v1989_v39 = vadd.f32 1.0, %v2757_v43  ;;  %v1837_v44 = vmul.f32 %v2755_v52, %v1836_v63  ;;  %v2026_v43 = vadd.f32 %v3441_v5, %v3786_v32 }
 0x5c9   :  { %v2759_v23 = vpop.eup %2758 }
 0x5ca   :  { %v1868_v61 = vmul.f32 %v2759_v23, %v1866_v2  ;;  %2762 = vrcp.f32 %v1989_v39  ;;  %v1838_v16 = vadd.f32 %v2755_v52, %v1837_v44  ;;  %v2761_v11 = vpop.eup %2760  ;;  %vm1873_vm4 = vweird.f32 %v2759_v23 }
 0x5cb   :  { %v1940_v21 = vpop.f32.mrf.mxu1  ;;  %v2010_v14 = vadd.f32 1.0, %v2761_v11  ;;  %vm1874_vm6 = vmor %vm1872_vm5, %vm1873_vm4  ;;  %v2001_v20 = vand.u32 2147483648, %v1989_v39  ;;  %v1999_v38 = vand.u32 2147483647, %v1989_v39  ;;  %vm1995_vm9 = vweird.f32 %v1989_v39 }
 0x5cc   :  { %v1869_v58 = vsub.f32 1.0, %v1868_v61  ;;  %v1842_v46 = vsel %vm1841_vm2, %v2755_v52, %v1838_v16 }
 0x5cd   :  { %v1847_v18 = vsel %vm1844_vm3, %v1846_v41, %v1842_v46  ;;  %2764 = vrcp.f32 %v2010_v14  ;;  %v2002_v7 = vor.u32 1.1754944e-38, %v2001_v20  ;;  %vm2000_vm11 = vcmp.eq.f32.partialorder %v1999_v38, 8.507059e+37 }
 0x5ce   :  { %v1870_v37 = vmul.f32 %v2759_v23, %v1869_v58  ;;  %v1895_v28 = vmul.f32 %v1847_v18, %v1759_v1  ;;  %v2022_v63 = vand.u32 2147483648, %v2010_v14  ;;  %vm2016_vm13 = vweird.f32 %v2010_v14 }
 0x5cf   :  { %v2020_v44 = vand.u32 2147483647, %v2010_v14 }
 0x5d0   :  { %v2763_v3 = vpop.eup %2762  ;;  %v1871_v29 = vadd.f32 %v2759_v23, %v1870_v37  ;;  %v1896_v35 = vadd.f32 %v1895_v28, %v1892_v26  ;;  %v2023_v22 = vor.u32 1.1754944e-38, %v2022_v63 }
 0x5d1   :  { %v1991_v12 = vmul.f32 %v2763_v3, %v1989_v39  ;;  %vm1996_vm8 = vweird.f32 %v2763_v3  ;;  %vm2021_vm15 = vcmp.eq.f32.partialorder %v2020_v44, 8.507059e+37 }
 0x5d2   :  { %v1875_v30 = vsel %vm1874_vm6, %v2759_v23, %v1871_v29  ;;  %2766 = vtanh.f32 %v1896_v35  ;;  %vm1997_vm10 = vmor %vm1995_vm9, %vm1996_vm8 }
 0x5d3   :  { %v1992_v47 = vsub.f32 1.0, %v1991_v12  ;;  %v2765_v13 = vpop.eup %2764  ;;  %v1880_v10 = vsel %vm1877_vm7, %v1879_v53, %v1875_v30 }
 0x5d4   :  { %v2012_v6 = vmul.f32 %v2765_v13, %v2010_v14  ;;  %v1898_v42 = vsub.f32 1.0, %v1880_v10  ;;  %v1900_v19 = vmul.f32 %v1880_v10, %v3575_v57  ;;  %vm2017_vm12 = vweird.f32 %v2765_v13 }
 0x5d5   :  { %v1993_v45 = vmul.f32 %v2763_v3, %v1992_v47  ;;  %vm2018_vm14 = vmor %vm2016_vm13, %vm2017_vm12 }
 0x5d6   :  { %v2013_v50 = vsub.f32 1.0, %v2012_v6 }
 0x5d7   :  { %v1994_v48 = vadd.f32 %v2763_v3, %v1993_v45 }
 0x5d8   :  { %v2767_v2 = vpop.eup %2766  ;;  %v2014_v4 = vmul.f32 %v2765_v13, %v2013_v50 }
 0x5d9   :  { %v1998_v51 = vsel %vm1997_vm10, %v2763_v3, %v1994_v48  ;;  %v1899_v52 = vmul.f32 %v2767_v2, %v1898_v42 }
 0x5da   :  { %v2003_v55 = vsel %vm2000_vm11, %v2002_v7, %v1998_v51  ;;  %v2015_v23 = vadd.f32 %v2765_v13, %v2014_v4 }
 0x5db   :  { %v2027_v56 = vmul.f32 %v2003_v55, %v1939_v0  ;;  %v3641_v39 = vadd.f32 %v1900_v19, %v1899_v52 }
 0x5dc   :  { %v2019_v15 = vsel %vm2018_vm14, %v2765_v13, %v2015_v23 }
 0x5dd   :  { %v2028_v57 = vadd.f32 %v2027_v56, %v2026_v43  ;;  %v1902_v36 = vpack.c.bf16 %v3641_v39, %v3641_v39  ;;  %v2024_v5 = vsel %vm2021_vm15, %v2023_v22, %v2019_v15 }
 0x5de   :  { %v2030_v61 = vsub.f32 1.0, %v2024_v5  ;;  %v2032_v11 = vmul.f32 %v2024_v5, %v3594_v33 }
 0x5df   :  { %2768 = vtanh.f32 %v2028_v57  ;;  %2563 = vmatmul.msk.bf16.vlgmr.msra.gmra.mxu2 %vm117_vm0, %v1902_v36  ;;  %2564 = vmatmul.msk.bf16.vlgmr.msrb.gmra.mxu3 %vm117_vm0, %v1902_v36 }
 0x5e0   :  { %2565 = vmatmul.msk.bf16.vlgmr.msrb.gmra.mxu0 %vm117_vm0, %v1902_v36  ;;  %2198 = vmatpush.bf16.msra.mxu2 %v3623_v49 }
 0x5e1   :  { %2223 = vmatpush.bf16.msrb.mxu3 %v3623_v49  ;;  %2248 = vmatpush.bf16.msrb.mxu0 %v3623_v49 }
 0x5e4   :  { %2199 = vmatpush.bf16.msra.mxu2 %v3630_v17 }
 0x5e5   :  { %v2769_v16 = vpop.eup %2768  ;;  %2224 = vmatpush.bf16.msrb.mxu3 %v3630_v17  ;;  %2249 = vmatpush.bf16.msrb.mxu0 %v3630_v17 }
 0x5e6   :  { %v2031_v21 = vmul.f32 %v2769_v16, %v2030_v61 }
 0x5e8   :  { %v2033_v58 = vadd.f32 %v2032_v11, %v2031_v21 }
 0x5ea   :  { %v2034_v41 = vpack.c.bf16 %v2033_v58, %v2033_v58 }
 0x5ec   :  { %2568 = vmatmul.msk.bf16.vlgmr.msrb.gmra.mxu1 %vm117_vm0, %v2034_v41 }
 0x5ed   :  { %2273 = vmatpush.bf16.msrb.mxu1 %v3623_v49 }
 0x5ef   :  { %2570 = vmatmul.msk.bf16.vlgmr.msrb.gmra.mxu2 %vm117_vm0, %v2034_v41  ;;  %2572 = vmatmul.msk.bf16.vlgmr.msra.gmra.mxu3 %vm117_vm0, %v2034_v41 }
 0x5f0   :  { %2581 = vmatmul.msk.bf16.vlgmr.msra.gmra.mxu0 %vm117_vm0, %v3168_v59  ;;  %2298 = vmatpush.bf16.msrb.mxu2 %v3623_v49 }
 0x5f1   :  { %2274 = vmatpush.bf16.msrb.mxu1 %v3630_v17  ;;  %2326 = vmatpush.bf16.msra.mxu3 %v3623_v49 }
 0x5f4   :  { %2299 = vmatpush.bf16.msrb.mxu2 %v3630_v17 }
 0x5f5   :  { %2327 = vmatpush.bf16.msra.mxu3 %v3630_v17 }
 0x5fc   :  { %2582 = vmatmul.msk.bf16.vlgmr.msra.gmra.mxu1 %vm117_vm0, %v3221_v54 }
 0x5ff   :  { %2583 = vmatmul.msk.bf16.vlgmr.msra.gmra.mxu2 %vm117_vm0, %v3279_v25  ;;  %2584 = vmatmul.msk.bf16.vlgmr.msrb.gmra.mxu3 %vm117_vm0, %v3450_v40  ;;  %v3681_v40 = vld [vmem:[%s3763_s4] sm:$0xff] }
 0x600   :  { %2585 = vmatmul.msk.bf16.vlgmr.msrb.gmra.mxu0 %vm117_vm0, %v3526_v34 }
 0x60c   :  { %2586 = vmatmul.msk.bf16.vlgmr.msrb.gmra.mxu1 %vm117_vm0, %v3579_v60 }
 0x60f   :  { %2587 = vmatmul.msk.bf16.vlgmr.msrb.gmra.mxu2 %vm117_vm0, %v1902_v36 }
 0x65d   :  { %v1980_v59 = vpop.f32.mrf.mxu0 }
 0x65e   :  { %v1981_v55 = vadd.f32 %v3508_v8, %v1980_v59 }
 0x662   :  { %v1954_v33 = vpop.f32.mrf.mxu2  ;;  %v1967_v49 = vpop.f32.mrf.mxu3 }
 0x665   :  { %v1982_v17 = vpop.f32.mrf.mxu0 }
 0x669   :  { %v2047_v1 = vpop.f32.mrf.mxu1 }
 0x66a   :  { %v2048_v54 = vadd.f32 %v2047_v1, %v1954_v33  ;;  %v1956_v46 = vpop.f32.mrf.mxu2  ;;  %v1969_v14 = vpop.f32.mrf.mxu3 }
 0x66c   :  { %v2051_v25 = vadd.f32 %v3492_v27, %v2048_v54 }
 0x66d   :  { %v2151_v37 = vpop.f32.mrf.mxu0 }
 0x66e   :  { %v2569_v34 = vmul.f32 -1.442695, %v2051_v25  ;;  %v3684_v60 = vadd.f32 %v2151_v37, %v3681_v40 }
 0x670   :  { %2770 = vpow2.f32 %v2569_v34  ;;  %2155 = vmax.xlane.f32.xlu0 %v3684_v60 }
 0x671   :  { %v2049_v18 = vpop.f32.mrf.mxu1 }
 0x672   :  { %v2080_v24 = vpop.f32.mrf.mxu2  ;;  %v2113_v26 = vpop.f32.mrf.mxu3 }
 0x673   :  { %v2081_v28 = vadd.f32 %v2080_v24, %v1967_v49  ;;  %v2114_v44 = vadd.f32 %v3514_v62, %v2113_v26 }
 0x675   :  { %v2084_v27 = vadd.f32 %v3500_v9, %v2081_v28  ;;  %v2153_v29 = vpop.f32.mrf.mxu0 }
 0x676   :  { %v2771_v3 = vpop.eup %2770 }
 0x677   :  { %v2055_v31 = vadd.f32 1.0, %v2771_v3  ;;  %v2571_v35 = vmul.f32 -1.442695, %v2084_v27 }
 0x679   :  { %2772 = vrcp.f32 %v2055_v31  ;;  %v2176_v12 = vpop.f32.mrf.mxu1  ;;  %v2067_v42 = vand.u32 2147483648, %v2055_v31  ;;  %v2065_v19 = vand.u32 2147483647, %v2055_v31  ;;  %vm2061_vm2 = vweird.f32 %v2055_v31 }
 0x67a   :  { %2774 = vpow2.f32 %v2571_v35  ;;  %v3689_v30 = vadd.f32 %v2176_v12, %v3681_v40  ;;  %v2082_v53 = vpop.f32.mrf.mxu2  ;;  %v2115_v47 = vpop.f32.mrf.mxu3 }
 0x67b   :  { %v2068_v4 = vor.u32 1.1754944e-38, %v2067_v42  ;;  %vm2066_vm4 = vcmp.eq.f32.partialorder %v2065_v19, 8.507059e+37 }
 0x67c   :  { %2180 = vmax.xlane.f32.xlu0 %v3689_v30 }
 0x67d   :  { %v2251_v20 = vpop.f32.mrf.mxu0 }
 0x67e   :  { %v3693_v10 = vadd.f32 %v2251_v20, %v3681_v40 }
 0x67f   :  { %v2773_v13 = vpop.eup %2772 }
 0x680   :  { %v2775_v45 = vpop.eup %2774  ;;  %v2057_v9 = vmul.f32 %v2773_v13, %v2055_v31  ;;  %2255 = vmax.xlane.f32.xlu2 %v3693_v10  ;;  %vm2062_vm1 = vweird.f32 %v2773_v13 }
 0x681   :  { %v2088_v38 = vadd.f32 1.0, %v2775_v45  ;;  %v2178_v6 = vpop.f32.mrf.mxu1  ;;  %vm2063_vm3 = vmor %vm2061_vm2, %vm2062_vm1 }
 0x682   :  { %v2058_v48 = vsub.f32 1.0, %v2057_v9  ;;  %v2201_v50 = vpop.f32.mrf.mxu2  ;;  %v2226_v7 = vpop.f32.mrf.mxu3 }
 0x683   :  { %2776 = vrcp.f32 %v2088_v38  ;;  %v3697_v0 = vadd.f32 %v2201_v50, %v3681_v40  ;;  %v3706_v16 = vadd.f32 %v2226_v7, %v3681_v40  ;;  %v2100_v8 = vand.u32 2147483648, %v2088_v38 }
 0x684   :  { %v2059_v2 = vmul.f32 %v2773_v13, %v2058_v48  ;;  %v2098_v11 = vand.u32 2147483647, %v2088_v38  ;;  %vm2094_vm6 = vweird.f32 %v2088_v38 }
 0x685   :  { %v2253_v52 = vpop.f32.mrf.mxu0  ;;  %2205 = vmax.xlane.f32.xlu1 %v3697_v0  ;;  %v2101_v58 = vor.u32 1.1754944e-38, %v2100_v8 }
 0x686   :  { %v2060_v51 = vadd.f32 %v2773_v13, %v2059_v2  ;;  %vm2099_vm8 = vcmp.eq.f32.partialorder %v2098_v11, 8.507059e+37 }
 0x688   :  { %v2064_v32 = vsel %vm2063_vm3, %v2773_v13, %v2060_v51 }
 0x689   :  { %v2777_v43 = vpop.eup %2776  ;;  %v2069_v63 = vsel %vm2066_vm4, %v2068_v4, %v2064_v32  ;;  %v2276_v56 = vpop.f32.mrf.mxu1 }
 0x68a   :  { %v2090_v23 = vmul.f32 %v2777_v43, %v2088_v38  ;;  %v2117_v57 = vmul.f32 %v2069_v63, %v1981_v55  ;;  %v3703_v36 = vadd.f32 %v2276_v56, %v3681_v40  ;;  %v2203_v15 = vpop.f32.mrf.mxu2  ;;  %v2228_v22 = vpop.f32.mrf.mxu3  ;;  %vm2095_vm5 = vweird.f32 %v2777_v43 }
 0x68b   :  { %vm2096_vm7 = vmor %vm2094_vm6, %vm2095_vm5 }
 0x68c   :  { %v2091_v5 = vsub.f32 1.0, %v2090_v23  ;;  %v2118_v61 = vadd.f32 %v2117_v57, %v2114_v44  ;;  %2280 = vmax.xlane.f32.xlu2 %v3703_v36 }
 0x68d   :  { %2230 = vmax.xlane.f32.xlu1 %v3706_v16 }
 0x68e   :  { %v2092_v21 = vmul.f32 %v2777_v43, %v2091_v5  ;;  %2778 = vtanh.f32 %v2118_v61 }
 0x690   :  { %v2093_v62 = vadd.f32 %v2777_v43, %v2092_v21 }
 0x691   :  { %v2278_v41 = vpop.f32.mrf.mxu1 }
 0x692   :  { %v2097_v59 = vsel %vm2096_vm7, %v2777_v43, %v2093_v62  ;;  %v2301_v49 = vpop.f32.mrf.mxu2 }
 0x693   :  { %v2102_v33 = vsel %vm2099_vm8, %v2101_v58, %v2097_v59  ;;  %v3711_v54 = vadd.f32 %v2301_v49, %v3681_v40 }
 0x694   :  { %v2779_v17 = vpop.eup %2778  ;;  %v2120_v1 = vsub.f32 1.0, %v2102_v33  ;;  %v2122_v14 = vmul.f32 %v2102_v33, %v3641_v39 }
 0x695   :  { %2305 = vmax.xlane.f32.xlu0 %v3711_v54 }
 0x696   :  { %v2121_v46 = vmul.f32 %v2779_v17, %v2120_v1 }
 0x698   :  { %v2123_v25 = vadd.f32 %v2122_v14, %v2121_v46 }
 0x69a   :  { %v2124_v34 = vpack.c.bf16 %v2123_v25, %v2123_v25  ;;  %v2303_v37 = vpop.f32.mrf.mxu2 }
 0x69c   :  { %2588 = vmatmul.msk.bf16.vlgmr.msra.gmra.mxu3 %vm117_vm0, %v2124_v34 }
 0x6e3   :  { %v3716_v18 = vpop.xlane.xlu0 %2155 }
 0x6e4   :  { %v2157_v24 = vsub.f32 %v3684_v60, %v3716_v18 }
 0x6e6   :  { %v2158_v26 = vmul.f32 1.442695, %v2157_v24 }
 0x6e8   :  { %2780 = vpow2.f32 %v2158_v26 }
 0x6ee   :  { %v2781_v28 = vpop.eup %2780 }
 0x6ef   :  { %v3720_v3 = vpop.xlane.xlu0 %2180  ;;  %2160 = vadd.xlane.f32.xlu2 %v2781_v28 }
 0x6f0   :  { %v2182_v39 = vsub.f32 %v3689_v30, %v3720_v3 }
 0x6f2   :  { %v2183_v27 = vmul.f32 1.442695, %v2182_v39 }
 0x6f3   :  { %v3724_v29 = vpop.xlane.xlu2 %2255 }
 0x6f4   :  { %2782 = vpow2.f32 %v2183_v27  ;;  %v2257_v31 = vsub.f32 %v3693_v10, %v3724_v29 }
 0x6f6   :  { %v2258_v35 = vmul.f32 1.442695, %v2257_v31 }
 0x6f8   :  { %v2206_v12 = vpop.xlane.xlu1 %2205  ;;  %2784 = vpow2.f32 %v2258_v35 }
 0x6f9   :  { %v2207_v50 = vsub.f32 %v3697_v0, %v2206_v12 }
 0x6fa   :  { %v2783_v53 = vpop.eup %2782 }
 0x6fb   :  { %2185 = vadd.xlane.f32.xlu0 %v2783_v53  ;;  %v2208_v7 = vmul.f32 1.442695, %v2207_v50 }
 0x6fe   :  { %v2785_v20 = vpop.eup %2784 }
 0x6ff   :  { %v2281_v19 = vpop.xlane.xlu2 %2280 }
 0x700   :  { %v3728_v47 = vpop.xlane.xlu1 %2230  ;;  %v2282_v52 = vsub.f32 %v3703_v36, %v2281_v19 }
 0x701   :  { %v2232_v13 = vsub.f32 %v3706_v16, %v3728_v47 }
 0x702   :  { %v2283_v4 = vmul.f32 1.442695, %v2282_v52 }
 0x703   :  { %2260 = vadd.xlane.f32.xlu0 %v2785_v20  ;;  %v2233_v45 = vmul.f32 1.442695, %v2232_v13 }
 0x705   :  { %2786 = vpow2.f32 %v2233_v45 }
 0x708   :  { %v3732_v9 = vpop.xlane.xlu0 %2305 }
 0x709   :  { %v2307_v38 = vsub.f32 %v3711_v54, %v3732_v9 }
 0x70b   :  { %v2787_v6 = vpop.eup %2786  ;;  %v2308_v48 = vmul.f32 1.442695, %v2307_v38 }
 0x70c   :  { %2235 = vadd.xlane.f32.xlu2 %v2787_v6 }
 0x70d   :  { %2788 = vpow2.f32 %v2308_v48 }
 0x70e   :  { %2790 = vpow2.f32 %v2208_v7 }
 0x70f   :  { %2792 = vpow2.f32 %v2283_v4 }
 0x713   :  { %v2789_v42 = vpop.eup %2788 }
 0x714   :  { %2310 = vadd.xlane.f32.xlu2 %v2789_v42  ;;  %v2791_v32 = vpop.eup %2790 }
 0x715   :  { %v2793_v43 = vpop.eup %2792 }
 0x71f   :  { %v2329_v2 = vpop.f32.mrf.mxu3 }
 0x720   :  { %v3738_v51 = vadd.f32 %v2329_v2, %v3681_v40 }
 0x722   :  { %2333 = vmax.xlane.f32.xlu1 %v3738_v51 }
 0x727   :  { %v2331_v55 = vpop.f32.mrf.mxu3 }
 0x72a   :  { %2210 = vadd.xlane.f32.xlu1 %v2791_v32 }
 0x732   :  { %2285 = vadd.xlane.f32.xlu1 %v2793_v43 }
 0x762   :  { %v2161_v40 = vpop.xlane.xlu2 %2160 }
 0x76e   :  { %v2186_v57 = vpop.xlane.xlu0 %2185 }
 0x776   :  { %v2261_v21 = vpop.xlane.xlu0 %2260 }
 0x77f   :  { %v2236_v22 = vpop.xlane.xlu2 %2235 }
 0x787   :  { %v2311_v17 = vpop.xlane.xlu2 %2310 }
 0x795   :  { %v2334_v63 = vpop.xlane.xlu1 %2333 }
 0x796   :  { %v2335_v56 = vsub.f32 %v3738_v51, %v2334_v63 }
 0x798   :  { %v2336_v23 = vmul.f32 1.442695, %v2335_v56 }
 0x79a   :  { %2794 = vpow2.f32 %v2336_v23 }
 0x79b   :  { %2796 = vlog2.f32 %v2186_v57 }
 0x79c   :  { %2798 = vlog2.f32 %v2161_v40 }
 0x79d   :  { %v2211_v15 = vpop.xlane.xlu1 %2210 }
 0x79e   :  { %2800 = vlog2.f32 %v2211_v15 }
 0x79f   :  { %2802 = vlog2.f32 %v2236_v22 }
 0x7a0   :  { %v2795_v44 = vpop.eup %2794  ;;  %2804 = vlog2.f32 %v2261_v21 }
 0x7a1   :  { %2338 = vadd.xlane.f32.xlu0 %v2795_v44  ;;  %v2797_v5 = vpop.eup %2796 }
 0x7a2   :  { %v2799_v61 = vpop.eup %2798  ;;  %v2188_v11 = vmul.f32 0.6931472, %v2797_v5 }
 0x7a3   :  { %v2163_v58 = vmul.f32 0.6931472, %v2799_v61 }
 0x7a4   :  { %v2801_v8 = vpop.eup %2800  ;;  %v2189_v59 = vadd.f32 %v2188_v11, %v3720_v3 }
 0x7a5   :  { %v2286_v62 = vpop.xlane.xlu1 %2285  ;;  %v2213_v41 = vmul.f32 0.6931472, %v2801_v8  ;;  %v2803_v33 = vpop.eup %2802  ;;  %v2164_v49 = vadd.f32 %v2163_v58, %v3716_v18 }
 0x7a6   :  { %2806 = vlog2.f32 %v2286_v62  ;;  %v2805_v46 = vpop.eup %2804  ;;  %v2190_v14 = vsub.f32 %v3689_v30, %v2189_v59  ;;  %v2238_v25 = vmul.f32 0.6931472, %v2803_v33 }
 0x7a7   :  { %v2214_v1 = vadd.f32 %v2213_v41, %v2206_v12  ;;  %2808 = vlog2.f32 %v2311_v17  ;;  %v2165_v37 = vsub.f32 %v3684_v60, %v2164_v49  ;;  %v2263_v28 = vmul.f32 0.6931472, %v2805_v46 }
 0x7a8   :  { %v2239_v39 = vadd.f32 %v2238_v25, %v3728_v47 }
 0x7a9   :  { %v2215_v24 = vsub.f32 %v3697_v0, %v2214_v1  ;;  %v2191_v26 = vadd.f32 %v2190_v14, %v2165_v37  ;;  %v2264_v18 = vadd.f32 %v2263_v28, %v3724_v29 }
 0x7aa   :  { %v2240_v35 = vsub.f32 %v3706_v16, %v2239_v39 }
 0x7ab   :  { %v2216_v27 = vadd.f32 %v2215_v24, %v2191_v26  ;;  %v2265_v60 = vsub.f32 %v3693_v10, %v2264_v18 }
 0x7ac   :  { %v2807_v34 = vpop.eup %2806 }
 0x7ad   :  { %v2288_v3 = vmul.f32 0.6931472, %v2807_v34  ;;  %v2809_v31 = vpop.eup %2808  ;;  %v2241_v20 = vadd.f32 %v2240_v35, %v2216_v27 }
 0x7ae   :  { %v2313_v53 = vmul.f32 0.6931472, %v2809_v31 }
 0x7af   :  { %v2289_v12 = vadd.f32 %v2288_v3, %v2281_v19  ;;  %v2266_v45 = vadd.f32 %v2265_v60, %v2241_v20 }
 0x7b0   :  { %v2314_v13 = vadd.f32 %v2313_v53, %v3732_v9 }
 0x7b1   :  { %v2290_v0 = vsub.f32 %v3703_v36, %v2289_v12 }
 0x7b2   :  { %v2315_v48 = vsub.f32 %v3711_v54, %v2314_v13 }
 0x7b3   :  { %v2291_v38 = vadd.f32 %v2290_v0, %v2266_v45 }
 0x7b5   :  { %v2316_v42 = vadd.f32 %v2315_v48, %v2291_v38 }
 0x814   :  { %v2339_v30 = vpop.xlane.xlu0 %2338 }
 0x815   :  { %2810 = vlog2.f32 %v2339_v30 }
 0x81b   :  { %v2811_v47 = vpop.eup %2810 }
 0x81c   :  { %v2341_v6 = vmul.f32 0.6931472, %v2811_v47 }
 0x81e   :  { %v2342_v29 = vadd.f32 %v2341_v6, %v2334_v63 }
 0x820   :  { %v2343_v16 = vsub.f32 %v3738_v51, %v2342_v29 }
 0x822   :  { %v2344_v50 = vadd.f32 %v2343_v16, %v2316_v42 }
 0x824   :  { %v2345_v7 = vmul.f32 0.125, %v2344_v50 }
 0x826   :  { %2346 = vst [vmem:[%s3764_s5] sm:$0xff] %v2345_v7 }

</bundles_post_ra>
